<compile_context>
chip_gen: v6e
topology: v6e:2x2x1
jax: 0.10.0
libtpu: 0.0.40
codegen_flags: <defaults>
</compile_context>

<pallas_src>
import functools
import math

import jax
import jax.numpy as jnp
from jax.experimental import pallas as pl
from jax.experimental.pallas import tpu as pltpu


OUT_PAD = 128  # lane-dense padded head output width (action lanes + zero padding)


# ---------------------------------------------------------------------------
# Pallas kernel: full trunk + fused dueling head, VMEM-resident per batch tile.
# ---------------------------------------------------------------------------
def dueling_dqn_kernel(
    x_ref,
    w1, b1, g1, be1,              # fc1 + LayerNorm(1024)
    w2, b2, g2, be2,              # fc2 + LayerNorm(512)
    w3, b3, g3, be3,              # fc_intermediate + LayerNorm(512)
    w_h1, b_h1, g_h, be_h,        # fused [noisy_value1 || noisy_advantage1] + per-half LN(256)
    w2v, w2a, b_h2,               # stage-2 head, dueling combine folded in, 128-lane padded
    out_ref,
    *,
    elementwise_bf16,
):
    cdt = jnp.bfloat16 if elementwise_bf16 else jnp.float32

    def linear(h_bf16, w_ref, b_ref):
        # bf16 x bf16 -> f32 accumulation on the MXU.
        return (jnp.dot(h_bf16, w_ref[...], preferred_element_type=jnp.float32)
                + b_ref[...])

    def ln_relu(h, g, b, eps=1e-5):
        # Two-pass (centered) statistics in f32; affine + ReLU in `cdt`
        # (bf16 on v6e/v7x so the VALU-side work is half-width and the result
        #  is already in the next matmul's input dtype).
        mu = jnp.mean(h, axis=-1, keepdims=True)
        d = h - mu
        var = jnp.mean(d * d, axis=-1, keepdims=True)
        n = (d * jax.lax.rsqrt(var + eps)).astype(cdt)
        out = jnp.maximum(n * g.astype(cdt) + b.astype(cdt), 0.0)
        return out.astype(jnp.bfloat16)

    h = x_ref[...].astype(jnp.bfloat16)

    # trunk (dropout layers are identity in eval mode)
    h = ln_relu(linear(h, w1, b1), g1[...], be1[...])        # (TB, 1024) bf16
    h = ln_relu(linear(h, w2, b2), g2[...], be2[...])        # (TB, 512)  bf16
    h = ln_relu(linear(h, w3, b3), g3[...], be3[...])        # (TB, 512)  bf16

    # fused head, stage 1: [value_pre | advantage_pre] in one K=512 matmul;
    # LayerNorm applied per 256-lane half (slice is lane-tile aligned).
    hva = linear(h, w_h1, b_h1)                              # (TB, 512) f32
    gh, beh = g_h[...], be_h[...]
    hv = ln_relu(hva[:, :256], gh[:, :256], beh[:, :256])    # (TB, 256) bf16
    ha = ln_relu(hva[:, 256:], gh[:, 256:], beh[:, 256:])    # (TB, 256) bf16

    # fused head, stage 2: dueling combine already folded into w2v/w2a/b_h2 at
    # pack time, so Q (lanes 0..A-1; lanes >= A are padding) is just the sum of
    # two K=256 matmuls plus the combined bias.
    q = (jnp.dot(hv, w2v[...], preferred_element_type=jnp.float32)
         + jnp.dot(ha, w2a[...], preferred_element_type=jnp.float32)
         + b_h2[...])
    out_ref[...] = q.astype(out_ref.dtype)


# ---------------------------------------------------------------------------
# Parameter construction (deterministic, mimics PyTorch default inits).
# Raw params use (in_features, out_features) layout; biases/LN as (1, features).
# ---------------------------------------------------------------------------
def _linear_params(key, fan_in, fan_out):
    k_w, k_b = jax.random.split(key)
    bound = 1.0 / math.sqrt(fan_in)
    w = jax.random.uniform(k_w, (fan_in, fan_out), jnp.float32, -bound, bound)
    b = jax.random.uniform(k_b, (1, fan_out), jnp.float32, -bound, bound)
    return w, b


def _layernorm_params(dim):
    return jnp.ones((1, dim), jnp.float32), jnp.zeros((1, dim), jnp.float32)


def init_dueling_dqn_params(key, state_size, action_size):
    keys = jax.random.split(key, 7)
    params = []

    w1, b1 = _linear_params(keys[0], state_size, 1024)
    g1, be1 = _layernorm_params(1024)
    params += [w1, b1, g1, be1]

    w2, b2 = _linear_params(keys[1], 1024, 512)
    g2, be2 = _layernorm_params(512)
    params += [w2, b2, g2, be2]

    w3, b3 = _linear_params(keys[2], 512, 512)
    g3, be3 = _layernorm_params(512)
    params += [w3, b3, g3, be3]

    wv1, bv1 = _linear_params(keys[3], 512, 256)
    gv, bev = _layernorm_params(256)
    params += [wv1, bv1, gv, bev]

    wv2, bv2 = _linear_params(keys[4], 256, 1)
    params += [wv2, bv2]

    wa1, ba1 = _linear_params(keys[5], 512, 256)
    ga, bea = _layernorm_params(256)
    params += [wa1, ba1, ga, bea]

    wa2, ba2 = _linear_params(keys[6], 256, action_size)
    params += [wa2, ba2]

    return params


# ---------------------------------------------------------------------------
# Pack raw params into the fused / bf16 layout the kernel expects.
# ---------------------------------------------------------------------------
def pack_params(params):
    (w1, b1, g1, be1,
     w2, b2, g2, be2,
     w3, b3, g3, be3,
     wv1, bv1, gv, bev,
     wv2, bv2,
     wa1, ba1, ga, bea,
     wa2, ba2) = params

    A = wa2.shape[1]
    bf = jnp.bfloat16

    # fused first-stage head: [value | advantage]
    w_h1 = jnp.concatenate([wv1, wa1], axis=1)          # (512, 512)
    b_h1 = jnp.concatenate([bv1, ba1], axis=1)          # (1, 512)
    g_h = jnp.concatenate([gv, ga], axis=1)             # (1, 512)
    be_h = jnp.concatenate([bev, bea], axis=1)          # (1, 512)

    # stage-2 head with the dueling combine folded in:
    #   Q_j = hv @ wv2 + ha @ (wa2[:, j] - mean_j wa2) + (bv2 + ba2[j] - mean_j ba2)
    # lanes >= A are zero padding (sliced off in the wrapper).
    wa2_c = wa2 - jnp.mean(wa2, axis=1, keepdims=True)          # (256, A)
    ba2_c = ba2 - jnp.mean(ba2, axis=1, keepdims=True)          # (1, A)
    w2v = jnp.zeros((256, OUT_PAD), jnp.float32).at[:, :A].set(
        jnp.broadcast_to(wv2, (256, A)))
    w2a = jnp.zeros((256, OUT_PAD), jnp.float32).at[:, :A].set(wa2_c)
    b_h2 = jnp.zeros((1, OUT_PAD), jnp.float32).at[:, :A].set(bv2[0, 0] + ba2_c)

    return [
        w1.astype(bf), b1, g1, be1,
        w2.astype(bf), b2, g2, be2,
        w3.astype(bf), b3, g3, be3,
        w_h1.astype(bf), b_h1, g_h, be_h,
        w2v.astype(bf), w2a.astype(bf), b_h2,
    ]


# ---------------------------------------------------------------------------
# Device-dependent tuning (generation detected from device_kind; safe fallback).
# ---------------------------------------------------------------------------
def _tpu_config():
    kind = ""
    try:
        kind = (jax.devices()[0].device_kind or "").lower()
    except Exception:
        pass
    is_v5e = ("v5 lite" in kind) or ("v5e" in kind) or ("v5litepod" in kind)
    is_v7 = "v7" in kind
    return {
        # v5e has no bf16 VPU: keep elementwise LN/ReLU work in f32 there.
        "elementwise_bf16": not is_v5e,
        # larger tiles amortize the ~0.35us per-grid-step overhead; cap lower
        # on v7x which only has 64 MiB VMEM.
        "default_batch_tile": 512 if is_v7 else 1024,
        # v7x has 2 TensorCores: keep >= 2 grid steps so "parallel" can shard.
        "multi_core": is_v7,
    }


# ---------------------------------------------------------------------------
# Wrapper: batch-tiled pallas_call. Weights use constant index_maps so they are
# DMA'd once and stay VMEM-resident across grid steps; the batch axis is
# "parallel" (TensorCore-shardable on multi-core parts).
# ---------------------------------------------------------------------------
def dueling_dqn_forward(x, packed_params, action_size, batch_tile=None):
    B, S = x.shape
    cfg = _tpu_config()
    if batch_tile is None:
        batch_tile = cfg["default_batch_tile"]

    def rup(v, m):
        return ((v + m - 1) // m) * m

    # sublane-aligned batch tile; small batches become a single padded tile.
    B_aligned = rup(max(B, 1), 8)
    TB = max(8, (min(batch_tile, B_aligned) // 8) * 8)
    if cfg["multi_core"] and B_aligned >= 16 and B_aligned <= TB:
        TB = rup(B_aligned // 2, 8)   # guarantee >= 2 grid steps (both TCs busy)
    B_pad = rup(B, TB)
    if B_pad != B:
        x = jnp.pad(x, ((0, B_pad - B), (0, 0)))
    grid = (B_pad // TB,)

    const_map = lambda i: (0, 0)
    # Constant index_map -> each weight is DMA'd once and stays VMEM-resident.
    # (pipeline_mode=pl.Buffered(1) would drop the redundant second buffer on
    #  v7x, but the whole weight set is only ~2.3 MiB so it's left at default
    #  for portability.)
    weight_specs = [pl.BlockSpec(p.shape, const_map) for p in packed_params]

    flops = 2 * B_pad * (S * 1024 + 1024 * 512 + 512 * 512 + 512 * 512
                         + 2 * 256 * OUT_PAD)
    bytes_accessed = (
        sum(int(p.size) * p.dtype.itemsize for p in packed_params)
        + int(x.size) * x.dtype.itemsize
        + B_pad * OUT_PAD * 4
    )
    cost = pl.CostEstimate(flops=flops, transcendentals=5 * B_pad,
                           bytes_accessed=bytes_accessed)

    kernel = functools.partial(dueling_dqn_kernel,
                               elementwise_bf16=cfg["elementwise_bf16"])

    out = pl.pallas_call(
        kernel,
        out_shape=jax.ShapeDtypeStruct((B_pad, OUT_PAD), jnp.float32),
        grid_spec=pltpu.PrefetchScalarGridSpec(
            num_scalar_prefetch=0,
            grid=grid,
            in_specs=[pl.BlockSpec((TB, S), lambda i: (i, 0))] + weight_specs,
            out_specs=pl.BlockSpec((TB, OUT_PAD), lambda i: (i, 0)),
        ),
        compiler_params=pltpu.CompilerParams(
            dimension_semantics=("parallel",),
            vmem_limit_bytes=32 << 20,   # fits v7x's 64 MiB VMEM with headroom
        ),
        cost_estimate=cost,
    )(x, *packed_params)

    return out[:B, :action_size]


# ---------------------------------------------------------------------------
# Pure-JAX reference (module semantics), precision-matched to the kernel:
# bf16 weights, bf16 matmul inputs, f32 accumulation / LayerNorm, standard
# (non-folded) dueling combine.
# ---------------------------------------------------------------------------
def _reference_forward(x, params):
    (w1, b1, g1, be1,
     w2, b2, g2, be2,
     w3, b3, g3, be3,
     wv1, bv1, gv, bev,
     wv2, bv2,
     wa1, ba1, ga, bea,
     wa2, ba2) = params

    def mm(h, w, b):
        return jnp.dot(h.astype(jnp.bfloat16), w.astype(jnp.bfloat16),
                       preferred_element_type=jnp.float32) + b

    def ln(h, g, b, eps=1e-5):
        mu = jnp.mean(h, axis=-1, keepdims=True)
        var = jnp.mean((h - mu) ** 2, axis=-1, keepdims=True)
        return (h - mu) / jnp.sqrt(var + eps) * g + b

    h = x.astype(jnp.float32)
    h = jax.nn.relu(ln(mm(h, w1, b1), g1, be1))
    h = jax.nn.relu(ln(mm(h, w2, b2), g2, be2))
    h = jax.nn.relu(ln(mm(h, w3, b3), g3, be3))
    v = mm(jax.nn.relu(ln(mm(h, wv1, bv1), gv, bev)), wv2, bv2)
    a = mm(jax.nn.relu(ln(mm(h, wa1, ba1), ga, bea)), wa2, ba2)
    return v + (a - jnp.mean(a, axis=1, keepdims=True))


if __name__ == "__main__":
    key = jax.random.PRNGKey(0)
    k_x, k_p = jax.random.split(key)

    batch = 2
    state_size = 32
    action_size = 4

    x = jax.random.normal(k_x, (batch, state_size), jnp.float32)
    params = init_dueling_dqn_params(k_p, state_size, action_size)
    packed = pack_params(params)

    q = dueling_dqn_forward(x, packed, action_size)
    jax.block_until_ready(q)

    q_ref = _reference_forward(x, params)
    assert q.shape == (batch, action_size)
    assert jnp.allclose(q, q_ref, atol=1e-2, rtol=1e-2), "mismatch vs reference"

    print("KERNEL_OK")
</pallas_src>

<mosaic_0001>
module attributes {stable_mosaic.version = 11 : i64} {
  func.func @dueling_dqn_kernel(%arg0: i32, %arg1: memref<8x32xf32, #tpu.memory_space<vmem>>, %arg2: memref<32x1024xbf16, #tpu.memory_space<vmem>>, %arg3: memref<1x1024xf32, #tpu.memory_space<vmem>>, %arg4: memref<1x1024xf32, #tpu.memory_space<vmem>>, %arg5: memref<1x1024xf32, #tpu.memory_space<vmem>>, %arg6: memref<1024x512xbf16, #tpu.memory_space<vmem>>, %arg7: memref<1x512xf32, #tpu.memory_space<vmem>>, %arg8: memref<1x512xf32, #tpu.memory_space<vmem>>, %arg9: memref<1x512xf32, #tpu.memory_space<vmem>>, %arg10: memref<512x512xbf16, #tpu.memory_space<vmem>>, %arg11: memref<1x512xf32, #tpu.memory_space<vmem>>, %arg12: memref<1x512xf32, #tpu.memory_space<vmem>>, %arg13: memref<1x512xf32, #tpu.memory_space<vmem>>, %arg14: memref<512x512xbf16, #tpu.memory_space<vmem>>, %arg15: memref<1x512xf32, #tpu.memory_space<vmem>>, %arg16: memref<1x512xf32, #tpu.memory_space<vmem>>, %arg17: memref<1x512xf32, #tpu.memory_space<vmem>>, %arg18: memref<256x128xbf16, #tpu.memory_space<vmem>>, %arg19: memref<256x128xbf16, #tpu.memory_space<vmem>>, %arg20: memref<1x128xf32, #tpu.memory_space<vmem>>, %arg21: memref<8x128xf32, #tpu.memory_space<vmem>>) attributes {dimension_semantics = [#tpu.dimension_semantics<parallel>], iteration_bounds = array<i64: 1>, scalar_prefetch = 0 : i64, scratch_operands = 0 : i64, tpu.core_type = #tpu.core_type<tc>, window_params = [{transform_indices = @transform_0, window_bounds = array<i64: 8, 32>}, {pipeline_mode = #tpu.pipeline_mode<synchronous>, transform_indices = @transform_1, window_bounds = array<i64: 32, 1024>}, {pipeline_mode = #tpu.pipeline_mode<synchronous>, transform_indices = @transform_2, window_bounds = array<i64: 1, 1024>}, {pipeline_mode = #tpu.pipeline_mode<synchronous>, transform_indices = @transform_3, window_bounds = array<i64: 1, 1024>}, {pipeline_mode = #tpu.pipeline_mode<synchronous>, transform_indices = @transform_4, window_bounds = array<i64: 1, 1024>}, {pipeline_mode = #tpu.pipeline_mode<synchronous>, transform_indices = @transform_5, window_bounds = array<i64: 1024, 512>}, {pipeline_mode = #tpu.pipeline_mode<synchronous>, transform_indices = @transform_6, window_bounds = array<i64: 1, 512>}, {pipeline_mode = #tpu.pipeline_mode<synchronous>, transform_indices = @transform_7, window_bounds = array<i64: 1, 512>}, {pipeline_mode = #tpu.pipeline_mode<synchronous>, transform_indices = @transform_8, window_bounds = array<i64: 1, 512>}, {pipeline_mode = #tpu.pipeline_mode<synchronous>, transform_indices = @transform_9, window_bounds = array<i64: 512, 512>}, {pipeline_mode = #tpu.pipeline_mode<synchronous>, transform_indices = @transform_10, window_bounds = array<i64: 1, 512>}, {pipeline_mode = #tpu.pipeline_mode<synchronous>, transform_indices = @transform_11, window_bounds = array<i64: 1, 512>}, {pipeline_mode = #tpu.pipeline_mode<synchronous>, transform_indices = @transform_12, window_bounds = array<i64: 1, 512>}, {pipeline_mode = #tpu.pipeline_mode<synchronous>, transform_indices = @transform_13, window_bounds = array<i64: 512, 512>}, {pipeline_mode = #tpu.pipeline_mode<synchronous>, transform_indices = @transform_14, window_bounds = array<i64: 1, 512>}, {pipeline_mode = #tpu.pipeline_mode<synchronous>, transform_indices = @transform_15, window_bounds = array<i64: 1, 512>}, {pipeline_mode = #tpu.pipeline_mode<synchronous>, transform_indices = @transform_16, window_bounds = array<i64: 1, 512>}, {pipeline_mode = #tpu.pipeline_mode<synchronous>, transform_indices = @transform_17, window_bounds = array<i64: 256, 128>}, {pipeline_mode = #tpu.pipeline_mode<synchronous>, transform_indices = @transform_18, window_bounds = array<i64: 256, 128>}, {pipeline_mode = #tpu.pipeline_mode<synchronous>, transform_indices = @transform_19, window_bounds = array<i64: 1, 128>}, {transform_indices = @transform_20, window_bounds = array<i64: 8, 128>}]} {
    %c0 = arith.constant 0 : index
    %c0_0 = arith.constant 0 : index
    %0 = vector.load %arg1[%c0, %c0_0] : memref<8x32xf32, #tpu.memory_space<vmem>>, vector<8x32xf32>
    %1 = arith.truncf %0 : vector<8x32xf32> to vector<8x32xbf16>
    %c0_1 = arith.constant 0 : index
    %c0_2 = arith.constant 0 : index
    %2 = vector.load %arg2[%c0_1, %c0_2] : memref<32x1024xbf16, #tpu.memory_space<vmem>>, vector<32x1024xbf16>
    %cst = arith.constant dense<0.000000e+00> : vector<8x1024xf32>
    %3 = tpu.matmul %1, %2, %cst {dimension_numbers = #tpu.dot_dimension_numbers<[1], [0], [0], [1], [0, 0, 1, 1], [], []>} : vector<8x32xbf16>, vector<32x1024xbf16>, vector<8x1024xf32> -> vector<8x1024xf32>
    %c0_3 = arith.constant 0 : index
    %c0_4 = arith.constant 0 : index
    %4 = vector.load %arg3[%c0_3, %c0_4] : memref<1x1024xf32, #tpu.memory_space<vmem>>, vector<1x1024xf32>
    %5 = vector.broadcast %4 : vector<1x1024xf32> to vector<8x1024xf32>
    %6 = arith.addf %3, %5 : vector<8x1024xf32>
    %c0_5 = arith.constant 0 : index
    %c0_6 = arith.constant 0 : index
    %7 = vector.load %arg4[%c0_5, %c0_6] : memref<1x1024xf32, #tpu.memory_space<vmem>>, vector<1x1024xf32>
    %c0_7 = arith.constant 0 : index
    %c0_8 = arith.constant 0 : index
    %8 = vector.load %arg5[%c0_7, %c0_8] : memref<1x1024xf32, #tpu.memory_space<vmem>>, vector<1x1024xf32>
    %cst_9 = arith.constant dense<0.000000e+00> : vector<8xf32>
    %9 = vector.multi_reduction <add>, %6, %cst_9 [1] : vector<8x1024xf32> to vector<8xf32>
    %10 = vector.shape_cast %9 : vector<8xf32> to vector<8x1xf32>
    %cst_10 = arith.constant 1.024000e+03 : f32
    %11 = vector.broadcast %cst_10 : f32 to vector<8x1xf32>
    %12 = arith.divf %10, %11 : vector<8x1xf32>
    %13 = vector.broadcast %12 : vector<8x1xf32> to vector<8x1024xf32>
    %14 = arith.subf %6, %13 : vector<8x1024xf32>
    %15 = arith.mulf %14, %14 : vector<8x1024xf32>
    %cst_11 = arith.constant dense<0.000000e+00> : vector<8xf32>
    %16 = vector.multi_reduction <add>, %15, %cst_11 [1] : vector<8x1024xf32> to vector<8xf32>
    %17 = vector.shape_cast %16 : vector<8xf32> to vector<8x1xf32>
    %cst_12 = arith.constant 1.024000e+03 : f32
    %18 = vector.broadcast %cst_12 : f32 to vector<8x1xf32>
    %19 = arith.divf %17, %18 : vector<8x1xf32>
    %cst_13 = arith.constant 9.99999974E-6 : f32
    %20 = vector.broadcast %cst_13 : f32 to vector<8x1xf32>
    %21 = arith.addf %19, %20 : vector<8x1xf32>
    %22 = math.rsqrt %21 : vector<8x1xf32>
    %23 = vector.broadcast %22 : vector<8x1xf32> to vector<8x1024xf32>
    %24 = arith.mulf %14, %23 : vector<8x1024xf32>
    %25 = arith.truncf %24 : vector<8x1024xf32> to vector<8x1024xbf16>
    %26 = arith.truncf %7 : vector<1x1024xf32> to vector<1x1024xbf16>
    %27 = vector.broadcast %26 : vector<1x1024xbf16> to vector<8x1024xbf16>
    %28 = arith.mulf %25, %27 : vector<8x1024xbf16>
    %29 = arith.truncf %8 : vector<1x1024xf32> to vector<1x1024xbf16>
    %30 = vector.broadcast %29 : vector<1x1024xbf16> to vector<8x1024xbf16>
    %31 = arith.addf %28, %30 : vector<8x1024xbf16>
    %cst_14 = arith.constant 0.000000e+00 : bf16
    %32 = vector.broadcast %cst_14 : bf16 to vector<8x1024xbf16>
    %33 = arith.maximumf %31, %32 : vector<8x1024xbf16>
    %c0_15 = arith.constant 0 : index
    %c0_16 = arith.constant 0 : index
    %34 = vector.load %arg6[%c0_15, %c0_16] : memref<1024x512xbf16, #tpu.memory_space<vmem>>, vector<1024x512xbf16>
    %cst_17 = arith.constant dense<0.000000e+00> : vector<8x512xf32>
    %35 = tpu.matmul %33, %34, %cst_17 {dimension_numbers = #tpu.dot_dimension_numbers<[1], [0], [0], [1], [0, 0, 1, 1], [], []>} : vector<8x1024xbf16>, vector<1024x512xbf16>, vector<8x512xf32> -> vector<8x512xf32>
    %c0_18 = arith.constant 0 : index
    %c0_19 = arith.constant 0 : index
    %36 = vector.load %arg7[%c0_18, %c0_19] : memref<1x512xf32, #tpu.memory_space<vmem>>, vector<1x512xf32>
    %37 = vector.broadcast %36 : vector<1x512xf32> to vector<8x512xf32>
    %38 = arith.addf %35, %37 : vector<8x512xf32>
    %c0_20 = arith.constant 0 : index
    %c0_21 = arith.constant 0 : index
    %39 = vector.load %arg8[%c0_20, %c0_21] : memref<1x512xf32, #tpu.memory_space<vmem>>, vector<1x512xf32>
    %c0_22 = arith.constant 0 : index
    %c0_23 = arith.constant 0 : index
    %40 = vector.load %arg9[%c0_22, %c0_23] : memref<1x512xf32, #tpu.memory_space<vmem>>, vector<1x512xf32>
    %cst_24 = arith.constant dense<0.000000e+00> : vector<8xf32>
    %41 = vector.multi_reduction <add>, %38, %cst_24 [1] : vector<8x512xf32> to vector<8xf32>
    %42 = vector.shape_cast %41 : vector<8xf32> to vector<8x1xf32>
    %cst_25 = arith.constant 5.120000e+02 : f32
    %43 = vector.broadcast %cst_25 : f32 to vector<8x1xf32>
    %44 = arith.divf %42, %43 : vector<8x1xf32>
    %45 = vector.broadcast %44 : vector<8x1xf32> to vector<8x512xf32>
    %46 = arith.subf %38, %45 : vector<8x512xf32>
    %47 = arith.mulf %46, %46 : vector<8x512xf32>
    %cst_26 = arith.constant dense<0.000000e+00> : vector<8xf32>
    %48 = vector.multi_reduction <add>, %47, %cst_26 [1] : vector<8x512xf32> to vector<8xf32>
    %49 = vector.shape_cast %48 : vector<8xf32> to vector<8x1xf32>
    %cst_27 = arith.constant 5.120000e+02 : f32
    %50 = vector.broadcast %cst_27 : f32 to vector<8x1xf32>
    %51 = arith.divf %49, %50 : vector<8x1xf32>
    %cst_28 = arith.constant 9.99999974E-6 : f32
    %52 = vector.broadcast %cst_28 : f32 to vector<8x1xf32>
    %53 = arith.addf %51, %52 : vector<8x1xf32>
    %54 = math.rsqrt %53 : vector<8x1xf32>
    %55 = vector.broadcast %54 : vector<8x1xf32> to vector<8x512xf32>
    %56 = arith.mulf %46, %55 : vector<8x512xf32>
    %57 = arith.truncf %56 : vector<8x512xf32> to vector<8x512xbf16>
    %58 = arith.truncf %39 : vector<1x512xf32> to vector<1x512xbf16>
    %59 = vector.broadcast %58 : vector<1x512xbf16> to vector<8x512xbf16>
    %60 = arith.mulf %57, %59 : vector<8x512xbf16>
    %61 = arith.truncf %40 : vector<1x512xf32> to vector<1x512xbf16>
    %62 = vector.broadcast %61 : vector<1x512xbf16> to vector<8x512xbf16>
    %63 = arith.addf %60, %62 : vector<8x512xbf16>
    %cst_29 = arith.constant 0.000000e+00 : bf16
    %64 = vector.broadcast %cst_29 : bf16 to vector<8x512xbf16>
    %65 = arith.maximumf %63, %64 : vector<8x512xbf16>
    %c0_30 = arith.constant 0 : index
    %c0_31 = arith.constant 0 : index
    %66 = vector.load %arg10[%c0_30, %c0_31] : memref<512x512xbf16, #tpu.memory_space<vmem>>, vector<512x512xbf16>
    %cst_32 = arith.constant dense<0.000000e+00> : vector<8x512xf32>
    %67 = tpu.matmul %65, %66, %cst_32 {dimension_numbers = #tpu.dot_dimension_numbers<[1], [0], [0], [1], [0, 0, 1, 1], [], []>} : vector<8x512xbf16>, vector<512x512xbf16>, vector<8x512xf32> -> vector<8x512xf32>
    %c0_33 = arith.constant 0 : index
    %c0_34 = arith.constant 0 : index
    %68 = vector.load %arg11[%c0_33, %c0_34] : memref<1x512xf32, #tpu.memory_space<vmem>>, vector<1x512xf32>
    %69 = vector.broadcast %68 : vector<1x512xf32> to vector<8x512xf32>
    %70 = arith.addf %67, %69 : vector<8x512xf32>
    %c0_35 = arith.constant 0 : index
    %c0_36 = arith.constant 0 : index
    %71 = vector.load %arg12[%c0_35, %c0_36] : memref<1x512xf32, #tpu.memory_space<vmem>>, vector<1x512xf32>
    %c0_37 = arith.constant 0 : index
    %c0_38 = arith.constant 0 : index
    %72 = vector.load %arg13[%c0_37, %c0_38] : memref<1x512xf32, #tpu.memory_space<vmem>>, vector<1x512xf32>
    %cst_39 = arith.constant dense<0.000000e+00> : vector<8xf32>
    %73 = vector.multi_reduction <add>, %70, %cst_39 [1] : vector<8x512xf32> to vector<8xf32>
    %74 = vector.shape_cast %73 : vector<8xf32> to vector<8x1xf32>
    %cst_40 = arith.constant 5.120000e+02 : f32
    %75 = vector.broadcast %cst_40 : f32 to vector<8x1xf32>
    %76 = arith.divf %74, %75 : vector<8x1xf32>
    %77 = vector.broadcast %76 : vector<8x1xf32> to vector<8x512xf32>
    %78 = arith.subf %70, %77 : vector<8x512xf32>
    %79 = arith.mulf %78, %78 : vector<8x512xf32>
    %cst_41 = arith.constant dense<0.000000e+00> : vector<8xf32>
    %80 = vector.multi_reduction <add>, %79, %cst_41 [1] : vector<8x512xf32> to vector<8xf32>
    %81 = vector.shape_cast %80 : vector<8xf32> to vector<8x1xf32>
    %cst_42 = arith.constant 5.120000e+02 : f32
    %82 = vector.broadcast %cst_42 : f32 to vector<8x1xf32>
    %83 = arith.divf %81, %82 : vector<8x1xf32>
    %cst_43 = arith.constant 9.99999974E-6 : f32
    %84 = vector.broadcast %cst_43 : f32 to vector<8x1xf32>
    %85 = arith.addf %83, %84 : vector<8x1xf32>
    %86 = math.rsqrt %85 : vector<8x1xf32>
    %87 = vector.broadcast %86 : vector<8x1xf32> to vector<8x512xf32>
    %88 = arith.mulf %78, %87 : vector<8x512xf32>
    %89 = arith.truncf %88 : vector<8x512xf32> to vector<8x512xbf16>
    %90 = arith.truncf %71 : vector<1x512xf32> to vector<1x512xbf16>
    %91 = vector.broadcast %90 : vector<1x512xbf16> to vector<8x512xbf16>
    %92 = arith.mulf %89, %91 : vector<8x512xbf16>
    %93 = arith.truncf %72 : vector<1x512xf32> to vector<1x512xbf16>
    %94 = vector.broadcast %93 : vector<1x512xbf16> to vector<8x512xbf16>
    %95 = arith.addf %92, %94 : vector<8x512xbf16>
    %cst_44 = arith.constant 0.000000e+00 : bf16
    %96 = vector.broadcast %cst_44 : bf16 to vector<8x512xbf16>
    %97 = arith.maximumf %95, %96 : vector<8x512xbf16>
    %c0_45 = arith.constant 0 : index
    %c0_46 = arith.constant 0 : index
    %98 = vector.load %arg14[%c0_45, %c0_46] : memref<512x512xbf16, #tpu.memory_space<vmem>>, vector<512x512xbf16>
    %cst_47 = arith.constant dense<0.000000e+00> : vector<8x512xf32>
    %99 = tpu.matmul %97, %98, %cst_47 {dimension_numbers = #tpu.dot_dimension_numbers<[1], [0], [0], [1], [0, 0, 1, 1], [], []>} : vector<8x512xbf16>, vector<512x512xbf16>, vector<8x512xf32> -> vector<8x512xf32>
    %c0_48 = arith.constant 0 : index
    %c0_49 = arith.constant 0 : index
    %100 = vector.load %arg15[%c0_48, %c0_49] : memref<1x512xf32, #tpu.memory_space<vmem>>, vector<1x512xf32>
    %101 = vector.broadcast %100 : vector<1x512xf32> to vector<8x512xf32>
    %102 = arith.addf %99, %101 : vector<8x512xf32>
    %c0_50 = arith.constant 0 : index
    %c0_51 = arith.constant 0 : index
    %103 = vector.load %arg16[%c0_50, %c0_51] : memref<1x512xf32, #tpu.memory_space<vmem>>, vector<1x512xf32>
    %c0_52 = arith.constant 0 : index
    %c0_53 = arith.constant 0 : index
    %104 = vector.load %arg17[%c0_52, %c0_53] : memref<1x512xf32, #tpu.memory_space<vmem>>, vector<1x512xf32>
    %105 = vector.extract_strided_slice %102 {offsets = [0, 0], sizes = [8, 256], strides = [1, 1]} : vector<8x512xf32> to vector<8x256xf32>
    %106 = vector.extract_strided_slice %103 {offsets = [0, 0], sizes = [1, 256], strides = [1, 1]} : vector<1x512xf32> to vector<1x256xf32>
    %107 = vector.extract_strided_slice %104 {offsets = [0, 0], sizes = [1, 256], strides = [1, 1]} : vector<1x512xf32> to vector<1x256xf32>
    %cst_54 = arith.constant dense<0.000000e+00> : vector<8xf32>
    %108 = vector.multi_reduction <add>, %105, %cst_54 [1] : vector<8x256xf32> to vector<8xf32>
    %109 = vector.shape_cast %108 : vector<8xf32> to vector<8x1xf32>
    %cst_55 = arith.constant 2.560000e+02 : f32
    %110 = vector.broadcast %cst_55 : f32 to vector<8x1xf32>
    %111 = arith.divf %109, %110 : vector<8x1xf32>
    %112 = vector.broadcast %111 : vector<8x1xf32> to vector<8x256xf32>
    %113 = arith.subf %105, %112 : vector<8x256xf32>
    %114 = arith.mulf %113, %113 : vector<8x256xf32>
    %cst_56 = arith.constant dense<0.000000e+00> : vector<8xf32>
    %115 = vector.multi_reduction <add>, %114, %cst_56 [1] : vector<8x256xf32> to vector<8xf32>
    %116 = vector.shape_cast %115 : vector<8xf32> to vector<8x1xf32>
    %cst_57 = arith.constant 2.560000e+02 : f32
    %117 = vector.broadcast %cst_57 : f32 to vector<8x1xf32>
    %118 = arith.divf %116, %117 : vector<8x1xf32>
    %cst_58 = arith.constant 9.99999974E-6 : f32
    %119 = vector.broadcast %cst_58 : f32 to vector<8x1xf32>
    %120 = arith.addf %118, %119 : vector<8x1xf32>
    %121 = math.rsqrt %120 : vector<8x1xf32>
    %122 = vector.broadcast %121 : vector<8x1xf32> to vector<8x256xf32>
    %123 = arith.mulf %113, %122 : vector<8x256xf32>
    %124 = arith.truncf %123 : vector<8x256xf32> to vector<8x256xbf16>
    %125 = arith.truncf %106 : vector<1x256xf32> to vector<1x256xbf16>
    %126 = vector.broadcast %125 : vector<1x256xbf16> to vector<8x256xbf16>
    %127 = arith.mulf %124, %126 : vector<8x256xbf16>
    %128 = arith.truncf %107 : vector<1x256xf32> to vector<1x256xbf16>
    %129 = vector.broadcast %128 : vector<1x256xbf16> to vector<8x256xbf16>
    %130 = arith.addf %127, %129 : vector<8x256xbf16>
    %cst_59 = arith.constant 0.000000e+00 : bf16
    %131 = vector.broadcast %cst_59 : bf16 to vector<8x256xbf16>
    %132 = arith.maximumf %130, %131 : vector<8x256xbf16>
    %133 = vector.extract_strided_slice %102 {offsets = [0, 256], sizes = [8, 256], strides = [1, 1]} : vector<8x512xf32> to vector<8x256xf32>
    %134 = vector.extract_strided_slice %103 {offsets = [0, 256], sizes = [1, 256], strides = [1, 1]} : vector<1x512xf32> to vector<1x256xf32>
    %135 = vector.extract_strided_slice %104 {offsets = [0, 256], sizes = [1, 256], strides = [1, 1]} : vector<1x512xf32> to vector<1x256xf32>
    %cst_60 = arith.constant dense<0.000000e+00> : vector<8xf32>
    %136 = vector.multi_reduction <add>, %133, %cst_60 [1] : vector<8x256xf32> to vector<8xf32>
    %137 = vector.shape_cast %136 : vector<8xf32> to vector<8x1xf32>
    %cst_61 = arith.constant 2.560000e+02 : f32
    %138 = vector.broadcast %cst_61 : f32 to vector<8x1xf32>
    %139 = arith.divf %137, %138 : vector<8x1xf32>
    %140 = vector.broadcast %139 : vector<8x1xf32> to vector<8x256xf32>
    %141 = arith.subf %133, %140 : vector<8x256xf32>
    %142 = arith.mulf %141, %141 : vector<8x256xf32>
    %cst_62 = arith.constant dense<0.000000e+00> : vector<8xf32>
    %143 = vector.multi_reduction <add>, %142, %cst_62 [1] : vector<8x256xf32> to vector<8xf32>
    %144 = vector.shape_cast %143 : vector<8xf32> to vector<8x1xf32>
    %cst_63 = arith.constant 2.560000e+02 : f32
    %145 = vector.broadcast %cst_63 : f32 to vector<8x1xf32>
    %146 = arith.divf %144, %145 : vector<8x1xf32>
    %cst_64 = arith.constant 9.99999974E-6 : f32
    %147 = vector.broadcast %cst_64 : f32 to vector<8x1xf32>
    %148 = arith.addf %146, %147 : vector<8x1xf32>
    %149 = math.rsqrt %148 : vector<8x1xf32>
    %150 = vector.broadcast %149 : vector<8x1xf32> to vector<8x256xf32>
    %151 = arith.mulf %141, %150 : vector<8x256xf32>
    %152 = arith.truncf %151 : vector<8x256xf32> to vector<8x256xbf16>
    %153 = arith.truncf %134 : vector<1x256xf32> to vector<1x256xbf16>
    %154 = vector.broadcast %153 : vector<1x256xbf16> to vector<8x256xbf16>
    %155 = arith.mulf %152, %154 : vector<8x256xbf16>
    %156 = arith.truncf %135 : vector<1x256xf32> to vector<1x256xbf16>
    %157 = vector.broadcast %156 : vector<1x256xbf16> to vector<8x256xbf16>
    %158 = arith.addf %155, %157 : vector<8x256xbf16>
    %cst_65 = arith.constant 0.000000e+00 : bf16
    %159 = vector.broadcast %cst_65 : bf16 to vector<8x256xbf16>
    %160 = arith.maximumf %158, %159 : vector<8x256xbf16>
    %c0_66 = arith.constant 0 : index
    %c0_67 = arith.constant 0 : index
    %161 = vector.load %arg18[%c0_66, %c0_67] : memref<256x128xbf16, #tpu.memory_space<vmem>>, vector<256x128xbf16>
    %cst_68 = arith.constant dense<0.000000e+00> : vector<8x128xf32>
    %162 = tpu.matmul %132, %161, %cst_68 {dimension_numbers = #tpu.dot_dimension_numbers<[1], [0], [0], [1], [0, 0, 1, 1], [], []>} : vector<8x256xbf16>, vector<256x128xbf16>, vector<8x128xf32> -> vector<8x128xf32>
    %c0_69 = arith.constant 0 : index
    %c0_70 = arith.constant 0 : index
    %163 = vector.load %arg19[%c0_69, %c0_70] : memref<256x128xbf16, #tpu.memory_space<vmem>>, vector<256x128xbf16>
    %cst_71 = arith.constant dense<0.000000e+00> : vector<8x128xf32>
    %164 = tpu.matmul %160, %163, %cst_71 {dimension_numbers = #tpu.dot_dimension_numbers<[1], [0], [0], [1], [0, 0, 1, 1], [], []>} : vector<8x256xbf16>, vector<256x128xbf16>, vector<8x128xf32> -> vector<8x128xf32>
    %165 = arith.addf %162, %164 : vector<8x128xf32>
    %c0_72 = arith.constant 0 : index
    %c0_73 = arith.constant 0 : index
    %166 = vector.load %arg20[%c0_72, %c0_73] : memref<1x128xf32, #tpu.memory_space<vmem>>, vector<1x128xf32>
    %167 = vector.broadcast %166 : vector<1x128xf32> to vector<8x128xf32>
    %168 = arith.addf %165, %167 : vector<8x128xf32>
    %c0_74 = arith.constant 0 : index
    %c0_75 = arith.constant 0 : index
    %169 = vector.load %arg21[%c0_74, %c0_75] : memref<8x128xf32, #tpu.memory_space<vmem>>, vector<8x128xf32>
    tpu.vector_store %arg21[%c0_74, %c0_75], %168 {strides = array<i32>} : memref<8x128xf32, #tpu.memory_space<vmem>>, vector<8x128xf32>,
    return
  }
  func.func @transform_0(%arg0: i32) -> (i32, i32) {
    %c0_i32 = arith.constant 0 : i32
    %c0_i32_0 = arith.constant 0 : i32
    return %arg0, %c0_i32 : i32, i32
  }
  func.func @transform_1(%arg0: i32) -> (i32, i32) {
    %c0_i32 = arith.constant 0 : i32
    %c0_i32_0 = arith.constant 0 : i32
    %c0_i32_1 = arith.constant 0 : i32
    return %c0_i32, %c0_i32_0 : i32, i32
  }
  func.func @transform_2(%arg0: i32) -> (i32, i32) {
    %c0_i32 = arith.constant 0 : i32
    %c0_i32_0 = arith.constant 0 : i32
    %c0_i32_1 = arith.constant 0 : i32
    return %c0_i32, %c0_i32_0 : i32, i32
  }
  func.func @transform_3(%arg0: i32) -> (i32, i32) {
    %c0_i32 = arith.constant 0 : i32
    %c0_i32_0 = arith.constant 0 : i32
    %c0_i32_1 = arith.constant 0 : i32
    return %c0_i32, %c0_i32_0 : i32, i32
  }
  func.func @transform_4(%arg0: i32) -> (i32, i32) {
    %c0_i32 = arith.constant 0 : i32
    %c0_i32_0 = arith.constant 0 : i32
    %c0_i32_1 = arith.constant 0 : i32
    return %c0_i32, %c0_i32_0 : i32, i32
  }
  func.func @transform_5(%arg0: i32) -> (i32, i32) {
    %c0_i32 = arith.constant 0 : i32
    %c0_i32_0 = arith.constant 0 : i32
    %c0_i32_1 = arith.constant 0 : i32
    return %c0_i32, %c0_i32_0 : i32, i32
  }
  func.func @transform_6(%arg0: i32) -> (i32, i32) {
    %c0_i32 = arith.constant 0 : i32
    %c0_i32_0 = arith.constant 0 : i32
    %c0_i32_1 = arith.constant 0 : i32
    return %c0_i32, %c0_i32_0 : i32, i32
  }
  func.func @transform_7(%arg0: i32) -> (i32, i32) {
    %c0_i32 = arith.constant 0 : i32
    %c0_i32_0 = arith.constant 0 : i32
    %c0_i32_1 = arith.constant 0 : i32
    return %c0_i32, %c0_i32_0 : i32, i32
  }
  func.func @transform_8(%arg0: i32) -> (i32, i32) {
    %c0_i32 = arith.constant 0 : i32
    %c0_i32_0 = arith.constant 0 : i32
    %c0_i32_1 = arith.constant 0 : i32
    return %c0_i32, %c0_i32_0 : i32, i32
  }
  func.func @transform_9(%arg0: i32) -> (i32, i32) {
    %c0_i32 = arith.constant 0 : i32
    %c0_i32_0 = arith.constant 0 : i32
    %c0_i32_1 = arith.constant 0 : i32
    return %c0_i32, %c0_i32_0 : i32, i32
  }
  func.func @transform_10(%arg0: i32) -> (i32, i32) {
    %c0_i32 = arith.constant 0 : i32
    %c0_i32_0 = arith.constant 0 : i32
    %c0_i32_1 = arith.constant 0 : i32
    return %c0_i32, %c0_i32_0 : i32, i32
  }
  func.func @transform_11(%arg0: i32) -> (i32, i32) {
    %c0_i32 = arith.constant 0 : i32
    %c0_i32_0 = arith.constant 0 : i32
    %c0_i32_1 = arith.constant 0 : i32
    return %c0_i32, %c0_i32_0 : i32, i32
  }
  func.func @transform_12(%arg0: i32) -> (i32, i32) {
    %c0_i32 = arith.constant 0 : i32
    %c0_i32_0 = arith.constant 0 : i32
    %c0_i32_1 = arith.constant 0 : i32
    return %c0_i32, %c0_i32_0 : i32, i32
  }
  func.func @transform_13(%arg0: i32) -> (i32, i32) {
    %c0_i32 = arith.constant 0 : i32
    %c0_i32_0 = arith.constant 0 : i32
    %c0_i32_1 = arith.constant 0 : i32
    return %c0_i32, %c0_i32_0 : i32, i32
  }
  func.func @transform_14(%arg0: i32) -> (i32, i32) {
    %c0_i32 = arith.constant 0 : i32
    %c0_i32_0 = arith.constant 0 : i32
    %c0_i32_1 = arith.constant 0 : i32
    return %c0_i32, %c0_i32_0 : i32, i32
  }
  func.func @transform_15(%arg0: i32) -> (i32, i32) {
    %c0_i32 = arith.constant 0 : i32
    %c0_i32_0 = arith.constant 0 : i32
    %c0_i32_1 = arith.constant 0 : i32
    return %c0_i32, %c0_i32_0 : i32, i32
  }
  func.func @transform_16(%arg0: i32) -> (i32, i32) {
    %c0_i32 = arith.constant 0 : i32
    %c0_i32_0 = arith.constant 0 : i32
    %c0_i32_1 = arith.constant 0 : i32
    return %c0_i32, %c0_i32_0 : i32, i32
  }
  func.func @transform_17(%arg0: i32) -> (i32, i32) {
    %c0_i32 = arith.constant 0 : i32
    %c0_i32_0 = arith.constant 0 : i32
    %c0_i32_1 = arith.constant 0 : i32
    return %c0_i32, %c0_i32_0 : i32, i32
  }
  func.func @transform_18(%arg0: i32) -> (i32, i32) {
    %c0_i32 = arith.constant 0 : i32
    %c0_i32_0 = arith.constant 0 : i32
    %c0_i32_1 = arith.constant 0 : i32
    return %c0_i32, %c0_i32_0 : i32, i32
  }
  func.func @transform_19(%arg0: i32) -> (i32, i32) {
    %c0_i32 = arith.constant 0 : i32
    %c0_i32_0 = arith.constant 0 : i32
    %c0_i32_1 = arith.constant 0 : i32
    return %c0_i32, %c0_i32_0 : i32, i32
  }
  func.func @transform_20(%arg0: i32) -> (i32, i32) {
    %c0_i32 = arith.constant 0 : i32
    %c0_i32_0 = arith.constant 0 : i32
    return %arg0, %c0_i32 : i32, i32
  }
}

</mosaic_0001>

<bundles_post_ra>
// kernel: tpu_custom_call.1
= control target key start
LH: loop header
LB: loop body
LE: loop exit
PB: predicated region body
PF: predicated region fallthrough
CT: control target
= control target key end

     0   :  { %s7721_s0 = inlined_call_operand.hbm [shape: f32[8,32], index: 0, kind: input, shape index: {}]   ;;  %s7722_s1 = inlined_call_operand.hbm [shape: bf16[32,1024], index: 1, kind: input, shape index: {}]   ;;  %s7723_s2 = inlined_call_operand.hbm [shape: f32[1,1024], index: 2, kind: input, shape index: {}]   ;;  %s7724_s3 = inlined_call_operand.hbm [shape: f32[1,1024], index: 3, kind: input, shape index: {}]   ;;  %s7725_s4 = inlined_call_operand.hbm [shape: f32[1,1024], index: 4, kind: input, shape index: {}]   ;;  %s7726_s5 = inlined_call_operand.hbm [shape: bf16[1024,512], index: 5, kind: input, shape index: {}]   ;;  %s7727_s6 = inlined_call_operand.vmem [shape: f32[1,512], index: 6, kind: input, shape index: {}]   ;;  %s7728_s7 = inlined_call_operand.vmem [shape: f32[1,512], index: 7, kind: input, shape index: {}]   ;;  %s7729_s8 = inlined_call_operand.vmem [shape: f32[1,512], index: 8, kind: input, shape index: {}]   ;;  %s7730_s9 = inlined_call_operand.hbm [shape: bf16[512,512], index: 9, kind: input, shape index: {}]   ;;  %s7731_s10 = inlined_call_operand.vmem [shape: f32[1,512], index: 10, kind: input, shape index: {}]   ;;  %s7732_s11 = inlined_call_operand.vmem [shape: f32[1,512], index: 11, kind: input, shape index: {}]   ;;  %s7733_s12 = inlined_call_operand.hbm [shape: f32[1,512], index: 12, kind: input, shape index: {}]   ;;  %s7734_s13 = inlined_call_operand.hbm [shape: bf16[512,512], index: 13, kind: input, shape index: {}]   ;;  %s7735_s14 = inlined_call_operand.vmem [shape: f32[1,512], index: 14, kind: input, shape index: {}]   ;;  %s7736_s15 = inlined_call_operand.hbm [shape: f32[1,512], index: 15, kind: input, shape index: {}]   ;;  %s7737_s16 = inlined_call_operand.vmem [shape: f32[1,512], index: 16, kind: input, shape index: {}]   ;;  %s7738_s17 = inlined_call_operand.hbm [shape: bf16[256,128], index: 17, kind: input, shape index: {}]   ;;  %s7739_s18 = inlined_call_operand.hbm [shape: bf16[256,128], index: 18, kind: input, shape index: {}]   ;;  %s7740_s19 = inlined_call_operand.vmem [shape: f32[1,128], index: 19, kind: input, shape index: {}]   ;;  %s7741_s20 = inlined_call_operand.hbm [shape: f32[8,128], index: 20, kind: output, shape index: {}]  }
   0x1   :  { %7742 = sst [smem:[#allocation31_spill]] %s7721_s0 }
   0x2   :  { %7743 = sst [smem:[#allocation32_spill]] %s7722_s1 }
   0x3   :  { %7744 = sst [smem:[#allocation33_spill]] %s7723_s2 }
   0x4   :  { %7745 = sst [smem:[#allocation34_spill]] %s7724_s3 }
   0x5   :  { %7746 = sst [smem:[#allocation35_spill]] %s7725_s4 }
   0x6   :  { %25 = vsyncpa [#allocation3], 0 }
   0x7   :  { %26 = vsyncpa [#allocation6], 0 }
   0x8   :  { %27 = vsyncpa [#allocation9], 0 }
   0x9   :  { %28 = vsyncpa [#allocation12], 0 }
   0xa   :  { %29 = vsyncpa [#allocation15], 0 }
   0xb   :  { %30 = vsyncpa [#allocation18], 0 }
   0xc   :  { %31 = vsyncpa [#allocation21], 0 }
   0xd   :  { %32 = vsyncpa [#allocation4], 0  ;;  %s7150_s1 = smov [#allocation5]  }
   0xe   :  { %s48_s22 = sshll.u32 %s7150_s1, 4  ;;  %s49_s22 = int_to_ptr.vmem [resolvable:$true] %s48_s22 }
   0xf   :  { %s6882_s23 = scalar_lea.vmem %s49_s22, 2048  ;;  %p6887_p1 = scmp.lt.s32.totalorder %s49_s22, %s49_s22 }
  0x10   :  { %p6883_p0 = scmp.ne.s32.totalorder %s49_s22, %s6882_s23  ;;  %p6888_p2 = scmp.lt.s32.totalorder %s6882_s23, %s6882_s23 }
  0x12   :  { %p6889_p3 = por %p6888_p2, %p6887_p1 }
  0x14   :  { %p6890_p4 = pnand %p6889_p3, %p6883_p0 }
  0x16   :  { %6893 = shalt.err (!%p6890_p4)
}
  0x17   :  { %s7151_s24 = smov 512   ;;  %s7152_s2 = smov 32  }
  0x18   :  { %s7747_s26 = sld [smem:[#allocation32_spill]]  ;;  %s7153_s27 = smov [#allocation8]  }
  0x19   :  { %s71_s28 = sshll.u32 %s7153_s27, 4  ;;  %s7154_s4 = smov [#allocation11]   ;;  %s72_s28 = int_to_ptr.vmem [resolvable:$true] %s71_s28 }
  0x1a   :  { %s90_s29 = sshll.u32 %s7154_s4, 4  ;;  %s6902_s30 = scalar_lea.vmem %s72_s28, 128  ;;  %s91_s29 = int_to_ptr.vmem [resolvable:$true] %s90_s29 }
  0x1b   :  { %p6903_p5 = scmp.ne.s32.totalorder %s72_s28, %s6902_s30  ;;  %p6907_p6 = scmp.lt.s32.totalorder %s72_s28, %s72_s28 }
  0x1c   :  { %p6908_p7 = scmp.lt.s32.totalorder %s6902_s30, %s6902_s30 }
  0x1e   :  { %54 = dma.hbm_to_vmem [thread:$0]  %s7747_s26, 2048, %s49_s22, [#allocation6], %s7151_s24, %s7151_s24, %s7152_s2  }
  0x1f   :  { %p6909_p8 = por %p6908_p7, %p6907_p6 }
  0x21   :  { %p6910_p9 = pnand %p6909_p8, %p6903_p5 }
  0x23   :  { %6913 = shalt.err (!%p6910_p9)
}
  0x24   :  { %s7748_s1 = sld [smem:[#allocation34_spill]]  ;;  %s6922_s23 = scalar_lea.vmem %s91_s29, 32768 }
  0x25   :  { %p6923_p10 = scmp.ne.s32.totalorder %s91_s29, %s6922_s23  ;;  %p6927_p11 = scmp.lt.s32.totalorder %s91_s29, %s91_s29 }
  0x26   :  { %p6928_p12 = scmp.lt.s32.totalorder %s6922_s23, %s6922_s23 }
  0x28   :  { %p6929_p13 = por %p6928_p12, %p6927_p11 }
  0x2a   :  { %74 = dma.hbm_to_vmem [thread:$0]  %s7748_s1, 128, %s72_s28, [#allocation9]  }
  0x2b   :  { %p6930_p0 = pnand %p6929_p13, %p6923_p10 }
  0x2d   :  { %6933 = shalt.err (!%p6930_p0)
}
  0x2e   :  { %s7155_s22 = smov 256   ;;  %s7156_s24 = smov 16  }
  0x2f   :  { %96 = dma.hbm_to_vmem [thread:$0]  %s7726_s5, 32768, %s91_s29, [#allocation12], %s7155_s22, %s7155_s22, %s7156_s24  }
  0x30   :  { %s7157_s3 = smov [#allocation14]   ;;  %s7158_s27 = smov [#allocation17]  }
  0x31   :  { %s125_s26 = sshll.u32 %s7157_s3, 4  ;;  %s149_s28 = sshll.u32 %s7158_s27, 4  ;;  %s126_s26 = int_to_ptr.vmem [resolvable:$true] %s125_s26  ;;  %s150_s28 = int_to_ptr.vmem [resolvable:$true] %s149_s28 }
  0x32   :  { %s6942_s4 = scalar_lea.vmem %s126_s26, 64  ;;  %p6947_p2 = scmp.lt.s32.totalorder %s126_s26, %s126_s26 }
  0x33   :  { %p6943_p1 = scmp.ne.s32.totalorder %s126_s26, %s6942_s4  ;;  %p6948_p3 = scmp.lt.s32.totalorder %s6942_s4, %s6942_s4 }
  0x35   :  { %p6949_p4 = por %p6948_p3, %p6947_p2 }
  0x37   :  { %p6950_p5 = pnand %p6949_p4, %p6943_p1 }
  0x39   :  { %6953 = shalt.err (!%p6950_p5)
}
  0x3a   :  { %128 = dma.hbm_to_vmem [thread:$0]  %s7733_s12, 64, %s126_s26, [#allocation15]  }
  0x3b   :  { %s6962_s21 = scalar_lea.vmem %s150_s28, 64  ;;  %p6967_p7 = scmp.lt.s32.totalorder %s150_s28, %s150_s28 }
  0x3c   :  { %p6963_p6 = scmp.ne.s32.totalorder %s150_s28, %s6962_s21  ;;  %p6968_p8 = scmp.lt.s32.totalorder %s6962_s21, %s6962_s21 }
  0x3e   :  { %p6969_p9 = por %p6968_p8, %p6967_p7 }
  0x40   :  { %p6970_p10 = pnand %p6969_p9, %p6963_p6 }
  0x42   :  { %6973 = shalt.err (!%p6970_p10)
}
  0x43   :  { %152 = dma.hbm_to_vmem [thread:$0]  %s7736_s15, 64, %s150_s28, [#allocation18]  }
  0x44   :  { %s7159_s1 = smov [#allocation2]   ;;  %s7160_s2 = smov [#allocation7]  }
  0x45   :  { %s39_s23 = sshll.u32 %s7159_s1, 4  ;;  %s61_s25 = sshll.u32 %s7160_s2, 4  ;;  %s40_s23 = int_to_ptr.vmem [resolvable:$true] %s39_s23  ;;  %s62_s25 = int_to_ptr.vmem [resolvable:$true] %s61_s25 }
  0x46   :  { %s6982_s3 = scalar_lea.vmem %s40_s23, 128  ;;  %p6987_p12 = scmp.lt.s32.totalorder %s40_s23, %s40_s23 }
  0x47   :  { %p6983_p11 = scmp.ne.s32.totalorder %s40_s23, %s6982_s3  ;;  %p6988_p13 = scmp.lt.s32.totalorder %s6982_s3, %s6982_s3 }
  0x49   :  { %p6989_p0 = por %p6988_p13, %p6987_p12 }
  0x4b   :  { %p6990_p1 = pnand %p6989_p0, %p6983_p11 }
  0x4d   :  { %6993 = shalt.err (!%p6990_p1)
}
  0x4e   :  { %s7749_s27 = sld [smem:[#allocation31_spill]]  ;;  %s7002_s4 = scalar_lea.vmem %s62_s25, 128 }
  0x4f   :  { %p7003_p2 = scmp.ne.s32.totalorder %s62_s25, %s7002_s4  ;;  %p7007_p3 = scmp.lt.s32.totalorder %s62_s25, %s62_s25 }
  0x50   :  { %p7008_p4 = scmp.lt.s32.totalorder %s7002_s4, %s7002_s4 }
  0x52   :  { %p7009_p5 = por %p7008_p4, %p7007_p3 }
  0x54   :  { %42 = dma.hbm_to_vmem [thread:$0]  %s7749_s27, 128, %s40_s23, [#allocation3]  }
  0x55   :  { %p7010_p6 = pnand %p7009_p5, %p7003_p2 }
  0x57   :  { %7013 = shalt.err (!%p7010_p6)
}
  0x58   :  { %s7750_s30 = sld [smem:[#allocation33_spill]]  ;;  %s7161_s0 = smov [#allocation10]  }
  0x59   :  { %s81_s21 = sshll.u32 %s7161_s0, 4  ;;  %s7162_s5 = smov [#allocation13]   ;;  %s82_s21 = int_to_ptr.vmem [resolvable:$true] %s81_s21 }
  0x5a   :  { %s108_s29 = sshll.u32 %s7162_s5, 4  ;;  %s7022_s1 = scalar_lea.vmem %s82_s21, 128  ;;  %s109_s29 = int_to_ptr.vmem [resolvable:$true] %s108_s29 }
  0x5b   :  { %p7023_p7 = scmp.ne.s32.totalorder %s82_s21, %s7022_s1  ;;  %p7027_p8 = scmp.lt.s32.totalorder %s82_s21, %s82_s21 }
  0x5c   :  { %p7028_p9 = scmp.lt.s32.totalorder %s7022_s1, %s7022_s1 }
  0x5e   :  { %64 = dma.hbm_to_vmem [thread:$0]  %s7750_s30, 128, %s62_s25, [#allocation6]  }
  0x5f   :  { %p7029_p10 = por %p7028_p9, %p7027_p8 }
  0x61   :  { %p7030_p11 = pnand %p7029_p10, %p7023_p7 }
  0x63   :  { %7033 = shalt.err (!%p7030_p11)
}
  0x64   :  { %s7751_s3 = sld [smem:[#allocation35_spill]]  ;;  %s7042_s12 = scalar_lea.vmem %s109_s29, 16384 }
  0x65   :  { %p7043_p12 = scmp.ne.s32.totalorder %s109_s29, %s7042_s12  ;;  %p7047_p13 = scmp.lt.s32.totalorder %s109_s29, %s109_s29 }
  0x66   :  { %p7048_p0 = scmp.lt.s32.totalorder %s7042_s12, %s7042_s12 }
  0x68   :  { %p7049_p1 = por %p7048_p0, %p7047_p13 }
  0x6a   :  { %84 = dma.hbm_to_vmem [thread:$0]  %s7751_s3, 128, %s82_s21, [#allocation9]  }
  0x6b   :  { %p7050_p2 = pnand %p7049_p1, %p7043_p12 }
  0x6d   :  { %7053 = shalt.err (!%p7050_p2)
}
  0x6e   :  { %114 = dma.hbm_to_vmem [thread:$0]  %s7730_s9, 16384, %s109_s29, [#allocation12], %s7155_s22, %s7155_s22, %s7156_s24  }
  0x6f   :  { %s7163_s27 = smov [#allocation16]   ;;  %s7164_s15 = smov [#allocation19]  }
  0x70   :  { %s134_s4 = sshll.u32 %s7163_s27, 4  ;;  %s160_s28 = sshll.u32 %s7164_s15, 4  ;;  %s135_s4 = int_to_ptr.vmem [resolvable:$true] %s134_s4  ;;  %s161_s28 = int_to_ptr.vmem [resolvable:$true] %s160_s28 }
  0x71   :  { %s7062_s30 = scalar_lea.vmem %s135_s4, 16384  ;;  %p7067_p4 = scmp.lt.s32.totalorder %s135_s4, %s135_s4 }
  0x72   :  { %p7063_p3 = scmp.ne.s32.totalorder %s135_s4, %s7062_s30  ;;  %p7068_p5 = scmp.lt.s32.totalorder %s7062_s30, %s7062_s30 }
  0x74   :  { %p7069_p6 = por %p7068_p5, %p7067_p4 }
  0x76   :  { %p7070_p7 = pnand %p7069_p6, %p7063_p3 }
  0x78   :  { %7073 = shalt.err (!%p7070_p7)
}
  0x79   :  { %140 = dma.hbm_to_vmem [thread:$0]  %s7734_s13, 16384, %s135_s4, [#allocation15], %s7155_s22, %s7155_s22, %s7156_s24  }
  0x7a   :  { %s7082_s9 = scalar_lea.vmem %s161_s28, 2048  ;;  %p7087_p9 = scmp.lt.s32.totalorder %s161_s28, %s161_s28 }
  0x7b   :  { %p7083_p8 = scmp.ne.s32.totalorder %s161_s28, %s7082_s9  ;;  %p7088_p10 = scmp.lt.s32.totalorder %s7082_s9, %s7082_s9 }
  0x7d   :  { %p7089_p11 = por %p7088_p10, %p7087_p9 }
  0x7f   :  { %p7090_p12 = pnand %p7089_p11, %p7083_p8 }
  0x81   :  { %7093 = shalt.err (!%p7090_p12)
}
  0x82   :  { %s7165_s5 = smov 64   ;;  %s7166_s29 = smov 4  }
  0x83   :  { %166 = dma.hbm_to_vmem [thread:$0]  %s7738_s17, 2048, %s161_s28, [#allocation18], %s7165_s5, %s7165_s5, %s7166_s29  }
  0x84   :  { %s7167_s2 = smov [#allocation20]  }
  0x85   :  { %s172_s3 = sshll.u32 %s7167_s2, 4  ;;  %s173_s3 = int_to_ptr.vmem [resolvable:$true] %s172_s3 }
  0x86   :  { %s7102_s12 = scalar_lea.vmem %s173_s3, 2048  ;;  %p7107_p0 = scmp.lt.s32.totalorder %s173_s3, %s173_s3 }
  0x87   :  { %p7103_p13 = scmp.ne.s32.totalorder %s173_s3, %s7102_s12  ;;  %p7108_p1 = scmp.lt.s32.totalorder %s7102_s12, %s7102_s12 }
  0x89   :  { %p7109_p2 = por %p7108_p1, %p7107_p0 }
  0x8b   :  { %p7110_p3 = pnand %p7109_p2, %p7103_p13 }
  0x8d   :  { %7113 = shalt.err (!%p7110_p3)
}
  0x8e   :  { %178 = dma.hbm_to_vmem [thread:$0]  %s7739_s18, 2048, %s173_s3, [#allocation21], %s7165_s5, %s7165_s5, %s7166_s29  }
  0x8f   :  { %7134 = dma.done.wait [#allocation3], 128  }
  0x90   :  { %7135 = vsyncadd [#allocation3], 4294967168 }
  0x91   :  { %7136 = dma.done.wait [#allocation6], 2176  }
  0x92   :  { %7137 = vsyncadd [#allocation6], 4294965120 }
  0x93   :  { %7138 = dma.done.wait [#allocation9], 256  }
  0x94   :  { %7139 = vsyncadd [#allocation9], 4294967040 }
  0x95   :  { %7140 = dma.done.wait [#allocation12], 49152  }
  0x96   :  { %7141 = vsyncadd [#allocation12], 4294918144 }
  0x97   :  { %7142 = dma.done.wait [#allocation15], 16448  }
  0x98   :  { %7143 = vsyncadd [#allocation15], 4294950848 }
  0x99   :  { %7144 = dma.done.wait [#allocation18], 2112  }
  0x9a   :  { %7145 = vsyncadd [#allocation18], 4294965184 }
  0x9b   :  { %7146 = dma.done.wait [#allocation21], 2048  }
  0x9c   :  { %7147 = vsyncadd [#allocation21], 4294965248  ;;  %v7168_v0 = vmov 0   ;;  %v228_v1 = vld [vmem:[#allocation5 + $0x40] sm:$0xff]  ;;  %v229_v3 = vld [vmem:[#allocation5 + $0x48] sm:$0xff]  ;;  %vm358_vm0 = vcmask 261120   ;;  %v238_v35 = vlaneseq }
  0x9d   :  { %394 = vmatprep.mubr.bf16.mxu0 %v7168_v0  ;;  %435 = vmatprep.mubr.bf16.mxu1 %v7168_v0  ;;  %v232_v2 = vld [vmem:[#allocation5 + $0x60] sm:$0xff]  ;;  %v233_v5 = vld [vmem:[#allocation5 + $0x68] sm:$0xff]  ;;  %v230_v15 = vld [vmem:[#allocation5 + $0x50] sm:$0xff]  ;;  %s7169_s30 = smov [#allocation22]  }
  0x9e   :  { %v5444_v4 = vcombine.high %v228_v1, %v232_v2  ;;  %v5443_v6 = vcombine.low %v228_v1, %v232_v2  ;;  %v220_v7 = vld [vmem:[#allocation5] sm:$0xff]  ;;  %v5446_v9 = vcombine.high %v229_v3, %v233_v5  ;;  %v5445_v10 = vcombine.low %v229_v3, %v233_v5  ;;  %v221_v12 = vld [vmem:[#allocation5 + $0x8] sm:$0xff]  ;;  %v234_v16 = vld [vmem:[#allocation5 + $0x70] sm:$0xff]  ;;  %s5420_s0 = sshll.u32 %s7169_s30, 4  ;;  %s5421_s0 = int_to_ptr.vmem [resolvable:$true] %s5420_s0 }
  0x9f   :  { %v224_v8 = vld [vmem:[#allocation5 + $0x20] sm:$0xff]  ;;  %v225_v13 = vld [vmem:[#allocation5 + $0x28] sm:$0xff]  ;;  %v231_v17 = vld [vmem:[#allocation5 + $0x58] sm:$0xff]  ;;  %v5448_v23 = vcombine.high %v230_v15, %v234_v16  ;;  %v5447_v29 = vcombine.low %v230_v15, %v234_v16  ;;  %v239_v36 = vshrl.u32 %v238_v35, 7  ;;  %s7114_s21 = scalar_lea.vmem %s5421_s0, 128  ;;  %p7119_p5 = scmp.lt.s32.totalorder %s5421_s0, %s5421_s0 }
  0xa0   :  { %v5436_v11 = vcombine.high %v220_v7, %v224_v8  ;;  %374 = vmatprep.subr.bf16.mxu0 %v5444_v4  ;;  %v5438_v14 = vcombine.high %v221_v12, %v225_v13  ;;  %415 = vmatprep.subr.bf16.mxu1 %v5446_v9  ;;  %v5435_v18 = vcombine.low %v220_v7, %v224_v8  ;;  %v218_v19 = vld [vmem:[#allocation2] sm:$0xff]  ;;  %v222_v21 = vld [vmem:[#allocation5 + $0x10] sm:$0xff]  ;;  %v236_v40 = vld [vmem:[#allocation7] sm:$0xff]  ;;  %p7115_p4 = scmp.ne.s32.totalorder %s5421_s0, %s7114_s21  ;;  %p7120_p6 = scmp.lt.s32.totalorder %s7114_s21, %s7114_s21 }
  0xa1   :  { %375 = vmatpush1.bf16.msra.mxu0 %v5443_v6  ;;  %v235_v20 = vld [vmem:[#allocation5 + $0x78] sm:$0xff]  ;;  %416 = vmatpush1.bf16.msra.mxu1 %v5445_v10  ;;  %v5437_v22 = vcombine.low %v221_v12, %v225_v13  ;;  %v226_v24 = vld [vmem:[#allocation5 + $0x30] sm:$0xff]  ;;  %v219_v28 = vpack.c.bf16 %v218_v19, %v218_v19  ;;  %v7328_v37 = vsub.s32 0, %v239_v36  ;;  %v7330_v38 = vsub.s32 2, %v239_v36 }
  0xa2   :  { %376 = vmatprep.subr.bf16.mxu0 %v5436_v11  ;;  %v223_v25 = vld [vmem:[#allocation5 + $0x18] sm:$0xff]  ;;  %417 = vmatprep.subr.bf16.mxu1 %v5438_v14  ;;  %v5450_v27 = vcombine.high %v231_v17, %v235_v20  ;;  %v5449_v30 = vcombine.low %v231_v17, %v235_v20  ;;  %v5440_v31 = vcombine.high %v222_v21, %v226_v24  ;;  %v7332_v39 = vsub.s32 1, %v239_v36  ;;  %p7121_p7 = por %p7120_p6, %p7119_p5 }
  0xa3   :  { %v227_v26 = vld [vmem:[#allocation5 + $0x38] sm:$0xff]  ;;  %v5439_v33 = vcombine.low %v222_v21, %v226_v24  ;;  %v7334_v41 = vsub.s32 3, %v239_v36  ;;  %v241_v42 = vrot.slane %v236_v40, %v7328_v37  ;;  %v249_v43 = vrot.slane %v236_v40, %v7330_v38 }
  0xa4   :  { %v5442_v32 = vcombine.high %v223_v25, %v227_v26  ;;  %v5441_v34 = vcombine.low %v223_v25, %v227_v26  ;;  %v245_v44 = vrot.slane %v236_v40, %v7332_v39  ;;  %v7339_v47 = vsub.s32 4, %v239_v36  ;;  %v6067_v24 = vld [vmem:[#allocation11 + $0x2e0] ss:$16 sps:$4 sm:$0xff]   ;;  %v6069_v25 = vld [vmem:[#allocation11 + $0x2e4] ss:$16 sps:$4 sm:$0xff]   ;;  %p7122_p8 = pnand %p7121_p7, %p7115_p4 }
  0xa5   :  { %377 = vmatpush1.bf16.msra.mxu0 %v5435_v18  ;;  %418 = vmatpush1.bf16.msra.mxu1 %v5437_v22  ;;  %v253_v49 = vrot.slane %v236_v40, %v7334_v41  ;;  %v7342_v50 = vsub.s32 5, %v239_v36  ;;  %v7350_v55 = vsub.s32 6, %v239_v36  ;;  %v7360_v3 = vsub.s32 7, %v239_v36  ;;  %v6064_v22 = vld [vmem:[#allocation11 + $0xe0] ss:$16 sps:$4 sm:$0xff]  }
  0xa6   :  { %456 = vmatprep.subr.bf16.mxu0 %v5448_v23  ;;  %497 = vmatprep.subr.bf16.mxu1 %v5450_v27  ;;  %v257_v59 = vrot.slane %v236_v40, %v7339_v47  ;;  %v6066_v23 = vld [vmem:[#allocation11 + $0xe4] ss:$16 sps:$4 sm:$0xff]   ;;  %v6082_v36 = vld [vmem:[#allocation11 + $0x80] ss:$16 sps:$4 sm:$0xff]  }
  0xa7   :  { %v261_v61 = vrot.slane %v236_v40, %v7342_v50  ;;  %v265_v2 = vrot.slane %v236_v40, %v7350_v55  ;;  %v269_v12 = vrot.slane %v236_v40, %v7360_v3  ;;  %v6072_v26 = vld [vmem:[#allocation11 + $0xc4] ss:$16 sps:$4 sm:$0xff]   ;;  %v6085_v40 = vld [vmem:[#allocation11 + $0x280] ss:$16 sps:$4 sm:$0xff]  }
  0xa8   :  { %5451 = vmatmul.mubr.msk.bf16.vlgmr.msra.gmra.mxu0 %vm358_vm0, %v219_v28  ;;  %5452 = vmatmul.mubr.msk.bf16.vlgmr.msra.gmra.mxu1 %vm358_vm0, %v219_v28  ;;  %v6075_v27 = vld [vmem:[#allocation11 + $0x2c4] ss:$16 sps:$4 sm:$0xff]  }
  0xa9   :  { %457 = vmatpush1.bf16.msra.mxu0 %v5447_v29  ;;  %498 = vmatpush1.bf16.msra.mxu1 %v5449_v30  ;;  %v6073_v29 = vld [vmem:[#allocation11 + $0x2c0] ss:$16 sps:$4 sm:$0xff]   ;;  %v6078_v30 = vld [vmem:[#allocation11 + $0xa4] ss:$16 sps:$4 sm:$0xff]  }
  0xaa   :  { %458 = vmatprep.subr.bf16.mxu0 %v5440_v31  ;;  %499 = vmatprep.subr.bf16.mxu1 %v5442_v32  ;;  %v6081_v31 = vld [vmem:[#allocation11 + $0x2a4] ss:$16 sps:$4 sm:$0xff]   ;;  %v6076_v32 = vld [vmem:[#allocation11 + $0xa0] ss:$16 sps:$4 sm:$0xff]  }
  0xab   :  { %476 = vmatprep.mubr.bf16.mxu0 %v7168_v0  ;;  %517 = vmatprep.mubr.bf16.mxu1 %v7168_v0  ;;  %v6087_v35 = vld [vmem:[#allocation11 + $0x284] ss:$16 sps:$4 sm:$0xff]  }
  0xad   :  { %459 = vmatpush1.bf16.msra.mxu0 %v5439_v33  ;;  %500 = vmatpush1.bf16.msra.mxu1 %v5441_v34  ;;  %v6079_v33 = vld [vmem:[#allocation11 + $0x2a0] ss:$16 sps:$4 sm:$0xff]   ;;  %v6084_v34 = vld [vmem:[#allocation11 + $0x84] ss:$16 sps:$4 sm:$0xff]  }
  0xae   :  { %2375 = vmatprep.subr.bf16.mxu0 %v6066_v23  ;;  %2416 = vmatprep.subr.bf16.mxu1 %v6069_v25 }
  0xb0   :  { %5453 = vmatmul.mubr.msk.bf16.vlgmr.msra.gmra.mxu0 %vm358_vm0, %v219_v28  ;;  %5454 = vmatmul.mubr.msk.bf16.vlgmr.msra.gmra.mxu1 %vm358_vm0, %v219_v28  ;;  %v6070_v28 = vld [vmem:[#allocation11 + $0xc0] ss:$16 sps:$4 sm:$0xff]  }
  0xb1   :  { %2376 = vmatpush1.bf16.msra.mxu0 %v6064_v22  ;;  %2417 = vmatpush1.bf16.msra.mxu1 %v6067_v24 }
  0xb2   :  { %2377 = vmatprep.subr.bf16.mxu0 %v6072_v26  ;;  %2418 = vmatprep.subr.bf16.mxu1 %v6075_v27 }
  0xb5   :  { %2378 = vmatpush1.bf16.msra.mxu0 %v6070_v28  ;;  %2419 = vmatpush1.bf16.msra.mxu1 %v6073_v29  ;;  %v6120_v29 = vld [vmem:[#allocation11 + $0x1c4] ss:$16 sps:$4 sm:$0xff]  }
  0xb6   :  { %2379 = vmatprep.subr.bf16.mxu0 %v6078_v30  ;;  %2420 = vmatprep.subr.bf16.mxu1 %v6081_v31  ;;  %v6123_v30 = vld [vmem:[#allocation11 + $0x3c4] ss:$16 sps:$4 sm:$0xff]   ;;  %v6118_v31 = vld [vmem:[#allocation11 + $0x1c0] ss:$16 sps:$4 sm:$0xff]  }
  0xb9   :  { %2380 = vmatpush1.bf16.msra.mxu0 %v6076_v32  ;;  %2421 = vmatpush1.bf16.msra.mxu1 %v6079_v33  ;;  %v6121_v32 = vld [vmem:[#allocation11 + $0x3c0] ss:$16 sps:$4 sm:$0xff]   ;;  %v6129_v33 = vld [vmem:[#allocation11 + $0x3a4] ss:$16 sps:$4 sm:$0xff]  }
  0xba   :  { %2381 = vmatprep.subr.bf16.mxu0 %v6084_v34  ;;  %2422 = vmatprep.subr.bf16.mxu1 %v6087_v35  ;;  %v6124_v34 = vld [vmem:[#allocation11 + $0x1a0] ss:$16 sps:$4 sm:$0xff]  }
  0xbb   :  { %v6127_v35 = vld [vmem:[#allocation11 + $0x3a0] ss:$16 sps:$4 sm:$0xff]  }
  0xbd   :  { %2382 = vmatpush1.bf16.msra.mxu0 %v6082_v36  ;;  %2423 = vmatpush1.bf16.msra.mxu1 %v6085_v40  ;;  %v6132_v36 = vld [vmem:[#allocation11 + $0x184] ss:$16 sps:$4 sm:$0xff]  }
  0xbe   :  { %v6135_v40 = vld [vmem:[#allocation11 + $0x384] ss:$16 sps:$4 sm:$0xff]  }
 0x168   :  { %v396_v45 = vpop.f32.mrf.mxu0  ;;  %v437_v46 = vpop.f32.mrf.mxu1 }
 0x169   :  { %v7344_v51 = vadd.f32 %v396_v45, %v241_v42  ;;  %v7346_v52 = vadd.f32 %v437_v46, %v249_v43  ;;  %v6090_v42 = vld [vmem:[#allocation11 + $0x64] ss:$16 sps:$4 sm:$0xff]   ;;  %v6091_v45 = vld [vmem:[#allocation11 + $0x260] ss:$16 sps:$4 sm:$0xff]  }
 0x16a   :  { %v398_v48 = vpop.f32.mrf.mxu0  ;;  %v439_v54 = vpop.f32.mrf.mxu1  ;;  %v6093_v43 = vld [vmem:[#allocation11 + $0x264] ss:$16 sps:$4 sm:$0xff]   ;;  %2383 = vmatprep.subr.bf16.mxu0 %v6090_v42  ;;  %v6130_v42 = vld [vmem:[#allocation11 + $0x180] ss:$16 sps:$4 sm:$0xff]  }
 0x16b   :  { %v7348_v53 = vadd.f32 %v398_v48, %v245_v44  ;;  %v7356_v62 = vadd.f32 %v439_v54, %v253_v49  ;;  %v6088_v44 = vld [vmem:[#allocation11 + $0x60] ss:$16 sps:$4 sm:$0xff]   ;;  %v6096_v46 = vld [vmem:[#allocation11 + $0x44] ss:$16 sps:$4 sm:$0xff]   ;;  %2424 = vmatprep.subr.bf16.mxu1 %v6093_v43 }
 0x16c   :  { %v400_v56 = vpop.f32.mrf.mxu0  ;;  %v441_v58 = vpop.f32.mrf.mxu1  ;;  %v6099_v48 = vld [vmem:[#allocation11 + $0x244] ss:$16 sps:$4 sm:$0xff]   ;;  %2384 = vmatpush1.bf16.msra.mxu0 %v6088_v44  ;;  %v6094_v49 = vld [vmem:[#allocation11 + $0x40] ss:$16 sps:$4 sm:$0xff]   ;;  %2425 = vmatpush1.bf16.msra.mxu1 %v6091_v45 }
 0x16d   :  { %v528_v57 = vadd.f32 %v7348_v53, %v7344_v51  ;;  %2385 = vmatprep.subr.bf16.mxu0 %v6096_v46  ;;  %v6097_v54 = vld [vmem:[#allocation11 + $0x240] ss:$16 sps:$4 sm:$0xff]   ;;  %v6102_v56 = vld [vmem:[#allocation11 + $0x24] ss:$16 sps:$4 sm:$0xff]   ;;  %2426 = vmatprep.subr.bf16.mxu1 %v6099_v48 }
 0x16e   :  { %v401_v60 = vpop.f32.mrf.mxu0  ;;  %v442_v1 = vpop.f32.mrf.mxu1  ;;  %v6100_v58 = vld [vmem:[#allocation11 + $0x20] ss:$16 sps:$4 sm:$0xff]   ;;  %v6138_v44 = vld [vmem:[#allocation11 + $0x164] ss:$16 sps:$4 sm:$0xff]  }
 0x16f   :  { %v529_v63 = vadd.f32 %v528_v57, %v7346_v52  ;;  %v6105_v57 = vld [vmem:[#allocation11 + $0x224] ss:$16 sps:$4 sm:$0xff]   ;;  %v6109_v1 = vld [vmem:[#allocation11 + $0x200] ss:$16 sps:$4 sm:$0xff]  }
 0x170   :  { %v478_v4 = vpop.f32.mrf.mxu0  ;;  %v519_v7 = vpop.f32.mrf.mxu1  ;;  %2386 = vmatpush1.bf16.msra.mxu0 %v6094_v49  ;;  %2427 = vmatpush1.bf16.msra.mxu1 %v6097_v54  ;;  %v6108_v60 = vld [vmem:[#allocation11 + $0x4] ss:$16 sps:$4 sm:$0xff]   ;;  %v6133_v43 = vld [vmem:[#allocation11 + $0x380] ss:$16 sps:$4 sm:$0xff]  }
 0x171   :  { %v530_v5 = vadd.f32 %v529_v63, %v7356_v62  ;;  %v7363_v6 = vadd.f32 %v478_v4, %v257_v59  ;;  %v7366_v10 = vadd.f32 %v519_v7, %v265_v2  ;;  %2387 = vmatprep.subr.bf16.mxu0 %v6102_v56  ;;  %v6103_v59 = vld [vmem:[#allocation11 + $0x220] ss:$16 sps:$4 sm:$0xff]   ;;  %2428 = vmatprep.subr.bf16.mxu1 %v6105_v57  ;;  %v6114_v2 = vld [vmem:[#allocation11 + $0x1e4] ss:$16 sps:$4 sm:$0xff]  }
 0x172   :  { %v480_v8 = vpop.f32.mrf.mxu0  ;;  %v521_v13 = vpop.f32.mrf.mxu1  ;;  %v6106_v63 = vld [vmem:[#allocation11] ss:$16 sps:$4 sm:$0xff]   ;;  %v6117_v4 = vld [vmem:[#allocation11 + $0x3e4] ss:$16 sps:$4 sm:$0xff]  }
 0x173   :  { %v531_v9 = vadd.f32 %v530_v5, %v7363_v6  ;;  %v7368_v11 = vadd.f32 %v480_v8, %v261_v61  ;;  %v7372_v18 = vadd.f32 %v521_v13, %v269_v12  ;;  %v6111_v61 = vld [vmem:[#allocation11 + $0x204] ss:$16 sps:$4 sm:$0xff]   ;;  %v6112_v5 = vld [vmem:[#allocation11 + $0x1e0] ss:$16 sps:$4 sm:$0xff]  }
 0x174   :  { %v482_v14 = vpop.f32.mrf.mxu0  ;;  %v523_v16 = vpop.f32.mrf.mxu1  ;;  %2388 = vmatpush1.bf16.msra.mxu0 %v6100_v58  ;;  %2429 = vmatpush1.bf16.msra.mxu1 %v6103_v59  ;;  %v6115_v7 = vld [vmem:[#allocation11 + $0x3e0] ss:$16 sps:$4 sm:$0xff]   ;;  %v6141_v45 = vld [vmem:[#allocation11 + $0x364] ss:$16 sps:$4 sm:$0xff]  }
 0x175   :  { %v532_v15 = vadd.f32 %v531_v9, %v7368_v11  ;;  %2389 = vmatprep.subr.bf16.mxu0 %v6108_v60  ;;  %2430 = vmatprep.subr.bf16.mxu1 %v6111_v61  ;;  %v6136_v46 = vld [vmem:[#allocation11 + $0x160] ss:$16 sps:$4 sm:$0xff]   ;;  %v6144_v49 = vld [vmem:[#allocation11 + $0x144] ss:$16 sps:$4 sm:$0xff]  }
 0x176   :  { %v483_v17 = vpop.f32.mrf.mxu0  ;;  %v524_v19 = vpop.f32.mrf.mxu1  ;;  %v6139_v48 = vld [vmem:[#allocation11 + $0x360] ss:$16 sps:$4 sm:$0xff]   ;;  %v6147_v54 = vld [vmem:[#allocation11 + $0x344] ss:$16 sps:$4 sm:$0xff]  }
 0x177   :  { %v533_v20 = vadd.f32 %v532_v15, %v7366_v10  ;;  %v6142_v56 = vld [vmem:[#allocation11 + $0x140] ss:$16 sps:$4 sm:$0xff]   ;;  %v6150_v58 = vld [vmem:[#allocation11 + $0x124] ss:$16 sps:$4 sm:$0xff]  }
 0x178   :  { %2390 = vmatpush1.bf16.msra.mxu0 %v6106_v63  ;;  %2431 = vmatpush1.bf16.msra.mxu1 %v6109_v1  ;;  %v6145_v57 = vld [vmem:[#allocation11 + $0x340] ss:$16 sps:$4 sm:$0xff]   ;;  %v6153_v59 = vld [vmem:[#allocation11 + $0x324] ss:$16 sps:$4 sm:$0xff]  }
 0x179   :  { %v534_v21 = vadd.f32 %v533_v20, %v7372_v18  ;;  %2391 = vmatprep.subr.bf16.mxu0 %v6114_v2  ;;  %2432 = vmatprep.subr.bf16.mxu1 %v6117_v4  ;;  %v6148_v60 = vld [vmem:[#allocation11 + $0x120] ss:$16 sps:$4 sm:$0xff]   ;;  %v6156_v63 = vld [vmem:[#allocation11 + $0x104] ss:$16 sps:$4 sm:$0xff]  }
 0x17a   :  { %v6151_v61 = vld [vmem:[#allocation11 + $0x320] ss:$16 sps:$4 sm:$0xff]   ;;  %v6159_v1 = vld [vmem:[#allocation11 + $0x304] ss:$16 sps:$4 sm:$0xff]  }
 0x17b   :  { %535 = vadd.xlane.f32.xlu0 %v534_v21  ;;  %v6154_v2 = vld [vmem:[#allocation11 + $0x100] ss:$16 sps:$4 sm:$0xff]  }
 0x17c   :  { %2392 = vmatpush2.bf16.msra.mxu0 %v6112_v5  ;;  %2433 = vmatpush2.bf16.msra.mxu1 %v6115_v7  ;;  %v6157_v4 = vld [vmem:[#allocation11 + $0x300] ss:$16 sps:$4 sm:$0xff]   ;;  %v6162_v5 = vld [vmem:[#allocation11 + $0x4e4] ss:$16 sps:$4 sm:$0xff]  }
 0x17d   :  { %2393 = vmatprep.subr.bf16.mxu0 %v6120_v29  ;;  %2434 = vmatprep.subr.bf16.mxu1 %v6123_v30  ;;  %v6165_v7 = vld [vmem:[#allocation11 + $0x6e4] ss:$16 sps:$4 sm:$0xff]  }
 0x180   :  { %2394 = vmatpush2.bf16.msra.mxu0 %v6118_v31  ;;  %2435 = vmatpush2.bf16.msra.mxu1 %v6121_v32 }
 0x181   :  { %2436 = vmatprep.subr.bf16.mxu1 %v6129_v33 }
 0x184   :  { %2437 = vmatpush2.bf16.msra.mxu1 %v6127_v35 }
 0x185   :  { %2438 = vmatprep.subr.bf16.mxu1 %v6135_v40 }
 0x188   :  { %2439 = vmatpush2.bf16.msra.mxu1 %v6133_v43 }
 0x189   :  { %2440 = vmatprep.subr.bf16.mxu1 %v6141_v45 }
 0x18c   :  { %2441 = vmatpush2.bf16.msra.mxu1 %v6139_v48 }
 0x18d   :  { %2442 = vmatprep.subr.bf16.mxu1 %v6147_v54 }
 0x190   :  { %2443 = vmatpush2.bf16.msra.mxu1 %v6145_v57 }
 0x191   :  { %2444 = vmatprep.subr.bf16.mxu1 %v6153_v59 }
 0x194   :  { %2445 = vmatpush2.bf16.msra.mxu1 %v6151_v61 }
 0x195   :  { %2446 = vmatprep.subr.bf16.mxu1 %v6159_v1 }
 0x198   :  { %2447 = vmatpush2.bf16.msra.mxu1 %v6157_v4 }
 0x199   :  { %2498 = vmatprep.subr.bf16.mxu1 %v6165_v7 }
 0x204   :  { %v536_v8 = vpop.xlane.xlu0 %535 }
 0x205   :  { %v538_v9 = vmul.f32 0.0009765625, %v536_v8  ;;  %v526_v8 = vld [vmem:[#allocation8] sm:$0xff] }
 0x206   :  { %v611_v29 = vrot.slane %v526_v8, %v7350_v55 }
 0x207   :  { %v7377_v12 = vsub.f32 %v7344_v51, %v538_v9  ;;  %v7380_v13 = vsub.f32 %v7348_v53, %v538_v9  ;;  %v7383_v14 = vsub.f32 %v7346_v52, %v538_v9  ;;  %v7386_v15 = vsub.f32 %v7356_v62, %v538_v9 }
 0x208   :  { %v7393_v19 = vsub.f32 %v7363_v6, %v538_v9  ;;  %v7398_v20 = vsub.f32 %v7368_v11, %v538_v9  ;;  %v7403_v21 = vsub.f32 %v7366_v10, %v538_v9  ;;  %v7408_v6 = vsub.f32 %v7372_v18, %v538_v9  ;;  %v6126_v18 = vld [vmem:[#allocation11 + $0x1a4] ss:$16 sps:$4 sm:$0xff]   ;;  %v527_v9 = vld [vmem:[#allocation10] sm:$0xff] }
 0x209   :  { %v547_v16 = vmul.f32 %v7377_v12, %v7377_v12  ;;  %v548_v17 = vmul.f32 %v7380_v13, %v7380_v13  ;;  %v549_v51 = vmul.f32 %v7383_v14, %v7383_v14  ;;  %v550_v52 = vmul.f32 %v7386_v15, %v7386_v15  ;;  %2395 = vmatprep.subr.bf16.mxu0 %v6126_v18 }
 0x20a   :  { %v551_v22 = vmul.f32 %v7393_v19, %v7393_v19  ;;  %v552_v24 = vmul.f32 %v7398_v20, %v7398_v20  ;;  %v553_v11 = vmul.f32 %v7403_v21, %v7403_v21  ;;  %v554_v27 = vmul.f32 %v7408_v6, %v7408_v6  ;;  %2396 = vmatpush2.bf16.msra.mxu0 %v6124_v34 }
 0x20b   :  { %v555_v53 = vadd.f32 %v548_v17, %v547_v16  ;;  %2397 = vmatprep.subr.bf16.mxu0 %v6132_v36  ;;  %v724_v30 = vrot.slane %v527_v9, %v7350_v55  ;;  %v720_v31 = vrot.slane %v527_v9, %v7342_v50  ;;  %v630_v48 = vpack.c.bf16 %v611_v29, %v611_v29 }
 0x20d   :  { %v556_v62 = vadd.f32 %v555_v53, %v549_v51  ;;  %v603_v51 = vrot.slane %v526_v8, %v7339_v47  ;;  %v591_v53 = vrot.slane %v526_v8, %v7332_v39  ;;  %v742_v54 = vpack.c.bf16 %v720_v31, %v720_v31 }
 0x20e   :  { %2398 = vmatpush2.bf16.msra.mxu0 %v6130_v42 }
 0x20f   :  { %v557_v23 = vadd.f32 %v556_v62, %v550_v52  ;;  %2399 = vmatprep.subr.bf16.mxu0 %v6138_v44  ;;  %v704_v62 = vrot.slane %v527_v9, %v7332_v39  ;;  %v625_v32 = vpack.c.bf16 %v591_v53, %v591_v53  ;;  %v628_v35 = vpack.c.bf16 %v603_v51, %v603_v51 }
 0x211   :  { %v558_v25 = vadd.f32 %v557_v23, %v551_v22  ;;  %v599_v22 = vrot.slane %v526_v8, %v7334_v41  ;;  %v587_v23 = vrot.slane %v526_v8, %v7328_v37  ;;  %v738_v18 = vpack.c.bf16 %v704_v62, %v704_v62 }
 0x212   :  { %2400 = vmatpush2.bf16.msra.mxu0 %v6136_v46 }
 0x213   :  { %v559_v26 = vadd.f32 %v558_v25, %v552_v24  ;;  %2401 = vmatprep.subr.bf16.mxu0 %v6144_v49  ;;  %v716_v24 = vrot.slane %v527_v9, %v7339_v47  ;;  %v712_v25 = vrot.slane %v527_v9, %v7334_v41  ;;  %v728_v47 = vrot.slane %v527_v9, %v7360_v3 }
 0x214   :  { %v627_v33 = vpack.c.bf16 %v599_v22, %v599_v22  ;;  %v624_v34 = vpack.c.bf16 %v587_v23, %v587_v23  ;;  %v743_v49 = vpack.c.bf16 %v724_v30, %v724_v30 }
 0x215   :  { %v560_v10 = vadd.f32 %v559_v26, %v553_v11  ;;  %v700_v11 = vrot.slane %v527_v9, %v7328_v37  ;;  %v595_v26 = vrot.slane %v526_v8, %v7330_v38  ;;  %v740_v36 = vpack.c.bf16 %v712_v25, %v712_v25 }
 0x216   :  { %2402 = vmatpush2.bf16.msra.mxu0 %v6142_v56  ;;  %v741_v43 = vpack.c.bf16 %v716_v24, %v716_v24  ;;  %v744_v55 = vpack.c.bf16 %v728_v47, %v728_v47  ;;  %v640_v56 = vpack.i.b16 %v625_v32, %v625_v32  ;;  %v654_v57 = vpack.i.b16 %v627_v33, %v627_v33 }
 0x217   :  { %v561_v28 = vadd.f32 %v560_v10, %v554_v27  ;;  %2403 = vmatprep.subr.bf16.mxu0 %v6150_v58  ;;  %v607_v27 = vrot.slane %v526_v8, %v7342_v50  ;;  %v615_v10 = vrot.slane %v526_v8, %v7360_v3  ;;  %v737_v40 = vpack.c.bf16 %v700_v11, %v700_v11 }
 0x218   :  { %v626_v42 = vpack.c.bf16 %v595_v26, %v595_v26  ;;  %v753_v50 = vpack.i.b16 %v738_v18, %v738_v18  ;;  %v633_v3 = vpack.i.b16 %v624_v34, %v624_v34  ;;  %v661_v58 = vpack.i.b16 %v628_v35, %v628_v35 }
 0x219   :  { %562 = vadd.xlane.f32.xlu0 %v561_v28  ;;  %v708_v28 = vrot.slane %v527_v9, %v7330_v38  ;;  %v629_v44 = vpack.c.bf16 %v607_v27, %v607_v27  ;;  %v631_v45 = vpack.c.bf16 %v615_v10, %v615_v10  ;;  %v767_v59 = vpack.i.b16 %v740_v36, %v740_v36 }
 0x21a   :  { %2404 = vmatpush2.bf16.msra.mxu0 %v6148_v60  ;;  %v746_v60 = vpack.i.b16 %v737_v40, %v737_v40  ;;  %v647_v61 = vpack.i.b16 %v626_v42, %v626_v42  ;;  %v788_v7 = vpack.i.b16 %v743_v49, %v743_v49  ;;  %v781_v8 = vpack.i.b16 %v742_v54, %v742_v54 }
 0x21b   :  { %2405 = vmatprep.subr.bf16.mxu0 %v6156_v63  ;;  %v739_v46 = vpack.c.bf16 %v708_v28, %v708_v28  ;;  %v774_v63 = vpack.i.b16 %v741_v43, %v741_v43  ;;  %v682_v4 = vpack.i.b16 %v631_v45, %v631_v45  ;;  %v795_v9 = vpack.i.b16 %v744_v55, %v744_v55 }
 0x21c   :  { %v659_v51 = vrot.slane %v654_v57, %v7328_v37  ;;  %v638_v53 = vrot.slane %v633_v3, %v7328_v37  ;;  %v751_v62 = vrot.slane %v746_v60, %v7328_v37  ;;  %v652_v22 = vrot.slane %v647_v61, %v7328_v37 }
 0x21d   :  { %v760_v1 = vpack.i.b16 %v739_v46, %v739_v46  ;;  %v666_v23 = vrot.slane %v661_v58, %v7328_v37  ;;  %v687_v11 = vrot.slane %v682_v4, %v7328_v37  ;;  %v7444_v26 = vrot.slane %v774_v63, %v7328_v37  ;;  %v6160_v63 = vld [vmem:[#allocation11 + $0x4e0] ss:$16 sps:$4 sm:$0xff]  }
 0x21e   :  { %2406 = vmatpush2.bf16.msra.mxu0 %v6154_v2  ;;  %v668_v2 = vpack.i.b16 %v629_v44, %v629_v44  ;;  %v786_v10 = vrot.slane %v781_v8, %v7328_v37  ;;  %v800_v28 = vrot.slane %v795_v9, %v7328_v37  ;;  %v7450_v30 = vrot.slane %v788_v7, %v7328_v37  ;;  %v6171_v7 = vld [vmem:[#allocation11 + $0x6c4] ss:$16 sps:$4 sm:$0xff]  }
 0x21f   :  { %2457 = vmatprep.subr.bf16.mxu0 %v6162_v5  ;;  %v675_v5 = vpack.i.b16 %v630_v48, %v630_v48  ;;  %v765_v24 = vrot.slane %v760_v1, %v7328_v37  ;;  %v6163_v1 = vld [vmem:[#allocation11 + $0x6e0] ss:$16 sps:$4 sm:$0xff]  }
 0x220   :  { %v673_v25 = vrot.slane %v668_v2, %v7328_v37 }
 0x221   :  { %v680_v29 = vrot.slane %v675_v5, %v7328_v37  ;;  %v6168_v5 = vld [vmem:[#allocation11 + $0x4c4] ss:$16 sps:$4 sm:$0xff]  }
 0x2a2   :  { %v563_v16 = vpop.xlane.xlu0 %562 }
 0x2a3   :  { %v564_v17 = vmul.f32 0.0009765625, %v563_v16  ;;  %v645_v16 = vrot.slane %v640_v56, %v7328_v37 }
 0x2a5   :  { %v565_v52 = vadd.f32 1e-05, %v564_v17  ;;  %v758_v17 = vrot.slane %v753_v50, %v7328_v37 }
 0x2a7   :  { %6864 = vrsqrt.f32 %v565_v52  ;;  %v772_v52 = vrot.slane %v767_v59, %v7328_v37 }
 0x2b4   :  { %v6865_v27 = vpop.eup %6864 }
 0x2b5   :  { %v568_v31 = vmul.f32 %v6865_v27, %v7380_v13  ;;  %v570_v47 = vmul.f32 %v6865_v27, %v7386_v15  ;;  %v567_v32 = vmul.f32 %v6865_v27, %v7377_v12  ;;  %v569_v18 = vmul.f32 %v6865_v27, %v7383_v14 }
 0x2b6   :  { %v572_v33 = vmul.f32 %v6865_v27, %v7398_v20  ;;  %v574_v34 = vmul.f32 %v6865_v27, %v7408_v6  ;;  %v571_v35 = vmul.f32 %v6865_v27, %v7393_v19  ;;  %v573_v36 = vmul.f32 %v6865_v27, %v7403_v21  ;;  %v6189_v27 = vld [vmem:[#allocation11 + $0x664] ss:$16 sps:$4 sm:$0xff]  }
 0x2b7   :  { %v576_v40 = vpack.c.bf16 %v568_v31, %v568_v31  ;;  %v578_v42 = vpack.c.bf16 %v570_v47, %v570_v47  ;;  %v575_v43 = vpack.c.bf16 %v567_v32, %v567_v32  ;;  %v577_v44 = vpack.c.bf16 %v569_v18, %v569_v18  ;;  %v6195_v31 = vld [vmem:[#allocation11 + $0x644] ss:$16 sps:$4 sm:$0xff]   ;;  %v6190_v47 = vld [vmem:[#allocation11 + $0x440] ss:$16 sps:$4 sm:$0xff]  }
 0x2b8   :  { %v580_v45 = vpack.c.bf16 %v572_v33, %v572_v33  ;;  %v582_v13 = vpack.c.bf16 %v574_v34, %v574_v34  ;;  %v579_v46 = vpack.c.bf16 %v571_v35, %v571_v35  ;;  %v581_v15 = vpack.c.bf16 %v573_v36, %v573_v36  ;;  %v6193_v32 = vld [vmem:[#allocation11 + $0x640] ss:$16 sps:$4 sm:$0xff]   ;;  %v6198_v18 = vld [vmem:[#allocation11 + $0x424] ss:$16 sps:$4 sm:$0xff]  }
 0x2b9   :  { %v689_v48 = vmul.bf16 %v645_v16, %v576_v40  ;;  %v691_v12 = vmul.bf16 %v659_v51, %v578_v42  ;;  %v688_v49 = vmul.bf16 %v638_v53, %v575_v43  ;;  %v690_v14 = vmul.bf16 %v652_v22, %v577_v44  ;;  %v6166_v16 = vld [vmem:[#allocation11 + $0x4c0] ss:$16 sps:$4 sm:$0xff]   ;;  %v6174_v51 = vld [vmem:[#allocation11 + $0x4a4] ss:$16 sps:$4 sm:$0xff]  }
 0x2ba   :  { %v693_v54 = vmul.bf16 %v673_v25, %v580_v45  ;;  %v695_v20 = vmul.bf16 %v687_v11, %v582_v13  ;;  %v7460_v55 = vmul.bf16 %v666_v23, %v579_v46  ;;  %v7462_v6 = vmul.bf16 %v680_v29, %v581_v15  ;;  %v6177_v53 = vld [vmem:[#allocation11 + $0x6a4] ss:$16 sps:$4 sm:$0xff]   ;;  %v6181_v25 = vld [vmem:[#allocation11 + $0x680] ss:$16 sps:$4 sm:$0xff]  }
 0x2bb   :  { %v802_v19 = vadd.bf16 %v758_v17, %v689_v48  ;;  %v804_v21 = vadd.bf16 %v772_v52, %v691_v12  ;;  %v801_v56 = vadd.bf16 %v751_v62, %v688_v49  ;;  %v803_v50 = vadd.bf16 %v765_v24, %v690_v14  ;;  %v6169_v17 = vld [vmem:[#allocation11 + $0x6c0] ss:$16 sps:$4 sm:$0xff]   ;;  %v6180_v22 = vld [vmem:[#allocation11 + $0x484] ss:$16 sps:$4 sm:$0xff]  }
 0x2bc   :  { %v806_v57 = vadd.bf16 %v786_v10, %v693_v54  ;;  %v808_v3 = vadd.bf16 %v800_v28, %v695_v20  ;;  %v805_v58 = vadd.bf16 %v7444_v26, %v7460_v55  ;;  %v807_v59 = vadd.bf16 %v7450_v30, %v7462_v6  ;;  %v6172_v52 = vld [vmem:[#allocation11 + $0x4a0] ss:$16 sps:$4 sm:$0xff]   ;;  %v6183_v23 = vld [vmem:[#allocation11 + $0x684] ss:$16 sps:$4 sm:$0xff]   ;;  %v6262_v26 = vld [vmem:[#allocation11 + $0xc8] ss:$16 sps:$4 sm:$0xff]  }
 0x2bd   :  { %v7469_v60 = vmax.bf16 %v7168_v0, %v802_v19  ;;  %v7472_v61 = vmax.bf16 %v7168_v0, %v804_v21  ;;  %v7475_v2 = vmax.bf16 %v7168_v0, %v801_v56  ;;  %v7478_v4 = vmax.bf16 %v7168_v0, %v803_v50  ;;  %v6175_v62 = vld [vmem:[#allocation11 + $0x6a0] ss:$16 sps:$4 sm:$0xff]   ;;  %v6186_v11 = vld [vmem:[#allocation11 + $0x464] ss:$16 sps:$4 sm:$0xff]   ;;  %v6265_v30 = vld [vmem:[#allocation11 + $0x2c8] ss:$16 sps:$4 sm:$0xff]  }
 0x2be   :  { %v7485_v8 = vmax.bf16 %v7168_v0, %v806_v57  ;;  %v7488_v9 = vmax.bf16 %v7168_v0, %v808_v3  ;;  %v6178_v24 = vld [vmem:[#allocation11 + $0x480] ss:$16 sps:$4 sm:$0xff]   ;;  %v6192_v29 = vld [vmem:[#allocation11 + $0x444] ss:$16 sps:$4 sm:$0xff]   ;;  %v6270_v55 = vld [vmem:[#allocation11 + $0xac] ss:$16 sps:$4 sm:$0xff]  }
 0x2bf   :  { %2407 = vmatprep.mubr.bf16.mxu0 %v7469_v60  ;;  %2448 = vmatprep.mubr.bf16.mxu1 %v7472_v61  ;;  %v6184_v10 = vld [vmem:[#allocation11 + $0x460] ss:$16 sps:$4 sm:$0xff]   ;;  %v6201_v33 = vld [vmem:[#allocation11 + $0x624] ss:$16 sps:$4 sm:$0xff]   ;;  %v6273_v6 = vld [vmem:[#allocation11 + $0x2ac] ss:$16 sps:$4 sm:$0xff]  }
 0x2c0   :  { %2408 = vmatmul.mubr.bf16.vlgmr.msra.gmra.mxu0 %v7475_v2  ;;  %2449 = vmatmul.mubr.bf16.vlgmr.msra.gmra.mxu1 %v7478_v4  ;;  %v6187_v28 = vld [vmem:[#allocation11 + $0x660] ss:$16 sps:$4 sm:$0xff]   ;;  %v6204_v36 = vld [vmem:[#allocation11 + $0x404] ss:$16 sps:$4 sm:$0xff]  }
 0x2c1   :  { %2458 = vmatpush1.bf16.msra.mxu0 %v6160_v63  ;;  %2499 = vmatpush1.bf16.msra.mxu1 %v6163_v1  ;;  %v6196_v34 = vld [vmem:[#allocation11 + $0x420] ss:$16 sps:$4 sm:$0xff]   ;;  %v6207_v40 = vld [vmem:[#allocation11 + $0x604] ss:$16 sps:$4 sm:$0xff]  }
 0x2c2   :  { %2489 = vmatprep.mubr.bf16.mxu0 %v7485_v8  ;;  %2530 = vmatprep.mubr.bf16.mxu1 %v7488_v9  ;;  %v6199_v35 = vld [vmem:[#allocation11 + $0x620] ss:$16 sps:$4 sm:$0xff]   ;;  %v6210_v44 = vld [vmem:[#allocation11 + $0x5e4] ss:$16 sps:$4 sm:$0xff]  }
 0x2c3   :  { %2459 = vmatprep.subr.bf16.mxu0 %v6168_v5  ;;  %2500 = vmatprep.subr.bf16.mxu1 %v6171_v7  ;;  %v6202_v42 = vld [vmem:[#allocation11 + $0x400] ss:$16 sps:$4 sm:$0xff]   ;;  %v6213_v45 = vld [vmem:[#allocation11 + $0x7e4] ss:$16 sps:$4 sm:$0xff]  }
 0x2c4   :  { %v6205_v43 = vld [vmem:[#allocation11 + $0x600] ss:$16 sps:$4 sm:$0xff]   ;;  %v6216_v15 = vld [vmem:[#allocation11 + $0x5c4] ss:$16 sps:$4 sm:$0xff]  }
 0x2c5   :  { %2460 = vmatpush1.bf16.msra.mxu0 %v6166_v16  ;;  %2501 = vmatpush1.bf16.msra.mxu1 %v6169_v17  ;;  %v6208_v13 = vld [vmem:[#allocation11 + $0x5e0] ss:$16 sps:$4 sm:$0xff]   ;;  %v6219_v48 = vld [vmem:[#allocation11 + $0x7c4] ss:$16 sps:$4 sm:$0xff]  }
 0x2c6   :  { %2461 = vmatprep.subr.bf16.mxu0 %v6174_v51  ;;  %2502 = vmatprep.subr.bf16.mxu1 %v6177_v53  ;;  %v6211_v46 = vld [vmem:[#allocation11 + $0x7e0] ss:$16 sps:$4 sm:$0xff]   ;;  %v6222_v14 = vld [vmem:[#allocation11 + $0x5a4] ss:$16 sps:$4 sm:$0xff]  }
 0x2c7   :  { %v6214_v12 = vld [vmem:[#allocation11 + $0x5c0] ss:$16 sps:$4 sm:$0xff]   ;;  %v6225_v54 = vld [vmem:[#allocation11 + $0x7a4] ss:$16 sps:$4 sm:$0xff]  }
 0x2c8   :  { %v6217_v49 = vld [vmem:[#allocation11 + $0x7c0] ss:$16 sps:$4 sm:$0xff]   ;;  %v6228_v21 = vld [vmem:[#allocation11 + $0x584] ss:$16 sps:$4 sm:$0xff]  }
 0x2c9   :  { %2462 = vmatpush1.bf16.msra.mxu0 %v6172_v52  ;;  %2503 = vmatpush1.bf16.msra.mxu1 %v6175_v62  ;;  %v6220_v20 = vld [vmem:[#allocation11 + $0x5a0] ss:$16 sps:$4 sm:$0xff]   ;;  %v6231_v56 = vld [vmem:[#allocation11 + $0x784] ss:$16 sps:$4 sm:$0xff]  }
 0x2ca   :  { %2463 = vmatprep.subr.bf16.mxu0 %v6180_v22  ;;  %2504 = vmatprep.subr.bf16.mxu1 %v6183_v23  ;;  %v6223_v19 = vld [vmem:[#allocation11 + $0x7a0] ss:$16 sps:$4 sm:$0xff]   ;;  %v6234_v3 = vld [vmem:[#allocation11 + $0x564] ss:$16 sps:$4 sm:$0xff]  }
 0x2cb   :  { %v6226_v50 = vld [vmem:[#allocation11 + $0x580] ss:$16 sps:$4 sm:$0xff]   ;;  %v6237_v63 = vld [vmem:[#allocation11 + $0x764] ss:$16 sps:$4 sm:$0xff]  }
 0x2cc   :  { %v6229_v57 = vld [vmem:[#allocation11 + $0x780] ss:$16 sps:$4 sm:$0xff]   ;;  %v6240_v7 = vld [vmem:[#allocation11 + $0x544] ss:$16 sps:$4 sm:$0xff]  }
 0x2cd   :  { %2464 = vmatpush1.bf16.msra.mxu0 %v6178_v24  ;;  %2505 = vmatpush1.bf16.msra.mxu1 %v6181_v25  ;;  %v6232_v1 = vld [vmem:[#allocation11 + $0x560] ss:$16 sps:$4 sm:$0xff]   ;;  %v6243_v16 = vld [vmem:[#allocation11 + $0x744] ss:$16 sps:$4 sm:$0xff]  }
 0x2ce   :  { %2465 = vmatprep.subr.bf16.mxu0 %v6186_v11  ;;  %2506 = vmatprep.subr.bf16.mxu1 %v6189_v27  ;;  %v6235_v5 = vld [vmem:[#allocation11 + $0x760] ss:$16 sps:$4 sm:$0xff]   ;;  %v6246_v53 = vld [vmem:[#allocation11 + $0x524] ss:$16 sps:$4 sm:$0xff]   ;;  %v6258_v27 = vld [vmem:[#allocation11 + $0xec] ss:$16 sps:$4 sm:$0xff]  }
 0x2cf   :  { %v6238_v17 = vld [vmem:[#allocation11 + $0x540] ss:$16 sps:$4 sm:$0xff]   ;;  %v6249_v52 = vld [vmem:[#allocation11 + $0x724] ss:$16 sps:$4 sm:$0xff]  }
 0x2d0   :  { %v6241_v51 = vld [vmem:[#allocation11 + $0x740] ss:$16 sps:$4 sm:$0xff]   ;;  %v6252_v23 = vld [vmem:[#allocation11 + $0x504] ss:$16 sps:$4 sm:$0xff]  }
 0x2d1   :  { %2466 = vmatpush1.bf16.msra.mxu0 %v6184_v10  ;;  %2507 = vmatpush1.bf16.msra.mxu1 %v6187_v28  ;;  %v6244_v62 = vld [vmem:[#allocation11 + $0x520] ss:$16 sps:$4 sm:$0xff]   ;;  %v6255_v24 = vld [vmem:[#allocation11 + $0x704] ss:$16 sps:$4 sm:$0xff]   ;;  %v6261_v10 = vld [vmem:[#allocation11 + $0x2ec] ss:$16 sps:$4 sm:$0xff]  }
 0x2d2   :  { %2467 = vmatprep.subr.bf16.mxu0 %v6192_v29  ;;  %2508 = vmatprep.subr.bf16.mxu1 %v6195_v31  ;;  %v6247_v22 = vld [vmem:[#allocation11 + $0x720] ss:$16 sps:$4 sm:$0xff]   ;;  %v6256_v28 = vld [vmem:[#allocation11 + $0xe8] ss:$16 sps:$4 sm:$0xff]   ;;  %v7496_v29 = vmax.bf16 %v7168_v0, %v805_v58  ;;  %v7502_v31 = vmax.bf16 %v7168_v0, %v807_v59 }
 0x2d3   :  { %v6250_v25 = vld [vmem:[#allocation11 + $0x500] ss:$16 sps:$4 sm:$0xff]   ;;  %v6268_v58 = vld [vmem:[#allocation11 + $0xa8] ss:$16 sps:$4 sm:$0xff]  }
 0x2d4   :  { %v6253_v11 = vld [vmem:[#allocation11 + $0x700] ss:$16 sps:$4 sm:$0xff]   ;;  %v6271_v59 = vld [vmem:[#allocation11 + $0x2a8] ss:$16 sps:$4 sm:$0xff]  }
 0x2d5   :  { %2468 = vmatpush1.bf16.msra.mxu0 %v6190_v47  ;;  %2509 = vmatpush1.bf16.msra.mxu1 %v6193_v32  ;;  %v6259_v47 = vld [vmem:[#allocation11 + $0x2e8] ss:$16 sps:$4 sm:$0xff]   ;;  %v6264_v32 = vld [vmem:[#allocation11 + $0xcc] ss:$16 sps:$4 sm:$0xff]  }
 0x2d6   :  { %2469 = vmatprep.subr.bf16.mxu0 %v6198_v18  ;;  %2510 = vmatprep.subr.bf16.mxu1 %v6201_v33  ;;  %v6267_v18 = vld [vmem:[#allocation11 + $0x2cc] ss:$16 sps:$4 sm:$0xff]  }
 0x2d7   :  { %v6276_v33 = vld [vmem:[#allocation11 + $0x8c] ss:$16 sps:$4 sm:$0xff]  }
 0x2d9   :  { %2470 = vmatpush1.bf16.msra.mxu0 %v6196_v34  ;;  %2511 = vmatpush1.bf16.msra.mxu1 %v6199_v35  ;;  %v6279_v34 = vld [vmem:[#allocation11 + $0x28c] ss:$16 sps:$4 sm:$0xff]   ;;  %v6274_v35 = vld [vmem:[#allocation11 + $0x88] ss:$16 sps:$4 sm:$0xff]  }
 0x2da   :  { %2471 = vmatprep.subr.bf16.mxu0 %v6204_v36  ;;  %2512 = vmatprep.subr.bf16.mxu1 %v6207_v40  ;;  %v6282_v36 = vld [vmem:[#allocation11 + $0x6c] ss:$16 sps:$4 sm:$0xff]   ;;  %v6280_v40 = vld [vmem:[#allocation11 + $0x68] ss:$16 sps:$4 sm:$0xff]  }
 0x2dd   :  { %2472 = vmatpush1.bf16.msra.mxu0 %v6202_v42  ;;  %2513 = vmatpush1.bf16.msra.mxu1 %v6205_v43  ;;  %v6283_v42 = vld [vmem:[#allocation11 + $0x268] ss:$16 sps:$4 sm:$0xff]   ;;  %v6288_v43 = vld [vmem:[#allocation11 + $0x4c] ss:$16 sps:$4 sm:$0xff]  }
 0x2de   :  { %2473 = vmatprep.subr.bf16.mxu0 %v6210_v44  ;;  %2514 = vmatprep.subr.bf16.mxu1 %v6213_v45  ;;  %v6291_v44 = vld [vmem:[#allocation11 + $0x24c] ss:$16 sps:$4 sm:$0xff]   ;;  %v6286_v45 = vld [vmem:[#allocation11 + $0x48] ss:$16 sps:$4 sm:$0xff]  }
 0x2e1   :  { %2474 = vmatpush2.bf16.msra.mxu0 %v6208_v13  ;;  %2515 = vmatpush2.bf16.msra.mxu1 %v6211_v46  ;;  %v6289_v13 = vld [vmem:[#allocation11 + $0x248] ss:$16 sps:$4 sm:$0xff]   ;;  %v6294_v46 = vld [vmem:[#allocation11 + $0x2c] ss:$16 sps:$4 sm:$0xff]  }
 0x2e2   :  { %2475 = vmatprep.subr.bf16.mxu0 %v6216_v15  ;;  %2516 = vmatprep.subr.bf16.mxu1 %v6219_v48  ;;  %v6297_v15 = vld [vmem:[#allocation11 + $0x22c] ss:$16 sps:$4 sm:$0xff]   ;;  %v6292_v48 = vld [vmem:[#allocation11 + $0x28] ss:$16 sps:$4 sm:$0xff]  }
 0x2e5   :  { %2476 = vmatpush2.bf16.msra.mxu0 %v6214_v12  ;;  %2517 = vmatpush2.bf16.msra.mxu1 %v6217_v49  ;;  %v6295_v12 = vld [vmem:[#allocation11 + $0x228] ss:$16 sps:$4 sm:$0xff]   ;;  %v6300_v49 = vld [vmem:[#allocation11 + $0xc] ss:$16 sps:$4 sm:$0xff]  }
 0x2e6   :  { %2477 = vmatprep.subr.bf16.mxu0 %v6222_v14  ;;  %2518 = vmatprep.subr.bf16.mxu1 %v6225_v54  ;;  %v6303_v14 = vld [vmem:[#allocation11 + $0x20c] ss:$16 sps:$4 sm:$0xff]   ;;  %v6298_v54 = vld [vmem:[#allocation11 + $0x8] ss:$16 sps:$4 sm:$0xff]  }
 0x2e9   :  { %2478 = vmatpush2.bf16.msra.mxu0 %v6220_v20  ;;  %2519 = vmatpush2.bf16.msra.mxu1 %v6223_v19  ;;  %v6301_v20 = vld [vmem:[#allocation11 + $0x208] ss:$16 sps:$4 sm:$0xff]   ;;  %v6306_v19 = vld [vmem:[#allocation11 + $0x1ec] ss:$16 sps:$4 sm:$0xff]  }
 0x2ea   :  { %2479 = vmatprep.subr.bf16.mxu0 %v6228_v21  ;;  %2520 = vmatprep.subr.bf16.mxu1 %v6231_v56  ;;  %v6309_v21 = vld [vmem:[#allocation11 + $0x3ec] ss:$16 sps:$4 sm:$0xff]   ;;  %v6304_v56 = vld [vmem:[#allocation11 + $0x1e8] ss:$16 sps:$4 sm:$0xff]  }
 0x2ed   :  { %2480 = vmatpush2.bf16.msra.mxu0 %v6226_v50  ;;  %2521 = vmatpush2.bf16.msra.mxu1 %v6229_v57  ;;  %v6307_v50 = vld [vmem:[#allocation11 + $0x3e8] ss:$16 sps:$4 sm:$0xff]   ;;  %v6312_v57 = vld [vmem:[#allocation11 + $0x1cc] ss:$16 sps:$4 sm:$0xff]  }
 0x2ee   :  { %2481 = vmatprep.subr.bf16.mxu0 %v6234_v3  ;;  %2522 = vmatprep.subr.bf16.mxu1 %v6237_v63  ;;  %v6315_v3 = vld [vmem:[#allocation11 + $0x3cc] ss:$16 sps:$4 sm:$0xff]   ;;  %v6310_v63 = vld [vmem:[#allocation11 + $0x1c8] ss:$16 sps:$4 sm:$0xff]  }
 0x2f1   :  { %2482 = vmatpush2.bf16.msra.mxu0 %v6232_v1  ;;  %2523 = vmatpush2.bf16.msra.mxu1 %v6235_v5  ;;  %v6313_v1 = vld [vmem:[#allocation11 + $0x3c8] ss:$16 sps:$4 sm:$0xff]   ;;  %v6318_v5 = vld [vmem:[#allocation11 + $0x1ac] ss:$16 sps:$4 sm:$0xff]  }
 0x2f2   :  { %2483 = vmatprep.subr.bf16.mxu0 %v6240_v7  ;;  %2524 = vmatprep.subr.bf16.mxu1 %v6243_v16  ;;  %v6321_v7 = vld [vmem:[#allocation11 + $0x3ac] ss:$16 sps:$4 sm:$0xff]   ;;  %v6316_v16 = vld [vmem:[#allocation11 + $0x1a8] ss:$16 sps:$4 sm:$0xff]  }
 0x2f5   :  { %2484 = vmatpush2.bf16.msra.mxu0 %v6238_v17  ;;  %2525 = vmatpush2.bf16.msra.mxu1 %v6241_v51  ;;  %v6319_v17 = vld [vmem:[#allocation11 + $0x3a8] ss:$16 sps:$4 sm:$0xff]   ;;  %v6324_v51 = vld [vmem:[#allocation11 + $0x18c] ss:$16 sps:$4 sm:$0xff]  }
 0x2f6   :  { %2485 = vmatprep.subr.bf16.mxu0 %v6246_v53  ;;  %2526 = vmatprep.subr.bf16.mxu1 %v6249_v52  ;;  %v6327_v53 = vld [vmem:[#allocation11 + $0x38c] ss:$16 sps:$4 sm:$0xff]   ;;  %v6322_v52 = vld [vmem:[#allocation11 + $0x188] ss:$16 sps:$4 sm:$0xff]  }
 0x2f9   :  { %2486 = vmatpush2.bf16.msra.mxu0 %v6244_v62  ;;  %2527 = vmatpush2.bf16.msra.mxu1 %v6247_v22  ;;  %v6325_v62 = vld [vmem:[#allocation11 + $0x388] ss:$16 sps:$4 sm:$0xff]   ;;  %v6330_v22 = vld [vmem:[#allocation11 + $0x16c] ss:$16 sps:$4 sm:$0xff]  }
 0x2fa   :  { %2487 = vmatprep.subr.bf16.mxu0 %v6252_v23  ;;  %2528 = vmatprep.subr.bf16.mxu1 %v6255_v24  ;;  %v6333_v23 = vld [vmem:[#allocation11 + $0x36c] ss:$16 sps:$4 sm:$0xff]   ;;  %v6328_v24 = vld [vmem:[#allocation11 + $0x168] ss:$16 sps:$4 sm:$0xff]  }
 0x2fd   :  { %2488 = vmatpush2.bf16.msra.mxu0 %v6250_v25  ;;  %2529 = vmatpush2.bf16.msra.mxu1 %v6253_v11  ;;  %v6331_v25 = vld [vmem:[#allocation11 + $0x368] ss:$16 sps:$4 sm:$0xff]   ;;  %v6336_v11 = vld [vmem:[#allocation11 + $0x14c] ss:$16 sps:$4 sm:$0xff]  }
 0x2fe   :  { %2539 = vmatprep.subr.bf16.mxu0 %v6258_v27  ;;  %2580 = vmatprep.subr.bf16.mxu1 %v6261_v10  ;;  %v6339_v27 = vld [vmem:[#allocation11 + $0x34c] ss:$16 sps:$4 sm:$0xff]   ;;  %v6334_v10 = vld [vmem:[#allocation11 + $0x148] ss:$16 sps:$4 sm:$0xff]  }
 0x300   :  { %2490 = vmatmul.mubr.bf16.vlgmr.msra.gmra.mxu0 %v7496_v29  ;;  %2531 = vmatmul.mubr.bf16.vlgmr.msra.gmra.mxu1 %v7502_v31 }
 0x301   :  { %2540 = vmatpush1.bf16.msra.mxu0 %v6256_v28  ;;  %2571 = vmatprep.mubr.bf16.mxu0 %v7469_v60  ;;  %v6277_v60 = vld [vmem:[#allocation11 + $0x288] ss:$16 sps:$4 sm:$0xff]  }
 0x302   :  { %2581 = vmatpush1.bf16.msra.mxu1 %v6259_v47  ;;  %2612 = vmatprep.mubr.bf16.mxu1 %v7472_v61  ;;  %v6285_v61 = vld [vmem:[#allocation11 + $0x26c] ss:$16 sps:$4 sm:$0xff]   ;;  %v6337_v28 = vld [vmem:[#allocation11 + $0x348] ss:$16 sps:$4 sm:$0xff]  }
 0x303   :  { %2541 = vmatprep.subr.bf16.mxu0 %v6264_v32  ;;  %2582 = vmatprep.subr.bf16.mxu1 %v6267_v18  ;;  %v6342_v47 = vld [vmem:[#allocation11 + $0x12c] ss:$16 sps:$4 sm:$0xff]   ;;  %v6340_v18 = vld [vmem:[#allocation11 + $0x128] ss:$16 sps:$4 sm:$0xff]  }
 0x304   :  { %v6345_v32 = vld [vmem:[#allocation11 + $0x32c] ss:$16 sps:$4 sm:$0xff]  }
 0x305   :  { %2542 = vmatpush1.bf16.msra.mxu0 %v6262_v26  ;;  %v6343_v26 = vld [vmem:[#allocation11 + $0x328] ss:$16 sps:$4 sm:$0xff]  }
 0x306   :  { %2583 = vmatpush1.bf16.msra.mxu1 %v6265_v30  ;;  %2543 = vmatprep.subr.bf16.mxu0 %v6270_v55  ;;  %v6348_v30 = vld [vmem:[#allocation11 + $0x10c] ss:$16 sps:$4 sm:$0xff]  }
 0x307   :  { %2584 = vmatprep.subr.bf16.mxu1 %v6273_v6  ;;  %v6351_v55 = vld [vmem:[#allocation11 + $0x30c] ss:$16 sps:$4 sm:$0xff]   ;;  %v6346_v6 = vld [vmem:[#allocation11 + $0x108] ss:$16 sps:$4 sm:$0xff]  }
 0x309   :  { %2544 = vmatpush1.bf16.msra.mxu0 %v6268_v58  ;;  %v6349_v58 = vld [vmem:[#allocation11 + $0x308] ss:$16 sps:$4 sm:$0xff]  }
 0x30a   :  { %2585 = vmatpush1.bf16.msra.mxu1 %v6271_v59  ;;  %2545 = vmatprep.subr.bf16.mxu0 %v6276_v33  ;;  %v6354_v59 = vld [vmem:[#allocation11 + $0x4ec] ss:$16 sps:$4 sm:$0xff]  }
 0x30b   :  { %2586 = vmatprep.subr.bf16.mxu1 %v6279_v34  ;;  %v6357_v33 = vld [vmem:[#allocation11 + $0x6ec] ss:$16 sps:$4 sm:$0xff]   ;;  %v6352_v34 = vld [vmem:[#allocation11 + $0x4e8] ss:$16 sps:$4 sm:$0xff]  }
 0x30d   :  { %2546 = vmatpush1.bf16.msra.mxu0 %v6274_v35  ;;  %v6355_v35 = vld [vmem:[#allocation11 + $0x6e8] ss:$16 sps:$4 sm:$0xff]  }
 0x30e   :  { %2587 = vmatpush1.bf16.msra.mxu1 %v6277_v60  ;;  %2547 = vmatprep.subr.bf16.mxu0 %v6282_v36  ;;  %v6360_v60 = vld [vmem:[#allocation11 + $0x4cc] ss:$16 sps:$4 sm:$0xff]  }
 0x30f   :  { %2588 = vmatprep.subr.bf16.mxu1 %v6285_v61  ;;  %v6363_v36 = vld [vmem:[#allocation11 + $0x6cc] ss:$16 sps:$4 sm:$0xff]   ;;  %v6358_v61 = vld [vmem:[#allocation11 + $0x4c8] ss:$16 sps:$4 sm:$0xff]  }
 0x311   :  { %2548 = vmatpush1.bf16.msra.mxu0 %v6280_v40  ;;  %v6361_v40 = vld [vmem:[#allocation11 + $0x6c8] ss:$16 sps:$4 sm:$0xff]  }
 0x312   :  { %2589 = vmatpush1.bf16.msra.mxu1 %v6283_v42  ;;  %2549 = vmatprep.subr.bf16.mxu0 %v6288_v43  ;;  %v6366_v42 = vld [vmem:[#allocation11 + $0x4ac] ss:$16 sps:$4 sm:$0xff]  }
 0x313   :  { %2590 = vmatprep.subr.bf16.mxu1 %v6291_v44  ;;  %v6369_v43 = vld [vmem:[#allocation11 + $0x6ac] ss:$16 sps:$4 sm:$0xff]   ;;  %v6364_v44 = vld [vmem:[#allocation11 + $0x4a8] ss:$16 sps:$4 sm:$0xff]  }
 0x315   :  { %2550 = vmatpush1.bf16.msra.mxu0 %v6286_v45  ;;  %v6372_v45 = vld [vmem:[#allocation11 + $0x48c] ss:$16 sps:$4 sm:$0xff]  }
 0x316   :  { %2591 = vmatpush1.bf16.msra.mxu1 %v6289_v13  ;;  %2551 = vmatprep.subr.bf16.mxu0 %v6294_v46  ;;  %v6370_v13 = vld [vmem:[#allocation11 + $0x488] ss:$16 sps:$4 sm:$0xff]   ;;  %v6378_v46 = vld [vmem:[#allocation11 + $0x46c] ss:$16 sps:$4 sm:$0xff]  }
 0x317   :  { %2592 = vmatprep.subr.bf16.mxu1 %v6297_v15  ;;  %v6381_v15 = vld [vmem:[#allocation11 + $0x66c] ss:$16 sps:$4 sm:$0xff]  }
 0x319   :  { %2552 = vmatpush1.bf16.msra.mxu0 %v6292_v48  ;;  %v6379_v48 = vld [vmem:[#allocation11 + $0x668] ss:$16 sps:$4 sm:$0xff]  }
 0x31a   :  { %2593 = vmatpush1.bf16.msra.mxu1 %v6295_v12  ;;  %2553 = vmatprep.subr.bf16.mxu0 %v6300_v49  ;;  %v6384_v12 = vld [vmem:[#allocation11 + $0x44c] ss:$16 sps:$4 sm:$0xff]  }
 0x31b   :  { %2594 = vmatprep.subr.bf16.mxu1 %v6303_v14  ;;  %v6387_v49 = vld [vmem:[#allocation11 + $0x64c] ss:$16 sps:$4 sm:$0xff]   ;;  %v6382_v14 = vld [vmem:[#allocation11 + $0x448] ss:$16 sps:$4 sm:$0xff]  }
 0x31d   :  { %2554 = vmatpush1.bf16.msra.mxu0 %v6298_v54  ;;  %v6385_v54 = vld [vmem:[#allocation11 + $0x648] ss:$16 sps:$4 sm:$0xff]  }
 0x31e   :  { %2595 = vmatpush1.bf16.msra.mxu1 %v6301_v20  ;;  %2555 = vmatprep.subr.bf16.mxu0 %v6306_v19  ;;  %v6390_v20 = vld [vmem:[#allocation11 + $0x42c] ss:$16 sps:$4 sm:$0xff]  }
 0x31f   :  { %2596 = vmatprep.subr.bf16.mxu1 %v6309_v21  ;;  %v6393_v19 = vld [vmem:[#allocation11 + $0x62c] ss:$16 sps:$4 sm:$0xff]   ;;  %v6388_v21 = vld [vmem:[#allocation11 + $0x428] ss:$16 sps:$4 sm:$0xff]  }
 0x321   :  { %2556 = vmatpush2.bf16.msra.mxu0 %v6304_v56  ;;  %v6391_v56 = vld [vmem:[#allocation11 + $0x628] ss:$16 sps:$4 sm:$0xff]  }
 0x322   :  { %2597 = vmatpush2.bf16.msra.mxu1 %v6307_v50  ;;  %2557 = vmatprep.subr.bf16.mxu0 %v6312_v57  ;;  %v6396_v50 = vld [vmem:[#allocation11 + $0x40c] ss:$16 sps:$4 sm:$0xff]  }
 0x323   :  { %2598 = vmatprep.subr.bf16.mxu1 %v6315_v3  ;;  %v6399_v57 = vld [vmem:[#allocation11 + $0x60c] ss:$16 sps:$4 sm:$0xff]   ;;  %v6394_v3 = vld [vmem:[#allocation11 + $0x408] ss:$16 sps:$4 sm:$0xff]  }
 0x325   :  { %2558 = vmatpush2.bf16.msra.mxu0 %v6310_v63  ;;  %v6397_v63 = vld [vmem:[#allocation11 + $0x608] ss:$16 sps:$4 sm:$0xff]  }
 0x326   :  { %2599 = vmatpush2.bf16.msra.mxu1 %v6313_v1  ;;  %2559 = vmatprep.subr.bf16.mxu0 %v6318_v5  ;;  %v6402_v1 = vld [vmem:[#allocation11 + $0x5ec] ss:$16 sps:$4 sm:$0xff]  }
 0x327   :  { %2600 = vmatprep.subr.bf16.mxu1 %v6321_v7  ;;  %v6405_v5 = vld [vmem:[#allocation11 + $0x7ec] ss:$16 sps:$4 sm:$0xff]   ;;  %v6400_v7 = vld [vmem:[#allocation11 + $0x5e8] ss:$16 sps:$4 sm:$0xff]  }
 0x329   :  { %2560 = vmatpush2.bf16.msra.mxu0 %v6316_v16  ;;  %v6403_v16 = vld [vmem:[#allocation11 + $0x7e8] ss:$16 sps:$4 sm:$0xff]  }
 0x32a   :  { %2601 = vmatpush2.bf16.msra.mxu1 %v6319_v17  ;;  %2561 = vmatprep.subr.bf16.mxu0 %v6324_v51  ;;  %v6408_v17 = vld [vmem:[#allocation11 + $0x5cc] ss:$16 sps:$4 sm:$0xff]  }
 0x32b   :  { %2602 = vmatprep.subr.bf16.mxu1 %v6327_v53  ;;  %v6411_v51 = vld [vmem:[#allocation11 + $0x7cc] ss:$16 sps:$4 sm:$0xff]   ;;  %v6406_v53 = vld [vmem:[#allocation11 + $0x5c8] ss:$16 sps:$4 sm:$0xff]  }
 0x32d   :  { %2562 = vmatpush2.bf16.msra.mxu0 %v6322_v52  ;;  %v6409_v52 = vld [vmem:[#allocation11 + $0x7c8] ss:$16 sps:$4 sm:$0xff]  }
 0x32e   :  { %2603 = vmatpush2.bf16.msra.mxu1 %v6325_v62  ;;  %2563 = vmatprep.subr.bf16.mxu0 %v6330_v22  ;;  %v6414_v62 = vld [vmem:[#allocation11 + $0x5ac] ss:$16 sps:$4 sm:$0xff]  }
 0x32f   :  { %2604 = vmatprep.subr.bf16.mxu1 %v6333_v23  ;;  %v6417_v22 = vld [vmem:[#allocation11 + $0x7ac] ss:$16 sps:$4 sm:$0xff]   ;;  %v6412_v23 = vld [vmem:[#allocation11 + $0x5a8] ss:$16 sps:$4 sm:$0xff]  }
 0x331   :  { %2564 = vmatpush2.bf16.msra.mxu0 %v6328_v24  ;;  %v6415_v24 = vld [vmem:[#allocation11 + $0x7a8] ss:$16 sps:$4 sm:$0xff]  }
 0x332   :  { %2605 = vmatpush2.bf16.msra.mxu1 %v6331_v25  ;;  %2565 = vmatprep.subr.bf16.mxu0 %v6336_v11  ;;  %v6420_v25 = vld [vmem:[#allocation11 + $0x58c] ss:$16 sps:$4 sm:$0xff]  }
 0x333   :  { %2606 = vmatprep.subr.bf16.mxu1 %v6339_v27  ;;  %v6423_v11 = vld [vmem:[#allocation11 + $0x78c] ss:$16 sps:$4 sm:$0xff]   ;;  %v6418_v27 = vld [vmem:[#allocation11 + $0x588] ss:$16 sps:$4 sm:$0xff]  }
 0x335   :  { %2566 = vmatpush2.bf16.msra.mxu0 %v6334_v10  ;;  %v6421_v10 = vld [vmem:[#allocation11 + $0x788] ss:$16 sps:$4 sm:$0xff]  }
 0x336   :  { %2607 = vmatpush2.bf16.msra.mxu1 %v6337_v28  ;;  %2567 = vmatprep.subr.bf16.mxu0 %v6342_v47  ;;  %v6426_v28 = vld [vmem:[#allocation11 + $0x56c] ss:$16 sps:$4 sm:$0xff]  }
 0x337   :  { %2608 = vmatprep.subr.bf16.mxu1 %v6345_v32  ;;  %v6429_v47 = vld [vmem:[#allocation11 + $0x76c] ss:$16 sps:$4 sm:$0xff]   ;;  %v6424_v32 = vld [vmem:[#allocation11 + $0x568] ss:$16 sps:$4 sm:$0xff]  }
 0x339   :  { %2568 = vmatpush2.bf16.msra.mxu0 %v6340_v18  ;;  %v6427_v18 = vld [vmem:[#allocation11 + $0x768] ss:$16 sps:$4 sm:$0xff]  }
 0x33a   :  { %2609 = vmatpush2.bf16.msra.mxu1 %v6343_v26  ;;  %2569 = vmatprep.subr.bf16.mxu0 %v6348_v30  ;;  %v6432_v26 = vld [vmem:[#allocation11 + $0x54c] ss:$16 sps:$4 sm:$0xff]  }
 0x33b   :  { %2610 = vmatprep.subr.bf16.mxu1 %v6351_v55  ;;  %v6435_v30 = vld [vmem:[#allocation11 + $0x74c] ss:$16 sps:$4 sm:$0xff]   ;;  %v6430_v55 = vld [vmem:[#allocation11 + $0x548] ss:$16 sps:$4 sm:$0xff]  }
 0x33d   :  { %2570 = vmatpush2.bf16.msra.mxu0 %v6346_v6  ;;  %v6433_v6 = vld [vmem:[#allocation11 + $0x748] ss:$16 sps:$4 sm:$0xff]  }
 0x33e   :  { %2611 = vmatpush2.bf16.msra.mxu1 %v6349_v58  ;;  %2621 = vmatprep.subr.bf16.mxu0 %v6354_v59  ;;  %v6438_v58 = vld [vmem:[#allocation11 + $0x52c] ss:$16 sps:$4 sm:$0xff]  }
 0x33f   :  { %2662 = vmatprep.subr.bf16.mxu1 %v6357_v33  ;;  %v6441_v59 = vld [vmem:[#allocation11 + $0x72c] ss:$16 sps:$4 sm:$0xff]   ;;  %v6436_v33 = vld [vmem:[#allocation11 + $0x528] ss:$16 sps:$4 sm:$0xff]  }
 0x340   :  { %2572 = vmatmul.mubr.bf16.vlgmr.msra.gmra.mxu0 %v7475_v2  ;;  %v6367_v2 = vld [vmem:[#allocation11 + $0x6a8] ss:$16 sps:$4 sm:$0xff]  }
 0x341   :  { %2613 = vmatmul.mubr.bf16.vlgmr.msra.gmra.mxu1 %v7478_v4  ;;  %2622 = vmatpush1.bf16.msra.mxu0 %v6352_v34  ;;  %v6375_v4 = vld [vmem:[#allocation11 + $0x68c] ss:$16 sps:$4 sm:$0xff]   ;;  %v6439_v34 = vld [vmem:[#allocation11 + $0x728] ss:$16 sps:$4 sm:$0xff]  }
 0x342   :  { %2653 = vmatprep.mubr.bf16.mxu0 %v7485_v8  ;;  %2663 = vmatpush1.bf16.msra.mxu1 %v6355_v35  ;;  %v6373_v8 = vld [vmem:[#allocation11 + $0x688] ss:$16 sps:$4 sm:$0xff]   ;;  %v6444_v35 = vld [vmem:[#allocation11 + $0x50c] ss:$16 sps:$4 sm:$0xff]  }
 0x343   :  { %2694 = vmatprep.mubr.bf16.mxu1 %v7488_v9  ;;  %2623 = vmatprep.subr.bf16.mxu0 %v6360_v60  ;;  %v6376_v9 = vld [vmem:[#allocation11 + $0x468] ss:$16 sps:$4 sm:$0xff]   ;;  %v6447_v60 = vld [vmem:[#allocation11 + $0x70c] ss:$16 sps:$4 sm:$0xff]  }
 0x344   :  { %2664 = vmatprep.subr.bf16.mxu1 %v6363_v36  ;;  %v6442_v36 = vld [vmem:[#allocation11 + $0x508] ss:$16 sps:$4 sm:$0xff]  }
 0x345   :  { %2624 = vmatpush1.bf16.msra.mxu0 %v6358_v61  ;;  %v6445_v61 = vld [vmem:[#allocation11 + $0x708] ss:$16 sps:$4 sm:$0xff]  }
 0x346   :  { %2665 = vmatpush1.bf16.msra.mxu1 %v6361_v40  ;;  %2625 = vmatprep.subr.bf16.mxu0 %v6366_v42  ;;  %v1073_v40 = vld [vmem:[%s7727_s6] sm:$0xf] }
 0x347   :  { %2666 = vmatprep.subr.bf16.mxu1 %v6369_v43  ;;  %v1078_v42 = vrot.slane %v1073_v40, %v7328_v37  ;;  %v1082_v43 = vrot.slane %v1073_v40, %v7332_v39 }
 0x349   :  { %2626 = vmatpush1.bf16.msra.mxu0 %v6364_v44 }
 0x34a   :  { %2667 = vmatpush1.bf16.msra.mxu1 %v6367_v2  ;;  %2627 = vmatprep.subr.bf16.mxu0 %v6372_v45 }
 0x34b   :  { %2668 = vmatprep.subr.bf16.mxu1 %v6375_v4 }
 0x34d   :  { %2628 = vmatpush1.bf16.msra.mxu0 %v6370_v13 }
 0x34e   :  { %2669 = vmatpush1.bf16.msra.mxu1 %v6373_v8  ;;  %2629 = vmatprep.subr.bf16.mxu0 %v6378_v46 }
 0x34f   :  { %2670 = vmatprep.subr.bf16.mxu1 %v6381_v15 }
 0x351   :  { %2630 = vmatpush1.bf16.msra.mxu0 %v6376_v9 }
 0x352   :  { %2671 = vmatpush1.bf16.msra.mxu1 %v6379_v48  ;;  %2631 = vmatprep.subr.bf16.mxu0 %v6384_v12 }
 0x353   :  { %2672 = vmatprep.subr.bf16.mxu1 %v6387_v49 }
 0x355   :  { %2632 = vmatpush1.bf16.msra.mxu0 %v6382_v14 }
 0x356   :  { %2673 = vmatpush1.bf16.msra.mxu1 %v6385_v54  ;;  %2633 = vmatprep.subr.bf16.mxu0 %v6390_v20 }
 0x357   :  { %2674 = vmatprep.subr.bf16.mxu1 %v6393_v19 }
 0x359   :  { %2634 = vmatpush1.bf16.msra.mxu0 %v6388_v21 }
 0x35a   :  { %2675 = vmatpush1.bf16.msra.mxu1 %v6391_v56  ;;  %2635 = vmatprep.subr.bf16.mxu0 %v6396_v50 }
 0x35b   :  { %2676 = vmatprep.subr.bf16.mxu1 %v6399_v57 }
 0x35d   :  { %2636 = vmatpush1.bf16.msra.mxu0 %v6394_v3 }
 0x35e   :  { %2677 = vmatpush1.bf16.msra.mxu1 %v6397_v63  ;;  %2637 = vmatprep.subr.bf16.mxu0 %v6402_v1 }
 0x35f   :  { %2678 = vmatprep.subr.bf16.mxu1 %v6405_v5 }
 0x361   :  { %2638 = vmatpush2.bf16.msra.mxu0 %v6400_v7 }
 0x362   :  { %2679 = vmatpush2.bf16.msra.mxu1 %v6403_v16  ;;  %2639 = vmatprep.subr.bf16.mxu0 %v6408_v17 }
 0x363   :  { %2680 = vmatprep.subr.bf16.mxu1 %v6411_v51 }
 0x365   :  { %2640 = vmatpush2.bf16.msra.mxu0 %v6406_v53 }
 0x366   :  { %2681 = vmatpush2.bf16.msra.mxu1 %v6409_v52  ;;  %2641 = vmatprep.subr.bf16.mxu0 %v6414_v62  ;;  %v1086_v62 = vrot.slane %v1073_v40, %v7330_v38 }
 0x367   :  { %2682 = vmatprep.subr.bf16.mxu1 %v6417_v22  ;;  %v1090_v22 = vrot.slane %v1073_v40, %v7334_v41  ;;  %v6453_v40 = vld [vmem:[#allocation13 + $0x2e4] ss:$16 sps:$4 sm:$0xff]  }
 0x369   :  { %2642 = vmatpush2.bf16.msra.mxu0 %v6412_v23 }
 0x36a   :  { %2683 = vmatpush2.bf16.msra.mxu1 %v6415_v24  ;;  %2643 = vmatprep.subr.bf16.mxu0 %v6420_v25 }
 0x36b   :  { %2684 = vmatprep.subr.bf16.mxu1 %v6423_v11 }
 0x36d   :  { %2644 = vmatpush2.bf16.msra.mxu0 %v6418_v27 }
 0x36e   :  { %2685 = vmatpush2.bf16.msra.mxu1 %v6421_v10  ;;  %2645 = vmatprep.subr.bf16.mxu0 %v6426_v28 }
 0x36f   :  { %2686 = vmatprep.subr.bf16.mxu1 %v6429_v47 }
 0x371   :  { %2646 = vmatpush2.bf16.msra.mxu0 %v6424_v32 }
 0x372   :  { %2687 = vmatpush2.bf16.msra.mxu1 %v6427_v18  ;;  %2647 = vmatprep.subr.bf16.mxu0 %v6432_v26 }
 0x373   :  { %2688 = vmatprep.subr.bf16.mxu1 %v6435_v30 }
 0x375   :  { %2648 = vmatpush2.bf16.msra.mxu0 %v6430_v55 }
 0x376   :  { %2689 = vmatpush2.bf16.msra.mxu1 %v6433_v6  ;;  %2649 = vmatprep.subr.bf16.mxu0 %v6438_v58 }
 0x377   :  { %2690 = vmatprep.subr.bf16.mxu1 %v6441_v59 }
 0x379   :  { %2650 = vmatpush2.bf16.msra.mxu0 %v6436_v33 }
 0x37a   :  { %2691 = vmatpush2.bf16.msra.mxu1 %v6439_v34  ;;  %2651 = vmatprep.subr.bf16.mxu0 %v6444_v35 }
 0x37b   :  { %2692 = vmatprep.subr.bf16.mxu1 %v6447_v60  ;;  %v6448_v60 = vld [vmem:[#allocation13 + $0xe0] ss:$16 sps:$4 sm:$0xff]  }
 0x37d   :  { %2652 = vmatpush2.bf16.msra.mxu0 %v6442_v36  ;;  %v6450_v36 = vld [vmem:[#allocation13 + $0xe4] ss:$16 sps:$4 sm:$0xff]  }
 0x37e   :  { %2693 = vmatpush2.bf16.msra.mxu1 %v6445_v61  ;;  %v6451_v61 = vld [vmem:[#allocation13 + $0x2e0] ss:$16 sps:$4 sm:$0xff]   ;;  %3644 = vmatprep.subr.bf16.mxu0 %v6450_v36 }
 0x37f   :  { %3685 = vmatprep.subr.bf16.mxu1 %v6453_v40  ;;  %v6517_v36 = vld [vmem:[#allocation13 + $0x380] ss:$16 sps:$4 sm:$0xff]   ;;  %v6525_v40 = vld [vmem:[#allocation13 + $0x364] ss:$16 sps:$4 sm:$0xff]  }
 0x380   :  { %2654 = vmatmul.mubr.bf16.vlgmr.msra.gmra.mxu0 %v7496_v29  ;;  %v2409_v44 = vpop.f32.mrf.mxu0  ;;  %v2450_v2 = vpop.f32.mrf.mxu1 }
 0x381   :  { %2695 = vmatmul.mubr.bf16.vlgmr.msra.gmra.mxu1 %v7502_v31  ;;  %v2410_v45 = vadd.f32 %v2409_v44, %v1078_v42  ;;  %v6456_v42 = vld [vmem:[#allocation13 + $0xc4] ss:$16 sps:$4 sm:$0xff]   ;;  %3645 = vmatpush1.bf16.msra.mxu0 %v6448_v60  ;;  %v6454_v44 = vld [vmem:[#allocation13 + $0xc0] ss:$16 sps:$4 sm:$0xff]  }
 0x382   :  { %v2411_v4 = vpop.f32.mrf.mxu0  ;;  %v2452_v13 = vpop.f32.mrf.mxu1  ;;  %3686 = vmatpush1.bf16.msra.mxu1 %v6451_v61  ;;  %3646 = vmatprep.subr.bf16.mxu0 %v6456_v42  ;;  %v6514_v60 = vld [vmem:[#allocation13 + $0x180] ss:$16 sps:$4 sm:$0xff]   ;;  %v6522_v61 = vld [vmem:[#allocation13 + $0x164] ss:$16 sps:$4 sm:$0xff]  }
 0x383   :  { %v2451_v8 = vadd.f32 %v2450_v2, %v2410_v45  ;;  %v2412_v46 = vadd.f32 %v2411_v4, %v1082_v43  ;;  %v6459_v43 = vld [vmem:[#allocation13 + $0x2c4] ss:$16 sps:$4 sm:$0xff]   ;;  %v6457_v2 = vld [vmem:[#allocation13 + $0x2c0] ss:$16 sps:$4 sm:$0xff]  }
 0x384   :  { %v2413_v15 = vpop.f32.mrf.mxu0  ;;  %v2454_v9 = vpop.f32.mrf.mxu1  ;;  %v6462_v45 = vld [vmem:[#allocation13 + $0xa4] ss:$16 sps:$4 sm:$0xff]   ;;  %3687 = vmatprep.subr.bf16.mxu1 %v6459_v43  ;;  %v6520_v42 = vld [vmem:[#allocation13 + $0x160] ss:$16 sps:$4 sm:$0xff]  }
 0x385   :  { %v2453_v48 = vadd.f32 %v2452_v13, %v2412_v46  ;;  %v6465_v4 = vld [vmem:[#allocation13 + $0x2a4] ss:$16 sps:$4 sm:$0xff]   ;;  %3647 = vmatpush1.bf16.msra.mxu0 %v6454_v44  ;;  %v6460_v13 = vld [vmem:[#allocation13 + $0xa0] ss:$16 sps:$4 sm:$0xff]  }
 0x386   :  { %v2414_v12 = vpop.f32.mrf.mxu0  ;;  %v2455_v49 = vpop.f32.mrf.mxu1  ;;  %3688 = vmatpush1.bf16.msra.mxu1 %v6457_v2  ;;  %3648 = vmatprep.subr.bf16.mxu0 %v6462_v45  ;;  %v6468_v46 = vld [vmem:[#allocation13 + $0x84] ss:$16 sps:$4 sm:$0xff]   ;;  %v6466_v9 = vld [vmem:[#allocation13 + $0x80] ss:$16 sps:$4 sm:$0xff]  }
 0x387   :  { %3689 = vmatprep.subr.bf16.mxu1 %v6465_v4  ;;  %v6471_v15 = vld [vmem:[#allocation13 + $0x284] ss:$16 sps:$4 sm:$0xff]   ;;  %v6523_v43 = vld [vmem:[#allocation13 + $0x360] ss:$16 sps:$4 sm:$0xff]  }
 0x388   :  { %v6474_v12 = vld [vmem:[#allocation13 + $0x64] ss:$16 sps:$4 sm:$0xff]   ;;  %v6526_v45 = vld [vmem:[#allocation13 + $0x140] ss:$16 sps:$4 sm:$0xff]  }
 0x389   :  { %3649 = vmatpush1.bf16.msra.mxu0 %v6460_v13  ;;  %v6477_v49 = vld [vmem:[#allocation13 + $0x264] ss:$16 sps:$4 sm:$0xff]   ;;  %v6529_v4 = vld [vmem:[#allocation13 + $0x340] ss:$16 sps:$4 sm:$0xff]  }
 0x38a   :  { %3650 = vmatprep.subr.bf16.mxu0 %v6468_v46  ;;  %v6528_v44 = vld [vmem:[#allocation13 + $0x144] ss:$16 sps:$4 sm:$0xff]   ;;  %v6532_v46 = vld [vmem:[#allocation13 + $0x120] ss:$16 sps:$4 sm:$0xff]  }
 0x38b   :  { %v6531_v2 = vld [vmem:[#allocation13 + $0x344] ss:$16 sps:$4 sm:$0xff]  }
 0x38c   :  { %v6534_v13 = vld [vmem:[#allocation13 + $0x124] ss:$16 sps:$4 sm:$0xff]  }
 0x38d   :  { %3651 = vmatpush1.bf16.msra.mxu0 %v6466_v9  ;;  %v6540_v9 = vld [vmem:[#allocation13 + $0x104] ss:$16 sps:$4 sm:$0xff]  }
 0x38e   :  { %3652 = vmatprep.subr.bf16.mxu0 %v6474_v12  ;;  %v6538_v12 = vld [vmem:[#allocation13 + $0x100] ss:$16 sps:$4 sm:$0xff]  }
 0x3c0   :  { %v2491_v14 = vpop.f32.mrf.mxu0  ;;  %v2532_v54 = vpop.f32.mrf.mxu1 }
 0x3c1   :  { %v2492_v20 = vadd.f32 %v2491_v14, %v2451_v8  ;;  %v6463_v8 = vld [vmem:[#allocation13 + $0x2a0] ss:$16 sps:$4 sm:$0xff]  }
 0x3c2   :  { %v2493_v19 = vpop.f32.mrf.mxu0  ;;  %v2534_v21 = vpop.f32.mrf.mxu1  ;;  %3690 = vmatpush1.bf16.msra.mxu1 %v6463_v8  ;;  %v6472_v14 = vld [vmem:[#allocation13 + $0x60] ss:$16 sps:$4 sm:$0xff]   ;;  %v6537_v8 = vld [vmem:[#allocation13 + $0x324] ss:$16 sps:$4 sm:$0xff]  }
 0x3c3   :  { %v7519_v29 = vadd.f32 %v2532_v54, %v2492_v20  ;;  %v2494_v56 = vadd.f32 %v2493_v19, %v2453_v48  ;;  %v6469_v48 = vld [vmem:[#allocation13 + $0x280] ss:$16 sps:$4 sm:$0xff]   ;;  %3691 = vmatprep.subr.bf16.mxu1 %v6471_v15  ;;  %v6480_v20 = vld [vmem:[#allocation13 + $0x44] ss:$16 sps:$4 sm:$0xff]   ;;  %3653 = vmatpush1.bf16.msra.mxu0 %v6472_v14  ;;  %v6546_v14 = vld [vmem:[#allocation13 + $0xec] ss:$16 sps:$4 sm:$0xff]  }
 0x3c4   :  { %v2495_v50 = vpop.f32.mrf.mxu0  ;;  %v2536_v31 = vpop.f32.mrf.mxu1  ;;  %v6475_v54 = vld [vmem:[#allocation13 + $0x260] ss:$16 sps:$4 sm:$0xff]   ;;  %v6483_v19 = vld [vmem:[#allocation13 + $0x244] ss:$16 sps:$4 sm:$0xff]   ;;  %3654 = vmatprep.subr.bf16.mxu0 %v6480_v20 }
 0x3c5   :  { %v7521_v57 = vadd.f32 %v2534_v21, %v2494_v56  ;;  %v6478_v21 = vld [vmem:[#allocation13 + $0x40] ss:$16 sps:$4 sm:$0xff]   ;;  %v6486_v50 = vld [vmem:[#allocation13 + $0x24] ss:$16 sps:$4 sm:$0xff]  }
 0x3c6   :  { %v2496_v3 = vpop.f32.mrf.mxu0  ;;  %v2537_v63 = vpop.f32.mrf.mxu1  ;;  %3692 = vmatpush1.bf16.msra.mxu1 %v6469_v48  ;;  %v6481_v56 = vld [vmem:[#allocation13 + $0x240] ss:$16 sps:$4 sm:$0xff]   ;;  %v6489_v31 = vld [vmem:[#allocation13 + $0x224] ss:$16 sps:$4 sm:$0xff]  }
 0x3c7   :  { %v2705_v32 = vadd.f32 %v7521_v57, %v7519_v29  ;;  %3693 = vmatprep.subr.bf16.mxu1 %v6477_v49  ;;  %3655 = vmatpush1.bf16.msra.mxu0 %v6478_v21  ;;  %v6484_v3 = vld [vmem:[#allocation13 + $0x20] ss:$16 sps:$4 sm:$0xff]   ;;  %v6543_v48 = vld [vmem:[#allocation13 + $0x304] ss:$16 sps:$4 sm:$0xff]  }
 0x3c8   :  { %3656 = vmatprep.subr.bf16.mxu0 %v6486_v50  ;;  %v6487_v63 = vld [vmem:[#allocation13 + $0x220] ss:$16 sps:$4 sm:$0xff]  }
 0x3c9   :  { %v6535_v15 = vld [vmem:[#allocation13 + $0x320] ss:$16 sps:$4 sm:$0xff]  }
 0x3ca   :  { %3694 = vmatpush1.bf16.msra.mxu1 %v6475_v54  ;;  %v6541_v49 = vld [vmem:[#allocation13 + $0x300] ss:$16 sps:$4 sm:$0xff]   ;;  %v6549_v54 = vld [vmem:[#allocation13 + $0x2ec] ss:$16 sps:$4 sm:$0xff]  }
 0x3cb   :  { %3695 = vmatprep.subr.bf16.mxu1 %v6483_v19  ;;  %3657 = vmatpush1.bf16.msra.mxu0 %v6484_v3  ;;  %v2704_v50 = vld [vmem:[%s7729_s8] sm:$0xf] }
 0x3ce   :  { %3696 = vmatpush1.bf16.msra.mxu1 %v6481_v56  ;;  %v2703_v56 = vld [vmem:[%s7728_s7] sm:$0xf] }
 0x3cf   :  { %3697 = vmatprep.subr.bf16.mxu1 %v6489_v31  ;;  %v2744_v31 = vrot.slane %v2703_v56, %v7332_v39  ;;  %v2752_v3 = vrot.slane %v2703_v56, %v7334_v41 }
 0x3d2   :  { %3698 = vmatpush1.bf16.msra.mxu1 %v6487_v63  ;;  %v2740_v63 = vrot.slane %v2703_v56, %v7328_v37 }
 0x400   :  { %v2573_v1 = vpop.f32.mrf.mxu0 }
 0x401   :  { %v2614_v5 = vpop.f32.mrf.mxu1  ;;  %v2574_v23 = vadd.f32 %v2573_v1, %v1086_v62  ;;  %v6492_v1 = vld [vmem:[#allocation13 + $0x4] ss:$16 sps:$4 sm:$0xff]  }
 0x402   :  { %v2575_v7 = vpop.f32.mrf.mxu0  ;;  %3658 = vmatprep.subr.bf16.mxu0 %v6492_v1  ;;  %v2748_v1 = vrot.slane %v2703_v56, %v7330_v38  ;;  %v6550_v56 = vld [vmem:[#allocation13 + $0xc8] ss:$16 sps:$4 sm:$0xff]  }
 0x403   :  { %v2616_v16 = vpop.f32.mrf.mxu1  ;;  %v2576_v24 = vadd.f32 %v2575_v7, %v1090_v22  ;;  %v2615_v25 = vadd.f32 %v2614_v5, %v2574_v23  ;;  %v6495_v5 = vld [vmem:[#allocation13 + $0x204] ss:$16 sps:$4 sm:$0xff]   ;;  %v6490_v7 = vld [vmem:[#allocation13] ss:$16 sps:$4 sm:$0xff]  }
 0x404   :  { %v2577_v17 = vpop.f32.mrf.mxu0  ;;  %3699 = vmatprep.subr.bf16.mxu1 %v6495_v5  ;;  %3659 = vmatpush1.bf16.msra.mxu0 %v6490_v7  ;;  %v2801_v5 = vrot.slane %v2704_v50, %v7332_v39  ;;  %v2809_v7 = vrot.slane %v2704_v50, %v7334_v41 }
 0x405   :  { %v2618_v51 = vpop.f32.mrf.mxu1  ;;  %v2617_v27 = vadd.f32 %v2616_v16, %v2576_v24  ;;  %v6493_v16 = vld [vmem:[#allocation13 + $0x200] ss:$16 sps:$4 sm:$0xff]   ;;  %v6498_v17 = vld [vmem:[#allocation13 + $0x1e4] ss:$16 sps:$4 sm:$0xff]  }
 0x406   :  { %v2578_v53 = vpop.f32.mrf.mxu0  ;;  %v6501_v51 = vld [vmem:[#allocation13 + $0x3e4] ss:$16 sps:$4 sm:$0xff]   ;;  %3700 = vmatpush1.bf16.msra.mxu1 %v6493_v16  ;;  %3660 = vmatprep.subr.bf16.mxu0 %v6498_v17  ;;  %v2797_v16 = vrot.slane %v2704_v50, %v7328_v37  ;;  %v2805_v17 = vrot.slane %v2704_v50, %v7330_v38  ;;  %v6553_v50 = vld [vmem:[#allocation13 + $0x2c8] ss:$16 sps:$4 sm:$0xff]  }
 0x407   :  { %v2619_v52 = vpop.f32.mrf.mxu1  ;;  %v6496_v53 = vld [vmem:[#allocation13 + $0x1e0] ss:$16 sps:$4 sm:$0xff]   ;;  %3701 = vmatprep.subr.bf16.mxu1 %v6501_v51  ;;  %v2758_v51 = vpack.c.bf16 %v2744_v31, %v2744_v31  ;;  %v6558_v31 = vld [vmem:[#allocation13 + $0xac] ss:$16 sps:$4 sm:$0xff]  }
 0x408   :  { %v6499_v52 = vld [vmem:[#allocation13 + $0x3e0] ss:$16 sps:$4 sm:$0xff]   ;;  %3661 = vmatpush2.bf16.msra.mxu0 %v6496_v53  ;;  %v2760_v53 = vpack.c.bf16 %v2752_v3, %v2752_v3  ;;  %v6561_v3 = vld [vmem:[#allocation13 + $0x2ac] ss:$16 sps:$4 sm:$0xff]  }
 0x40a   :  { %3702 = vmatpush2.bf16.msra.mxu1 %v6499_v52  ;;  %v2757_v52 = vpack.c.bf16 %v2740_v63, %v2740_v63  ;;  %v6556_v63 = vld [vmem:[#allocation13 + $0xa8] ss:$16 sps:$4 sm:$0xff]  }
 0x440   :  { %v2655_v11 = vpop.f32.mrf.mxu0 }
 0x441   :  { %v2656_v10 = vadd.f32 %v2655_v11, %v2615_v25  ;;  %v2696_v28 = vpop.f32.mrf.mxu1 }
 0x442   :  { %v2657_v47 = vpop.f32.mrf.mxu0 }
 0x443   :  { %v7527_v18 = vadd.f32 %v2696_v28, %v2656_v10  ;;  %v2658_v26 = vadd.f32 %v2657_v47, %v2617_v27  ;;  %v2698_v30 = vpop.f32.mrf.mxu1 }
 0x444   :  { %v2659_v55 = vpop.f32.mrf.mxu0 }
 0x445   :  { %v7529_v6 = vadd.f32 %v2698_v30, %v2658_v26  ;;  %v2700_v58 = vpop.f32.mrf.mxu1  ;;  %v2706_v59 = vadd.f32 %v2705_v32, %v7527_v18  ;;  %v6507_v26 = vld [vmem:[#allocation13 + $0x3c4] ss:$16 sps:$4 sm:$0xff]   ;;  %v6502_v30 = vld [vmem:[#allocation13 + $0x1c0] ss:$16 sps:$4 sm:$0xff]  }
 0x446   :  { %v2660_v33 = vpop.f32.mrf.mxu0  ;;  %v6505_v55 = vld [vmem:[#allocation13 + $0x3c0] ss:$16 sps:$4 sm:$0xff]   ;;  %3703 = vmatprep.subr.bf16.mxu1 %v6507_v26  ;;  %v6510_v58 = vld [vmem:[#allocation13 + $0x1a4] ss:$16 sps:$4 sm:$0xff]  }
 0x447   :  { %v2701_v34 = vpop.f32.mrf.mxu1  ;;  %v2707_v35 = vadd.f32 %v2706_v59, %v7529_v6  ;;  %3704 = vmatpush2.bf16.msra.mxu1 %v6505_v55  ;;  %v6511_v59 = vld [vmem:[#allocation13 + $0x3a0] ss:$16 sps:$4 sm:$0xff]   ;;  %v6513_v33 = vld [vmem:[#allocation13 + $0x3a4] ss:$16 sps:$4 sm:$0xff]  }
 0x448   :  { %v6516_v34 = vld [vmem:[#allocation13 + $0x184] ss:$16 sps:$4 sm:$0xff]   ;;  %3705 = vmatprep.subr.bf16.mxu1 %v6513_v33 }
 0x449   :  { %2708 = vadd.xlane.f32.xlu1 %v2707_v35  ;;  %v6519_v35 = vld [vmem:[#allocation13 + $0x384] ss:$16 sps:$4 sm:$0xff]  }
 0x44b   :  { %3706 = vmatpush2.bf16.msra.mxu1 %v6511_v59 }
 0x44c   :  { %3707 = vmatprep.subr.bf16.mxu1 %v6519_v35 }
 0x44f   :  { %3708 = vmatpush2.bf16.msra.mxu1 %v6517_v36 }
 0x450   :  { %3709 = vmatprep.subr.bf16.mxu1 %v6525_v40 }
 0x453   :  { %3710 = vmatpush2.bf16.msra.mxu1 %v6523_v43 }
 0x454   :  { %3711 = vmatprep.subr.bf16.mxu1 %v6531_v2 }
 0x457   :  { %3712 = vmatpush2.bf16.msra.mxu1 %v6529_v4 }
 0x458   :  { %3713 = vmatprep.subr.bf16.mxu1 %v6537_v8 }
 0x45b   :  { %3714 = vmatpush2.bf16.msra.mxu1 %v6535_v15 }
 0x45c   :  { %3715 = vmatprep.subr.bf16.mxu1 %v6543_v48 }
 0x45f   :  { %3716 = vmatpush2.bf16.msra.mxu1 %v6541_v49  ;;  %v6544_v49 = vld [vmem:[#allocation13 + $0xe8] ss:$16 sps:$4 sm:$0xff]  }
 0x460   :  { %3767 = vmatprep.subr.bf16.mxu1 %v6549_v54 }
 0x4d2   :  { %v2709_v62 = vpop.xlane.xlu1 %2708 }
 0x4d3   :  { %v2711_v22 = vmul.f32 0.001953125, %v2709_v62  ;;  %v2759_v62 = vpack.c.bf16 %v2748_v1, %v2748_v1  ;;  %v6559_v1 = vld [vmem:[#allocation13 + $0x2a8] ss:$16 sps:$4 sm:$0xff]  }
 0x4d5   :  { %v7534_v23 = vsub.f32 %v7519_v29, %v2711_v22  ;;  %v7537_v24 = vsub.f32 %v7521_v57, %v2711_v22  ;;  %v7540_v25 = vsub.f32 %v7527_v18, %v2711_v22  ;;  %v7543_v11 = vsub.f32 %v7529_v6, %v2711_v22  ;;  %v6504_v18 = vld [vmem:[#allocation13 + $0x1c4] ss:$16 sps:$4 sm:$0xff]   ;;  %v6508_v6 = vld [vmem:[#allocation13 + $0x1a0] ss:$16 sps:$4 sm:$0xff]  }
 0x4d6   :  { %3662 = vmatprep.subr.bf16.mxu0 %v6504_v18  ;;  %v2815_v22 = vpack.c.bf16 %v2801_v5, %v2801_v5  ;;  %v6564_v5 = vld [vmem:[#allocation13 + $0x8c] ss:$16 sps:$4 sm:$0xff]  }
 0x4d7   :  { %v2716_v27 = vmul.f32 %v7534_v23, %v7534_v23  ;;  %v2717_v10 = vmul.f32 %v7537_v24, %v7537_v24  ;;  %v2718_v28 = vmul.f32 %v7540_v25, %v7540_v25  ;;  %v2719_v57 = vmul.f32 %v7543_v11, %v7543_v11  ;;  %3663 = vmatpush2.bf16.msra.mxu0 %v6502_v30 }
 0x4d8   :  { %3664 = vmatprep.subr.bf16.mxu0 %v6510_v58  ;;  %v2826_v18 = vpack.i.b16 %v2815_v22, %v2815_v22  ;;  %v6576_v22 = vld [vmem:[#allocation13 + $0x4c] ss:$16 sps:$4 sm:$0xff]  }
 0x4d9   :  { %v2720_v29 = vadd.f32 %v2717_v10, %v2716_v27  ;;  %v2817_v27 = vpack.c.bf16 %v2809_v7, %v2809_v7  ;;  %v2814_v10 = vpack.c.bf16 %v2797_v16, %v2797_v16  ;;  %v6567_v7 = vld [vmem:[#allocation13 + $0x28c] ss:$16 sps:$4 sm:$0xff]   ;;  %v6562_v16 = vld [vmem:[#allocation13 + $0x88] ss:$16 sps:$4 sm:$0xff]  }
 0x4da   :  { %v2831_v40 = vrot.slane %v2826_v18, %v7328_v37  ;;  %v6588_v18 = vld [vmem:[#allocation13 + $0xc] ss:$16 sps:$4 sm:$0xff]  }
 0x4db   :  { %v2721_v47 = vadd.f32 %v2720_v29, %v2718_v28  ;;  %3665 = vmatpush2.bf16.msra.mxu0 %v6508_v6  ;;  %v2816_v28 = vpack.c.bf16 %v2805_v17, %v2805_v17  ;;  %v2769_v29 = vpack.i.b16 %v2758_v51, %v2758_v51  ;;  %v2840_v26 = vpack.i.b16 %v2817_v27, %v2817_v27  ;;  %v6565_v17 = vld [vmem:[#allocation13 + $0x288] ss:$16 sps:$4 sm:$0xff]   ;;  %v6570_v51 = vld [vmem:[#allocation13 + $0x6c] ss:$16 sps:$4 sm:$0xff]  }
 0x4dc   :  { %3666 = vmatprep.subr.bf16.mxu0 %v6516_v34  ;;  %v2819_v30 = vpack.i.b16 %v2814_v10, %v2814_v10  ;;  %v6579_v27 = vld [vmem:[#allocation13 + $0x24c] ss:$16 sps:$4 sm:$0xff]   ;;  %v6574_v10 = vld [vmem:[#allocation13 + $0x48] ss:$16 sps:$4 sm:$0xff]  }
 0x4dd   :  { %v2722_v32 = vadd.f32 %v2721_v47, %v2719_v57  ;;  %v2783_v57 = vpack.i.b16 %v2760_v53, %v2760_v53  ;;  %v2762_v47 = vpack.i.b16 %v2757_v52, %v2757_v52  ;;  %v2833_v55 = vpack.i.b16 %v2816_v28, %v2816_v28  ;;  %v6573_v53 = vld [vmem:[#allocation13 + $0x26c] ss:$16 sps:$4 sm:$0xff]   ;;  %v6568_v52 = vld [vmem:[#allocation13 + $0x68] ss:$16 sps:$4 sm:$0xff]  }
 0x4de   :  { %v2774_v58 = vrot.slane %v2769_v29, %v7328_v37  ;;  %v2824_v43 = vrot.slane %v2819_v30, %v7328_v37  ;;  %v6577_v28 = vld [vmem:[#allocation13 + $0x248] ss:$16 sps:$4 sm:$0xff]   ;;  %v6582_v29 = vld [vmem:[#allocation13 + $0x2c] ss:$16 sps:$4 sm:$0xff]  }
 0x4df   :  { %2723 = vadd.xlane.f32.xlu1 %v2722_v32  ;;  %3667 = vmatpush2.bf16.msra.mxu0 %v6514_v60  ;;  %v2776_v32 = vpack.i.b16 %v2759_v62, %v2759_v62  ;;  %v2788_v59 = vrot.slane %v2783_v57, %v7328_v37  ;;  %v2767_v33 = vrot.slane %v2762_v47, %v7328_v37  ;;  %v6571_v62 = vld [vmem:[#allocation13 + $0x268] ss:$16 sps:$4 sm:$0xff]   ;;  %v6585_v57 = vld [vmem:[#allocation13 + $0x22c] ss:$16 sps:$4 sm:$0xff]  }
 0x4e0   :  { %3668 = vmatprep.subr.bf16.mxu0 %v6522_v61  ;;  %v6580_v47 = vld [vmem:[#allocation13 + $0x28] ss:$16 sps:$4 sm:$0xff]  }
 0x4e1   :  { %v2781_v34 = vrot.slane %v2776_v32, %v7328_v37  ;;  %v6583_v32 = vld [vmem:[#allocation13 + $0x228] ss:$16 sps:$4 sm:$0xff]  }
 0x4e2   :  { %v6586_v30 = vld [vmem:[#allocation13 + $0x8] ss:$16 sps:$4 sm:$0xff]  }
 0x4e3   :  { %3669 = vmatpush2.bf16.msra.mxu0 %v6520_v42  ;;  %v2845_v42 = vrot.slane %v2840_v26, %v7328_v37  ;;  %v6591_v26 = vld [vmem:[#allocation13 + $0x20c] ss:$16 sps:$4 sm:$0xff]  }
 0x4e4   :  { %3670 = vmatprep.subr.bf16.mxu0 %v6528_v44  ;;  %v2838_v44 = vrot.slane %v2833_v55, %v7328_v37  ;;  %v6589_v55 = vld [vmem:[#allocation13 + $0x208] ss:$16 sps:$4 sm:$0xff]  }
 0x4e7   :  { %3671 = vmatpush2.bf16.msra.mxu0 %v6526_v45 }
 0x4e8   :  { %3672 = vmatprep.subr.bf16.mxu0 %v6534_v13 }
 0x4eb   :  { %3673 = vmatpush2.bf16.msra.mxu0 %v6532_v46 }
 0x4ec   :  { %3674 = vmatprep.subr.bf16.mxu0 %v6540_v9 }
 0x4ef   :  { %3675 = vmatpush2.bf16.msra.mxu0 %v6538_v12 }
 0x4f0   :  { %3726 = vmatprep.subr.bf16.mxu0 %v6546_v14  ;;  %v6547_v14 = vld [vmem:[#allocation13 + $0x2e8] ss:$16 sps:$4 sm:$0xff]  }
 0x568   :  { %v2724_v20 = vpop.xlane.xlu1 %2723 }
 0x569   :  { %v2725_v19 = vmul.f32 0.001953125, %v2724_v20 }
 0x56b   :  { %v2726_v21 = vadd.f32 1e-05, %v2725_v19  ;;  %v6552_v19 = vld [vmem:[#allocation13 + $0xcc] ss:$16 sps:$4 sm:$0xff]  }
 0x56d   :  { %6866 = vrsqrt.f32 %v2726_v21  ;;  %v6555_v21 = vld [vmem:[#allocation13 + $0x2cc] ss:$16 sps:$4 sm:$0xff]  }
 0x57a   :  { %v6867_v6 = vpop.eup %6866 }
 0x57b   :  { %v2729_v35 = vmul.f32 %v6867_v6, %v7537_v24  ;;  %v2731_v60 = vmul.f32 %v6867_v6, %v7543_v11  ;;  %v2728_v36 = vmul.f32 %v6867_v6, %v7534_v23  ;;  %v2730_v61 = vmul.f32 %v6867_v6, %v7540_v25  ;;  %v6594_v6 = vld [vmem:[#allocation13 + $0x1ec] ss:$16 sps:$4 sm:$0xff]  }
 0x57d   :  { %v2733_v2 = vpack.c.bf16 %v2729_v35, %v2729_v35  ;;  %v2735_v45 = vpack.c.bf16 %v2731_v60, %v2731_v60  ;;  %v2732_v4 = vpack.c.bf16 %v2728_v36, %v2728_v36  ;;  %v2734_v13 = vpack.c.bf16 %v2730_v61, %v2730_v61  ;;  %v6603_v35 = vld [vmem:[#allocation13 + $0x3cc] ss:$16 sps:$4 sm:$0xff]   ;;  %v6598_v60 = vld [vmem:[#allocation13 + $0x1c8] ss:$16 sps:$4 sm:$0xff]  }
 0x57e   :  { %v6601_v36 = vld [vmem:[#allocation13 + $0x3c8] ss:$16 sps:$4 sm:$0xff]   ;;  %v6606_v61 = vld [vmem:[#allocation13 + $0x1ac] ss:$16 sps:$4 sm:$0xff]  }
 0x57f   :  { %v2790_v8 = vmul.bf16 %v2774_v58, %v2733_v2  ;;  %v2792_v24 = vmul.bf16 %v2788_v59, %v2735_v45  ;;  %v2789_v46 = vmul.bf16 %v2767_v33, %v2732_v4  ;;  %v2791_v11 = vmul.bf16 %v2781_v34, %v2734_v13  ;;  %v6597_v58 = vld [vmem:[#allocation13 + $0x3ec] ss:$16 sps:$4 sm:$0xff]   ;;  %v6592_v59 = vld [vmem:[#allocation13 + $0x1e8] ss:$16 sps:$4 sm:$0xff]  }
 0x580   :  { %v6595_v33 = vld [vmem:[#allocation13 + $0x3e8] ss:$16 sps:$4 sm:$0xff]   ;;  %v6600_v34 = vld [vmem:[#allocation13 + $0x1cc] ss:$16 sps:$4 sm:$0xff]  }
 0x581   :  { %v2847_v15 = vadd.bf16 %v2831_v40, %v2790_v8  ;;  %v2849_v23 = vadd.bf16 %v2845_v42, %v2792_v24  ;;  %v2846_v9 = vadd.bf16 %v2824_v43, %v2789_v46  ;;  %v2848_v25 = vadd.bf16 %v2838_v44, %v2791_v11  ;;  %v6609_v40 = vld [vmem:[#allocation13 + $0x3ac] ss:$16 sps:$4 sm:$0xff]   ;;  %v6604_v42 = vld [vmem:[#allocation13 + $0x1a8] ss:$16 sps:$4 sm:$0xff]  }
 0x582   :  { %v6607_v43 = vld [vmem:[#allocation13 + $0x3a8] ss:$16 sps:$4 sm:$0xff]   ;;  %v6612_v44 = vld [vmem:[#allocation13 + $0x18c] ss:$16 sps:$4 sm:$0xff]  }
 0x583   :  { %v2851_v48 = vmax.bf16 %v7168_v0, %v2847_v15  ;;  %v2853_v12 = vmax.bf16 %v7168_v0, %v2849_v23  ;;  %v7582_v54 = vmax.bf16 %v7168_v0, %v2846_v9  ;;  %v7585_v20 = vmax.bf16 %v7168_v0, %v2848_v25  ;;  %v6615_v2 = vld [vmem:[#allocation13 + $0x38c] ss:$16 sps:$4 sm:$0xff]   ;;  %v6610_v45 = vld [vmem:[#allocation13 + $0x188] ss:$16 sps:$4 sm:$0xff]  }
 0x584   :  { %v6613_v4 = vld [vmem:[#allocation13 + $0x388] ss:$16 sps:$4 sm:$0xff]   ;;  %v6618_v13 = vld [vmem:[#allocation13 + $0x16c] ss:$16 sps:$4 sm:$0xff]  }
 0x585   :  { %3676 = vmatprep.mubr.bf16.mxu0 %v2851_v48  ;;  %3717 = vmatprep.mubr.bf16.mxu1 %v2853_v12  ;;  %v6621_v8 = vld [vmem:[#allocation13 + $0x36c] ss:$16 sps:$4 sm:$0xff]   ;;  %v6616_v24 = vld [vmem:[#allocation13 + $0x168] ss:$16 sps:$4 sm:$0xff]  }
 0x586   :  { %3677 = vmatmul.mubr.bf16.vlgmr.msra.gmra.mxu0 %v7582_v54  ;;  %3718 = vmatmul.mubr.bf16.vlgmr.msra.gmra.mxu1 %v7585_v20  ;;  %v6619_v46 = vld [vmem:[#allocation13 + $0x368] ss:$16 sps:$4 sm:$0xff]   ;;  %v6624_v11 = vld [vmem:[#allocation13 + $0x14c] ss:$16 sps:$4 sm:$0xff]  }
 0x587   :  { %3727 = vmatpush1.bf16.msra.mxu0 %v6544_v49  ;;  %3768 = vmatpush1.bf16.msra.mxu1 %v6547_v14  ;;  %v6627_v15 = vld [vmem:[#allocation13 + $0x34c] ss:$16 sps:$4 sm:$0xff]   ;;  %v6622_v23 = vld [vmem:[#allocation13 + $0x148] ss:$16 sps:$4 sm:$0xff]  }
 0x588   :  { %3758 = vmatprep.mubr.bf16.mxu0 %v2851_v48  ;;  %3799 = vmatprep.mubr.bf16.mxu1 %v2853_v12  ;;  %v6625_v9 = vld [vmem:[#allocation13 + $0x348] ss:$16 sps:$4 sm:$0xff]   ;;  %v6630_v25 = vld [vmem:[#allocation13 + $0x12c] ss:$16 sps:$4 sm:$0xff]  }
 0x589   :  { %3728 = vmatprep.subr.bf16.mxu0 %v6552_v19  ;;  %3769 = vmatprep.subr.bf16.mxu1 %v6555_v21  ;;  %v6633_v48 = vld [vmem:[#allocation13 + $0x32c] ss:$16 sps:$4 sm:$0xff]   ;;  %v6628_v12 = vld [vmem:[#allocation13 + $0x128] ss:$16 sps:$4 sm:$0xff]  }
 0x58a   :  { %v6631_v49 = vld [vmem:[#allocation13 + $0x328] ss:$16 sps:$4 sm:$0xff]   ;;  %v6636_v14 = vld [vmem:[#allocation13 + $0x10c] ss:$16 sps:$4 sm:$0xff]  }
 0x58b   :  { %3729 = vmatpush1.bf16.msra.mxu0 %v6550_v56  ;;  %3770 = vmatpush1.bf16.msra.mxu1 %v6553_v50  ;;  %v6639_v19 = vld [vmem:[#allocation13 + $0x30c] ss:$16 sps:$4 sm:$0xff]   ;;  %v6634_v21 = vld [vmem:[#allocation13 + $0x108] ss:$16 sps:$4 sm:$0xff]  }
 0x58c   :  { %3730 = vmatprep.subr.bf16.mxu0 %v6558_v31  ;;  %3771 = vmatprep.subr.bf16.mxu1 %v6561_v3  ;;  %v6637_v56 = vld [vmem:[#allocation13 + $0x308] ss:$16 sps:$4 sm:$0xff]  }
 0x58f   :  { %3731 = vmatpush1.bf16.msra.mxu0 %v6556_v63  ;;  %3772 = vmatpush1.bf16.msra.mxu1 %v6559_v1 }
 0x590   :  { %3732 = vmatprep.subr.bf16.mxu0 %v6564_v5  ;;  %3773 = vmatprep.subr.bf16.mxu1 %v6567_v7 }
 0x593   :  { %3733 = vmatpush1.bf16.msra.mxu0 %v6562_v16  ;;  %3774 = vmatpush1.bf16.msra.mxu1 %v6565_v17  ;;  %v2982_v17 = vld [vmem:[%s7731_s10] sm:$0xf] }
 0x594   :  { %3734 = vmatprep.subr.bf16.mxu0 %v6570_v51  ;;  %3775 = vmatprep.subr.bf16.mxu1 %v6573_v53  ;;  %v2991_v51 = vrot.slane %v2982_v17, %v7332_v39  ;;  %v2987_v53 = vrot.slane %v2982_v17, %v7328_v37 }
 0x597   :  { %3735 = vmatpush1.bf16.msra.mxu0 %v6568_v52  ;;  %3776 = vmatpush1.bf16.msra.mxu1 %v6571_v62 }
 0x598   :  { %3736 = vmatprep.subr.bf16.mxu0 %v6576_v22  ;;  %3777 = vmatprep.subr.bf16.mxu1 %v6579_v27  ;;  %v2999_v22 = vrot.slane %v2982_v17, %v7334_v41 }
 0x59b   :  { %3737 = vmatpush1.bf16.msra.mxu0 %v6574_v10  ;;  %3778 = vmatpush1.bf16.msra.mxu1 %v6577_v28 }
 0x59c   :  { %3738 = vmatprep.subr.bf16.mxu0 %v6582_v29  ;;  %3779 = vmatprep.subr.bf16.mxu1 %v6585_v57 }
 0x59f   :  { %3739 = vmatpush1.bf16.msra.mxu0 %v6580_v47  ;;  %3780 = vmatpush1.bf16.msra.mxu1 %v6583_v32 }
 0x5a0   :  { %3740 = vmatprep.subr.bf16.mxu0 %v6588_v18  ;;  %3781 = vmatprep.subr.bf16.mxu1 %v6591_v26 }
 0x5a3   :  { %3741 = vmatpush1.bf16.msra.mxu0 %v6586_v30  ;;  %3782 = vmatpush1.bf16.msra.mxu1 %v6589_v55 }
 0x5a4   :  { %3742 = vmatprep.subr.bf16.mxu0 %v6594_v6  ;;  %3783 = vmatprep.subr.bf16.mxu1 %v6597_v58 }
 0x5a7   :  { %3743 = vmatpush2.bf16.msra.mxu0 %v6592_v59  ;;  %3784 = vmatpush2.bf16.msra.mxu1 %v6595_v33 }
 0x5a8   :  { %3744 = vmatprep.subr.bf16.mxu0 %v6600_v34  ;;  %3785 = vmatprep.subr.bf16.mxu1 %v6603_v35  ;;  %v6640_v35 = vld [vmem:[#allocation16 + $0xe0] ss:$16 sps:$4 sm:$0xff]  }
 0x5ab   :  { %3745 = vmatpush2.bf16.msra.mxu0 %v6598_v60  ;;  %3786 = vmatpush2.bf16.msra.mxu1 %v6601_v36  ;;  %v6642_v60 = vld [vmem:[#allocation16 + $0xe4] ss:$16 sps:$4 sm:$0xff]   ;;  %v6643_v36 = vld [vmem:[#allocation16 + $0x2e0] ss:$16 sps:$4 sm:$0xff]  }
 0x5ac   :  { %3746 = vmatprep.subr.bf16.mxu0 %v6606_v61  ;;  %3787 = vmatprep.subr.bf16.mxu1 %v6609_v40  ;;  %v6645_v61 = vld [vmem:[#allocation16 + $0x2e4] ss:$16 sps:$4 sm:$0xff]  }
 0x5ad   :  { %v6648_v40 = vld [vmem:[#allocation16 + $0xc4] ss:$16 sps:$4 sm:$0xff]  }
 0x5af   :  { %3747 = vmatpush2.bf16.msra.mxu0 %v6604_v42  ;;  %3788 = vmatpush2.bf16.msra.mxu1 %v6607_v43  ;;  %v6651_v42 = vld [vmem:[#allocation16 + $0x2c4] ss:$16 sps:$4 sm:$0xff]   ;;  %v6646_v43 = vld [vmem:[#allocation16 + $0xc0] ss:$16 sps:$4 sm:$0xff]  }
 0x5b0   :  { %3748 = vmatprep.subr.bf16.mxu0 %v6612_v44  ;;  %3789 = vmatprep.subr.bf16.mxu1 %v6615_v2  ;;  %v6649_v44 = vld [vmem:[#allocation16 + $0x2c0] ss:$16 sps:$4 sm:$0xff]   ;;  %v6654_v2 = vld [vmem:[#allocation16 + $0xa4] ss:$16 sps:$4 sm:$0xff]  }
 0x5b3   :  { %3749 = vmatpush2.bf16.msra.mxu0 %v6610_v45  ;;  %3790 = vmatpush2.bf16.msra.mxu1 %v6613_v4  ;;  %v6657_v45 = vld [vmem:[#allocation16 + $0x2a4] ss:$16 sps:$4 sm:$0xff]   ;;  %v6652_v4 = vld [vmem:[#allocation16 + $0xa0] ss:$16 sps:$4 sm:$0xff]  }
 0x5b4   :  { %3750 = vmatprep.subr.bf16.mxu0 %v6618_v13  ;;  %3791 = vmatprep.subr.bf16.mxu1 %v6621_v8  ;;  %v6655_v13 = vld [vmem:[#allocation16 + $0x2a0] ss:$16 sps:$4 sm:$0xff]   ;;  %v6660_v8 = vld [vmem:[#allocation16 + $0x84] ss:$16 sps:$4 sm:$0xff]  }
 0x5b7   :  { %3751 = vmatpush2.bf16.msra.mxu0 %v6616_v24  ;;  %3792 = vmatpush2.bf16.msra.mxu1 %v6619_v46  ;;  %v6663_v24 = vld [vmem:[#allocation16 + $0x284] ss:$16 sps:$4 sm:$0xff]   ;;  %v6658_v46 = vld [vmem:[#allocation16 + $0x80] ss:$16 sps:$4 sm:$0xff]  }
 0x5b8   :  { %3752 = vmatprep.subr.bf16.mxu0 %v6624_v11  ;;  %3793 = vmatprep.subr.bf16.mxu1 %v6627_v15  ;;  %v6661_v11 = vld [vmem:[#allocation16 + $0x280] ss:$16 sps:$4 sm:$0xff]   ;;  %v6666_v15 = vld [vmem:[#allocation16 + $0x64] ss:$16 sps:$4 sm:$0xff]  }
 0x5bb   :  { %3753 = vmatpush2.bf16.msra.mxu0 %v6622_v23  ;;  %3794 = vmatpush2.bf16.msra.mxu1 %v6625_v9  ;;  %v6669_v23 = vld [vmem:[#allocation16 + $0x264] ss:$16 sps:$4 sm:$0xff]   ;;  %v6664_v9 = vld [vmem:[#allocation16 + $0x60] ss:$16 sps:$4 sm:$0xff]  }
 0x5bc   :  { %3754 = vmatprep.subr.bf16.mxu0 %v6630_v25  ;;  %3795 = vmatprep.subr.bf16.mxu1 %v6633_v48  ;;  %v6667_v25 = vld [vmem:[#allocation16 + $0x260] ss:$16 sps:$4 sm:$0xff]   ;;  %v6672_v48 = vld [vmem:[#allocation16 + $0x44] ss:$16 sps:$4 sm:$0xff]  }
 0x5bf   :  { %3755 = vmatpush2.bf16.msra.mxu0 %v6628_v12  ;;  %3796 = vmatpush2.bf16.msra.mxu1 %v6631_v49  ;;  %v6675_v12 = vld [vmem:[#allocation16 + $0x244] ss:$16 sps:$4 sm:$0xff]   ;;  %v6670_v49 = vld [vmem:[#allocation16 + $0x40] ss:$16 sps:$4 sm:$0xff]  }
 0x5c0   :  { %3756 = vmatprep.subr.bf16.mxu0 %v6636_v14  ;;  %3797 = vmatprep.subr.bf16.mxu1 %v6639_v19  ;;  %v6673_v14 = vld [vmem:[#allocation16 + $0x240] ss:$16 sps:$4 sm:$0xff]   ;;  %v6678_v19 = vld [vmem:[#allocation16 + $0x24] ss:$16 sps:$4 sm:$0xff]  }
 0x5c3   :  { %3757 = vmatpush2.bf16.msra.mxu0 %v6634_v21  ;;  %3798 = vmatpush2.bf16.msra.mxu1 %v6637_v56  ;;  %v6681_v21 = vld [vmem:[#allocation16 + $0x224] ss:$16 sps:$4 sm:$0xff]   ;;  %v6676_v56 = vld [vmem:[#allocation16 + $0x20] ss:$16 sps:$4 sm:$0xff]  }
 0x5c4   :  { %4748 = vmatprep.subr.bf16.mxu0 %v6642_v60  ;;  %4789 = vmatprep.subr.bf16.mxu1 %v6645_v61  ;;  %v6709_v60 = vld [vmem:[#allocation16 + $0x380] ss:$16 sps:$4 sm:$0xff]   ;;  %v6717_v61 = vld [vmem:[#allocation16 + $0x364] ss:$16 sps:$4 sm:$0xff]  }
 0x5c6   :  { %3759 = vmatmul.mubr.bf16.vlgmr.msra.gmra.mxu0 %v7582_v54  ;;  %3800 = vmatmul.mubr.bf16.vlgmr.msra.gmra.mxu1 %v7585_v20  ;;  %v2995_v20 = vrot.slane %v2982_v17, %v7330_v38  ;;  %v6691_v17 = vld [vmem:[#allocation16 + $0x3e0] ss:$16 sps:$4 sm:$0xff]  }
 0x5c7   :  { %4749 = vmatpush1.bf16.msra.mxu0 %v6640_v35  ;;  %4790 = vmatpush1.bf16.msra.mxu1 %v6643_v36  ;;  %v6706_v35 = vld [vmem:[#allocation16 + $0x180] ss:$16 sps:$4 sm:$0xff]   ;;  %v6714_v36 = vld [vmem:[#allocation16 + $0x164] ss:$16 sps:$4 sm:$0xff]  }
 0x5c8   :  { %4750 = vmatprep.subr.bf16.mxu0 %v6648_v40  ;;  %4791 = vmatprep.subr.bf16.mxu1 %v6651_v42  ;;  %v6712_v40 = vld [vmem:[#allocation16 + $0x160] ss:$16 sps:$4 sm:$0xff]  }
 0x5c9   :  { %v6715_v42 = vld [vmem:[#allocation16 + $0x360] ss:$16 sps:$4 sm:$0xff]  }
 0x5cb   :  { %4751 = vmatpush1.bf16.msra.mxu0 %v6646_v43  ;;  %4792 = vmatpush1.bf16.msra.mxu1 %v6649_v44  ;;  %v6720_v43 = vld [vmem:[#allocation16 + $0x144] ss:$16 sps:$4 sm:$0xff]  }
 0x5cc   :  { %4752 = vmatprep.subr.bf16.mxu0 %v6654_v2  ;;  %4793 = vmatprep.subr.bf16.mxu1 %v6657_v45  ;;  %v6723_v44 = vld [vmem:[#allocation16 + $0x344] ss:$16 sps:$4 sm:$0xff]   ;;  %v6718_v2 = vld [vmem:[#allocation16 + $0x140] ss:$16 sps:$4 sm:$0xff]  }
 0x5cd   :  { %v6721_v45 = vld [vmem:[#allocation16 + $0x340] ss:$16 sps:$4 sm:$0xff]  }
 0x5cf   :  { %4753 = vmatpush1.bf16.msra.mxu0 %v6652_v4  ;;  %4794 = vmatpush1.bf16.msra.mxu1 %v6655_v13  ;;  %v6726_v4 = vld [vmem:[#allocation16 + $0x124] ss:$16 sps:$4 sm:$0xff]  }
 0x5d0   :  { %4754 = vmatprep.subr.bf16.mxu0 %v6660_v8  ;;  %4795 = vmatprep.subr.bf16.mxu1 %v6663_v24  ;;  %v6729_v13 = vld [vmem:[#allocation16 + $0x324] ss:$16 sps:$4 sm:$0xff]   ;;  %v6724_v8 = vld [vmem:[#allocation16 + $0x120] ss:$16 sps:$4 sm:$0xff]  }
 0x5d1   :  { %v6727_v24 = vld [vmem:[#allocation16 + $0x320] ss:$16 sps:$4 sm:$0xff]  }
 0x5d3   :  { %4755 = vmatpush1.bf16.msra.mxu0 %v6658_v46  ;;  %4796 = vmatpush1.bf16.msra.mxu1 %v6661_v11  ;;  %v6732_v46 = vld [vmem:[#allocation16 + $0x104] ss:$16 sps:$4 sm:$0xff]  }
 0x5d4   :  { %4756 = vmatprep.subr.bf16.mxu0 %v6666_v15  ;;  %4797 = vmatprep.subr.bf16.mxu1 %v6669_v23  ;;  %v6735_v11 = vld [vmem:[#allocation16 + $0x304] ss:$16 sps:$4 sm:$0xff]   ;;  %v6730_v15 = vld [vmem:[#allocation16 + $0x100] ss:$16 sps:$4 sm:$0xff]  }
 0x5d5   :  { %v6733_v23 = vld [vmem:[#allocation16 + $0x300] ss:$16 sps:$4 sm:$0xff]  }
 0x5d7   :  { %4757 = vmatpush1.bf16.msra.mxu0 %v6664_v9  ;;  %4798 = vmatpush1.bf16.msra.mxu1 %v6667_v25  ;;  %v6738_v9 = vld [vmem:[#allocation16 + $0xec] ss:$16 sps:$4 sm:$0xff]  }
 0x5d8   :  { %4758 = vmatprep.subr.bf16.mxu0 %v6672_v48  ;;  %4799 = vmatprep.subr.bf16.mxu1 %v6675_v12  ;;  %v6741_v25 = vld [vmem:[#allocation16 + $0x2ec] ss:$16 sps:$4 sm:$0xff]  }
 0x5db   :  { %4759 = vmatpush1.bf16.msra.mxu0 %v6670_v49  ;;  %4800 = vmatpush1.bf16.msra.mxu1 %v6673_v14  ;;  %v3808_v14 = vld [vmem:[%s7732_s11] sm:$0xf] }
 0x5dc   :  { %4760 = vmatprep.subr.bf16.mxu0 %v6678_v19  ;;  %4801 = vmatprep.subr.bf16.mxu1 %v6681_v21  ;;  %v3809_v19 = vld [vmem:[#allocation14] sm:$0xf]  ;;  %v3848_v21 = vrot.slane %v3808_v14, %v7332_v39 }
 0x5df   :  { %4761 = vmatpush1.bf16.msra.mxu0 %v6676_v56  ;;  %v3856_v56 = vrot.slane %v3808_v14, %v7334_v41 }
 0x646   :  { %v3678_v50 = vpop.f32.mrf.mxu0  ;;  %v3719_v31 = vpop.f32.mrf.mxu1 }
 0x647   :  { %v3679_v54 = vadd.f32 %v3678_v50, %v2987_v53  ;;  %v6679_v50 = vld [vmem:[#allocation16 + $0x220] ss:$16 sps:$4 sm:$0xff]  }
 0x648   :  { %v3680_v3 = vpop.f32.mrf.mxu0  ;;  %v3721_v63 = vpop.f32.mrf.mxu1  ;;  %4802 = vmatpush1.bf16.msra.mxu1 %v6679_v50  ;;  %v3844_v50 = vrot.slane %v3808_v14, %v7328_v37 }
 0x649   :  { %v3681_v52 = vadd.f32 %v3680_v3, %v2991_v51  ;;  %v7600_v28 = vadd.f32 %v3719_v31, %v3679_v54  ;;  %v6684_v31 = vld [vmem:[#allocation16 + $0x4] ss:$16 sps:$4 sm:$0xff]  }
 0x64a   :  { %v3682_v1 = vpop.f32.mrf.mxu0  ;;  %v3723_v5 = vpop.f32.mrf.mxu1  ;;  %v6687_v3 = vld [vmem:[#allocation16 + $0x204] ss:$16 sps:$4 sm:$0xff]   ;;  %4762 = vmatprep.subr.bf16.mxu0 %v6684_v31  ;;  %v3852_v31 = vrot.slane %v3808_v14, %v7330_v38  ;;  %v6742_v14 = vld [vmem:[#allocation16 + $0xc8] ss:$16 sps:$4 sm:$0xff]  }
 0x64b   :  { %v7597_v62 = vadd.f32 %v3721_v63, %v3681_v52  ;;  %v6682_v63 = vld [vmem:[#allocation16] ss:$16 sps:$4 sm:$0xff]   ;;  %v6690_v5 = vld [vmem:[#allocation16 + $0x1e4] ss:$16 sps:$4 sm:$0xff]   ;;  %4803 = vmatprep.subr.bf16.mxu1 %v6687_v3  ;;  %v3905_v3 = vrot.slane %v3809_v19, %v7332_v39 }
 0x64c   :  { %v3683_v7 = vpop.f32.mrf.mxu0  ;;  %v3724_v16 = vpop.f32.mrf.mxu1  ;;  %v6685_v1 = vld [vmem:[#allocation16 + $0x200] ss:$16 sps:$4 sm:$0xff]   ;;  %4763 = vmatpush1.bf16.msra.mxu0 %v6682_v63  ;;  %v3913_v63 = vrot.slane %v3809_v19, %v7334_v41 }
 0x64d   :  { %v3810_v32 = vadd.f32 %v7597_v62, %v7600_v28  ;;  %v6693_v7 = vld [vmem:[#allocation16 + $0x3e4] ss:$16 sps:$4 sm:$0xff]   ;;  %v6688_v16 = vld [vmem:[#allocation16 + $0x1e0] ss:$16 sps:$4 sm:$0xff]   ;;  %4804 = vmatpush1.bf16.msra.mxu1 %v6685_v1  ;;  %4764 = vmatprep.subr.bf16.mxu0 %v6690_v5  ;;  %v3901_v1 = vrot.slane %v3809_v19, %v7328_v37  ;;  %v3909_v5 = vrot.slane %v3809_v19, %v7330_v38  ;;  %v6745_v19 = vld [vmem:[#allocation16 + $0x2c8] ss:$16 sps:$4 sm:$0xff]  }
 0x64e   :  { %4805 = vmatprep.subr.bf16.mxu1 %v6693_v7  ;;  %v3862_v7 = vpack.c.bf16 %v3848_v21, %v3848_v21  ;;  %v6750_v21 = vld [vmem:[#allocation16 + $0xac] ss:$16 sps:$4 sm:$0xff]  }
 0x650   :  { %4765 = vmatpush2.bf16.msra.mxu0 %v6688_v16  ;;  %v3864_v16 = vpack.c.bf16 %v3856_v56, %v3856_v56  ;;  %v6753_v56 = vld [vmem:[#allocation16 + $0x2ac] ss:$16 sps:$4 sm:$0xff]  }
 0x651   :  { %4806 = vmatpush2.bf16.msra.mxu1 %v6691_v17  ;;  %v3861_v17 = vpack.c.bf16 %v3844_v50, %v3844_v50  ;;  %v6748_v50 = vld [vmem:[#allocation16 + $0xa8] ss:$16 sps:$4 sm:$0xff]  }
 0x686   :  { %v3760_v27 = vpop.f32.mrf.mxu0  ;;  %v3801_v10 = vpop.f32.mrf.mxu1 }
 0x687   :  { %v3761_v29 = vadd.f32 %v3760_v27, %v2995_v20 }
 0x688   :  { %v3762_v57 = vpop.f32.mrf.mxu0  ;;  %v3803_v47 = vpop.f32.mrf.mxu1 }
 0x689   :  { %v7604_v18 = vadd.f32 %v3801_v10, %v3761_v29  ;;  %v3763_v26 = vadd.f32 %v3762_v57, %v2999_v22 }
 0x68a   :  { %v3764_v30 = vpop.f32.mrf.mxu0  ;;  %v3805_v55 = vpop.f32.mrf.mxu1 }
 0x68b   :  { %v3811_v6 = vadd.f32 %v3810_v32, %v7604_v18  ;;  %v7607_v58 = vadd.f32 %v3803_v47, %v3763_v26  ;;  %v6696_v32 = vld [vmem:[#allocation16 + $0x1c4] ss:$16 sps:$4 sm:$0xff]   ;;  %v6694_v26 = vld [vmem:[#allocation16 + $0x1c0] ss:$16 sps:$4 sm:$0xff]  }
 0x68c   :  { %v3765_v59 = vpop.f32.mrf.mxu0  ;;  %v3806_v33 = vpop.f32.mrf.mxu1  ;;  %v6697_v30 = vld [vmem:[#allocation16 + $0x3c0] ss:$16 sps:$4 sm:$0xff]   ;;  %4766 = vmatprep.subr.bf16.mxu0 %v6696_v32  ;;  %v6702_v55 = vld [vmem:[#allocation16 + $0x1a4] ss:$16 sps:$4 sm:$0xff]  }
 0x68d   :  { %v3812_v34 = vadd.f32 %v3811_v6, %v7607_v58  ;;  %4767 = vmatpush2.bf16.msra.mxu0 %v6694_v26  ;;  %v6705_v6 = vld [vmem:[#allocation16 + $0x3a4] ss:$16 sps:$4 sm:$0xff]   ;;  %v6703_v59 = vld [vmem:[#allocation16 + $0x3a0] ss:$16 sps:$4 sm:$0xff]  }
 0x68e   :  { %4768 = vmatprep.subr.bf16.mxu0 %v6702_v55  ;;  %v6708_v33 = vld [vmem:[#allocation16 + $0x184] ss:$16 sps:$4 sm:$0xff]  }
 0x68f   :  { %3813 = vadd.xlane.f32.xlu0 %v3812_v34  ;;  %v6711_v34 = vld [vmem:[#allocation16 + $0x384] ss:$16 sps:$4 sm:$0xff]  }
 0x718   :  { %v3814_v51 = vpop.xlane.xlu0 %3813 }
 0x719   :  { %v3815_v53 = vmul.f32 0.001953125, %v3814_v51  ;;  %v3863_v51 = vpack.c.bf16 %v3852_v31, %v3852_v31  ;;  %v6751_v31 = vld [vmem:[#allocation16 + $0x2a8] ss:$16 sps:$4 sm:$0xff]  }
 0x71b   :  { %v7611_v52 = vsub.f32 %v7600_v28, %v3815_v53  ;;  %v7614_v54 = vsub.f32 %v7597_v62, %v3815_v53  ;;  %v7617_v20 = vsub.f32 %v7604_v18, %v3815_v53  ;;  %v7620_v22 = vsub.f32 %v7607_v58, %v3815_v53  ;;  %v6699_v18 = vld [vmem:[#allocation16 + $0x3c4] ss:$16 sps:$4 sm:$0xff]   ;;  %v6700_v58 = vld [vmem:[#allocation16 + $0x1a0] ss:$16 sps:$4 sm:$0xff]  }
 0x71c   :  { %4807 = vmatprep.subr.bf16.mxu1 %v6699_v18  ;;  %4769 = vmatpush2.bf16.msra.mxu0 %v6700_v58  ;;  %v3919_v53 = vpack.c.bf16 %v3905_v3, %v3905_v3  ;;  %v6756_v3 = vld [vmem:[#allocation16 + $0x8c] ss:$16 sps:$4 sm:$0xff]  }
 0x71d   :  { %v3820_v27 = vmul.f32 %v7611_v52, %v7611_v52  ;;  %v3821_v10 = vmul.f32 %v7614_v54, %v7614_v54  ;;  %v3822_v29 = vmul.f32 %v7617_v20, %v7617_v20  ;;  %v3823_v62 = vmul.f32 %v7620_v22, %v7620_v22  ;;  %4808 = vmatpush2.bf16.msra.mxu1 %v6697_v30 }
 0x71e   :  { %4809 = vmatprep.subr.bf16.mxu1 %v6705_v6  ;;  %4770 = vmatprep.subr.bf16.mxu0 %v6708_v33  ;;  %v3930_v32 = vpack.i.b16 %v3919_v53, %v3919_v53  ;;  %v6768_v53 = vld [vmem:[#allocation16 + $0x4c] ss:$16 sps:$4 sm:$0xff]  }
 0x71f   :  { %v3824_v28 = vadd.f32 %v3821_v10, %v3820_v27  ;;  %v3921_v27 = vpack.c.bf16 %v3913_v63, %v3913_v63  ;;  %v3918_v10 = vpack.c.bf16 %v3901_v1, %v3901_v1  ;;  %v6759_v63 = vld [vmem:[#allocation16 + $0x28c] ss:$16 sps:$4 sm:$0xff]   ;;  %v6754_v1 = vld [vmem:[#allocation16 + $0x88] ss:$16 sps:$4 sm:$0xff]  }
 0x720   :  { %4771 = vmatpush2.bf16.msra.mxu0 %v6706_v35 }
 0x721   :  { %v3825_v57 = vadd.f32 %v3824_v28, %v3822_v29  ;;  %4810 = vmatpush2.bf16.msra.mxu1 %v6703_v59  ;;  %4772 = vmatprep.subr.bf16.mxu0 %v6714_v36  ;;  %v3920_v29 = vpack.c.bf16 %v3909_v5, %v3909_v5  ;;  %v3873_v28 = vpack.i.b16 %v3862_v7, %v3862_v7  ;;  %v6757_v5 = vld [vmem:[#allocation16 + $0x288] ss:$16 sps:$4 sm:$0xff]   ;;  %v6762_v7 = vld [vmem:[#allocation16 + $0x6c] ss:$16 sps:$4 sm:$0xff]  }
 0x722   :  { %4811 = vmatprep.subr.bf16.mxu1 %v6711_v34  ;;  %v3944_v18 = vpack.i.b16 %v3921_v27, %v3921_v27  ;;  %v3923_v26 = vpack.i.b16 %v3918_v10, %v3918_v10  ;;  %v6771_v27 = vld [vmem:[#allocation16 + $0x24c] ss:$16 sps:$4 sm:$0xff]   ;;  %v6766_v10 = vld [vmem:[#allocation16 + $0x48] ss:$16 sps:$4 sm:$0xff]  }
 0x723   :  { %v3826_v47 = vadd.f32 %v3825_v57, %v3823_v62  ;;  %v3887_v62 = vpack.i.b16 %v3864_v16, %v3864_v16  ;;  %v3866_v57 = vpack.i.b16 %v3861_v17, %v3861_v17  ;;  %v3937_v30 = vpack.i.b16 %v3920_v29, %v3920_v29  ;;  %v6765_v16 = vld [vmem:[#allocation16 + $0x26c] ss:$16 sps:$4 sm:$0xff]   ;;  %v6760_v17 = vld [vmem:[#allocation16 + $0x68] ss:$16 sps:$4 sm:$0xff]  }
 0x724   :  { %4773 = vmatpush2.bf16.msra.mxu0 %v6712_v40  ;;  %v3878_v6 = vrot.slane %v3873_v28, %v7328_v37  ;;  %v3949_v40 = vrot.slane %v3944_v18, %v7328_v37  ;;  %v6769_v29 = vld [vmem:[#allocation16 + $0x248] ss:$16 sps:$4 sm:$0xff]   ;;  %v6774_v28 = vld [vmem:[#allocation16 + $0x2c] ss:$16 sps:$4 sm:$0xff]  }
 0x725   :  { %3827 = vadd.xlane.f32.xlu1 %v3826_v47  ;;  %4812 = vmatpush2.bf16.msra.mxu1 %v6709_v60  ;;  %v3880_v47 = vpack.i.b16 %v3863_v51, %v3863_v51  ;;  %v3892_v58 = vrot.slane %v3887_v62, %v7328_v37  ;;  %v3871_v59 = vrot.slane %v3866_v57, %v7328_v37  ;;  %v6763_v51 = vld [vmem:[#allocation16 + $0x268] ss:$16 sps:$4 sm:$0xff]   ;;  %v6777_v62 = vld [vmem:[#allocation16 + $0x22c] ss:$16 sps:$4 sm:$0xff]  }
 0x726   :  { %4813 = vmatprep.subr.bf16.mxu1 %v6717_v61  ;;  %4774 = vmatprep.subr.bf16.mxu0 %v6720_v43  ;;  %v3935_v61 = vrot.slane %v3930_v32, %v7328_v37  ;;  %v3942_v43 = vrot.slane %v3937_v30, %v7328_v37  ;;  %v6772_v57 = vld [vmem:[#allocation16 + $0x28] ss:$16 sps:$4 sm:$0xff]   ;;  %v6780_v32 = vld [vmem:[#allocation16 + $0xc] ss:$16 sps:$4 sm:$0xff]  }
 0x727   :  { %v3885_v33 = vrot.slane %v3880_v47, %v7328_v37  ;;  %v6775_v47 = vld [vmem:[#allocation16 + $0x228] ss:$16 sps:$4 sm:$0xff]   ;;  %v6783_v18 = vld [vmem:[#allocation16 + $0x20c] ss:$16 sps:$4 sm:$0xff]  }
 0x728   :  { %4775 = vmatpush2.bf16.msra.mxu0 %v6718_v2  ;;  %v6781_v30 = vld [vmem:[#allocation16 + $0x208] ss:$16 sps:$4 sm:$0xff]  }
 0x729   :  { %4814 = vmatpush2.bf16.msra.mxu1 %v6715_v42  ;;  %4776 = vmatprep.subr.bf16.mxu0 %v6726_v4  ;;  %v3928_v42 = vrot.slane %v3923_v26, %v7328_v37  ;;  %v6778_v26 = vld [vmem:[#allocation16 + $0x8] ss:$16 sps:$4 sm:$0xff]  }
 0x72a   :  { %4815 = vmatprep.subr.bf16.mxu1 %v6723_v44 }
 0x72c   :  { %4777 = vmatpush2.bf16.msra.mxu0 %v6724_v8 }
 0x72d   :  { %4816 = vmatpush2.bf16.msra.mxu1 %v6721_v45  ;;  %4778 = vmatprep.subr.bf16.mxu0 %v6732_v46 }
 0x72e   :  { %4817 = vmatprep.subr.bf16.mxu1 %v6729_v13 }
 0x730   :  { %4779 = vmatpush2.bf16.msra.mxu0 %v6730_v15 }
 0x731   :  { %4818 = vmatpush2.bf16.msra.mxu1 %v6727_v24  ;;  %4830 = vmatprep.subr.bf16.mxu0 %v6738_v9  ;;  %v6739_v9 = vld [vmem:[#allocation16 + $0x2e8] ss:$16 sps:$4 sm:$0xff]  }
 0x732   :  { %4819 = vmatprep.subr.bf16.mxu1 %v6735_v11 }
 0x735   :  { %4820 = vmatpush2.bf16.msra.mxu1 %v6733_v23  ;;  %v6736_v23 = vld [vmem:[#allocation16 + $0xe8] ss:$16 sps:$4 sm:$0xff]  }
 0x736   :  { %4871 = vmatprep.subr.bf16.mxu1 %v6741_v25 }
 0x7ae   :  { %v3828_v48 = vpop.xlane.xlu1 %3827 }
 0x7af   :  { %v3829_v12 = vmul.f32 0.001953125, %v3828_v48 }
 0x7b1   :  { %v3830_v49 = vadd.f32 1e-05, %v3829_v12  ;;  %v6744_v12 = vld [vmem:[#allocation16 + $0xcc] ss:$16 sps:$4 sm:$0xff]  }
 0x7b3   :  { %6868 = vrsqrt.f32 %v3830_v49  ;;  %v6747_v49 = vld [vmem:[#allocation16 + $0x2cc] ss:$16 sps:$4 sm:$0xff]  }
 0x7c0   :  { %v6869_v55 = vpop.eup %6868 }
 0x7c1   :  { %v3833_v34 = vmul.f32 %v6869_v55, %v7614_v54  ;;  %v3835_v35 = vmul.f32 %v6869_v55, %v7620_v22  ;;  %v3832_v60 = vmul.f32 %v6869_v55, %v7611_v52  ;;  %v3834_v36 = vmul.f32 %v6869_v55, %v7617_v20  ;;  %v6786_v55 = vld [vmem:[#allocation16 + $0x1ec] ss:$16 sps:$4 sm:$0xff]  }
 0x7c3   :  { %v3837_v44 = vpack.c.bf16 %v3833_v34, %v3833_v34  ;;  %v3839_v2 = vpack.c.bf16 %v3835_v35, %v3835_v35  ;;  %v3836_v45 = vpack.c.bf16 %v3832_v60, %v3832_v60  ;;  %v3838_v4 = vpack.c.bf16 %v3834_v36, %v3834_v36  ;;  %v6795_v34 = vld [vmem:[#allocation16 + $0x3cc] ss:$16 sps:$4 sm:$0xff]   ;;  %v6790_v35 = vld [vmem:[#allocation16 + $0x1c8] ss:$16 sps:$4 sm:$0xff]  }
 0x7c4   :  { %v6793_v60 = vld [vmem:[#allocation16 + $0x3c8] ss:$16 sps:$4 sm:$0xff]   ;;  %v6798_v36 = vld [vmem:[#allocation16 + $0x1ac] ss:$16 sps:$4 sm:$0xff]  }
 0x7c5   :  { %v3894_v13 = vmul.bf16 %v3878_v6, %v3837_v44  ;;  %v3896_v54 = vmul.bf16 %v3892_v58, %v3839_v2  ;;  %v3893_v8 = vmul.bf16 %v3871_v59, %v3836_v45  ;;  %v3895_v22 = vmul.bf16 %v3885_v33, %v3838_v4  ;;  %v6789_v6 = vld [vmem:[#allocation16 + $0x3ec] ss:$16 sps:$4 sm:$0xff]   ;;  %v6784_v58 = vld [vmem:[#allocation16 + $0x1e8] ss:$16 sps:$4 sm:$0xff]  }
 0x7c6   :  { %v6787_v59 = vld [vmem:[#allocation16 + $0x3e8] ss:$16 sps:$4 sm:$0xff]   ;;  %v6792_v33 = vld [vmem:[#allocation16 + $0x1cc] ss:$16 sps:$4 sm:$0xff]  }
 0x7c7   :  { %v3951_v24 = vadd.bf16 %v3935_v61, %v3894_v13  ;;  %v3953_v52 = vadd.bf16 %v3949_v40, %v3896_v54  ;;  %v3950_v46 = vadd.bf16 %v3928_v42, %v3893_v8  ;;  %v3952_v20 = vadd.bf16 %v3942_v43, %v3895_v22  ;;  %v6801_v61 = vld [vmem:[#allocation16 + $0x3ac] ss:$16 sps:$4 sm:$0xff]   ;;  %v6796_v40 = vld [vmem:[#allocation16 + $0x1a8] ss:$16 sps:$4 sm:$0xff]  }
 0x7c8   :  { %v6799_v42 = vld [vmem:[#allocation16 + $0x3a8] ss:$16 sps:$4 sm:$0xff]   ;;  %v6804_v43 = vld [vmem:[#allocation16 + $0x18c] ss:$16 sps:$4 sm:$0xff]  }
 0x7c9   :  { %v3955_v11 = vmax.bf16 %v7168_v0, %v3951_v24  ;;  %v3957_v15 = vmax.bf16 %v7168_v0, %v3953_v52  ;;  %v7656_v25 = vmax.bf16 %v7168_v0, %v3950_v46  ;;  %v7659_v48 = vmax.bf16 %v7168_v0, %v3952_v20  ;;  %v6807_v44 = vld [vmem:[#allocation16 + $0x38c] ss:$16 sps:$4 sm:$0xff]   ;;  %v6802_v2 = vld [vmem:[#allocation16 + $0x188] ss:$16 sps:$4 sm:$0xff]  }
 0x7ca   :  { %v6805_v45 = vld [vmem:[#allocation16 + $0x388] ss:$16 sps:$4 sm:$0xff]   ;;  %v6810_v4 = vld [vmem:[#allocation16 + $0x16c] ss:$16 sps:$4 sm:$0xff]  }
 0x7cb   :  { %4780 = vmatprep.mubr.bf16.mxu0 %v3955_v11  ;;  %4821 = vmatprep.mubr.bf16.mxu1 %v3957_v15  ;;  %v6813_v13 = vld [vmem:[#allocation16 + $0x36c] ss:$16 sps:$4 sm:$0xff]   ;;  %v6808_v54 = vld [vmem:[#allocation16 + $0x168] ss:$16 sps:$4 sm:$0xff]  }
 0x7cc   :  { %4781 = vmatmul.mubr.bf16.vlgmr.msra.gmra.mxu0 %v7656_v25  ;;  %4822 = vmatmul.mubr.bf16.vlgmr.msra.gmra.mxu1 %v7659_v48  ;;  %v6811_v8 = vld [vmem:[#allocation16 + $0x368] ss:$16 sps:$4 sm:$0xff]   ;;  %v6816_v22 = vld [vmem:[#allocation16 + $0x14c] ss:$16 sps:$4 sm:$0xff]  }
 0x7cd   :  { %4831 = vmatpush1.bf16.msra.mxu0 %v6736_v23  ;;  %4872 = vmatpush1.bf16.msra.mxu1 %v6739_v9  ;;  %v6819_v24 = vld [vmem:[#allocation16 + $0x34c] ss:$16 sps:$4 sm:$0xff]   ;;  %v6814_v52 = vld [vmem:[#allocation16 + $0x148] ss:$16 sps:$4 sm:$0xff]  }
 0x7ce   :  { %4862 = vmatprep.mubr.bf16.mxu0 %v3955_v11  ;;  %4903 = vmatprep.mubr.bf16.mxu1 %v3957_v15  ;;  %v6817_v46 = vld [vmem:[#allocation16 + $0x348] ss:$16 sps:$4 sm:$0xff]   ;;  %v6822_v20 = vld [vmem:[#allocation16 + $0x12c] ss:$16 sps:$4 sm:$0xff]  }
 0x7cf   :  { %4832 = vmatprep.subr.bf16.mxu0 %v6744_v12  ;;  %4873 = vmatprep.subr.bf16.mxu1 %v6747_v49  ;;  %v6825_v11 = vld [vmem:[#allocation16 + $0x32c] ss:$16 sps:$4 sm:$0xff]   ;;  %v6820_v15 = vld [vmem:[#allocation16 + $0x128] ss:$16 sps:$4 sm:$0xff]  }
 0x7d0   :  { %v6823_v23 = vld [vmem:[#allocation16 + $0x328] ss:$16 sps:$4 sm:$0xff]   ;;  %v6828_v9 = vld [vmem:[#allocation16 + $0x10c] ss:$16 sps:$4 sm:$0xff]  }
 0x7d1   :  { %4833 = vmatpush1.bf16.msra.mxu0 %v6742_v14  ;;  %4874 = vmatpush1.bf16.msra.mxu1 %v6745_v19  ;;  %v6831_v12 = vld [vmem:[#allocation16 + $0x30c] ss:$16 sps:$4 sm:$0xff]   ;;  %v6826_v49 = vld [vmem:[#allocation16 + $0x108] ss:$16 sps:$4 sm:$0xff]  }
 0x7d2   :  { %4834 = vmatprep.subr.bf16.mxu0 %v6750_v21  ;;  %4875 = vmatprep.subr.bf16.mxu1 %v6753_v56  ;;  %v6829_v14 = vld [vmem:[#allocation16 + $0x308] ss:$16 sps:$4 sm:$0xff]   ;;  %v4086_v19 = vld [vmem:[%s7735_s14] sm:$0xf] }
 0x7d3   :  { %v4091_v21 = vrot.slane %v4086_v19, %v7328_v37  ;;  %v4095_v56 = vrot.slane %v4086_v19, %v7332_v39 }
 0x7d5   :  { %4835 = vmatpush1.bf16.msra.mxu0 %v6748_v50  ;;  %4876 = vmatpush1.bf16.msra.mxu1 %v6751_v31 }
 0x7d6   :  { %4836 = vmatprep.subr.bf16.mxu0 %v6756_v3  ;;  %4877 = vmatprep.subr.bf16.mxu1 %v6759_v63 }
 0x7d9   :  { %4837 = vmatpush1.bf16.msra.mxu0 %v6754_v1  ;;  %4878 = vmatpush1.bf16.msra.mxu1 %v6757_v5 }
 0x7da   :  { %4838 = vmatprep.subr.bf16.mxu0 %v6762_v7  ;;  %4879 = vmatprep.subr.bf16.mxu1 %v6765_v16 }
 0x7dd   :  { %4839 = vmatpush1.bf16.msra.mxu0 %v6760_v17  ;;  %4880 = vmatpush1.bf16.msra.mxu1 %v6763_v51 }
 0x7de   :  { %4840 = vmatprep.subr.bf16.mxu0 %v6768_v53  ;;  %4881 = vmatprep.subr.bf16.mxu1 %v6771_v27  ;;  %v4099_v27 = vrot.slane %v4086_v19, %v7330_v38 }
 0x7e1   :  { %4841 = vmatpush1.bf16.msra.mxu0 %v6766_v10  ;;  %4882 = vmatpush1.bf16.msra.mxu1 %v6769_v29  ;;  %v4103_v10 = vrot.slane %v4086_v19, %v7334_v41 }
 0x7e2   :  { %4842 = vmatprep.subr.bf16.mxu0 %v6774_v28  ;;  %4883 = vmatprep.subr.bf16.mxu1 %v6777_v62 }
 0x7e5   :  { %4843 = vmatpush1.bf16.msra.mxu0 %v6772_v57  ;;  %4884 = vmatpush1.bf16.msra.mxu1 %v6775_v47 }
 0x7e6   :  { %4844 = vmatprep.subr.bf16.mxu0 %v6780_v32  ;;  %4885 = vmatprep.subr.bf16.mxu1 %v6783_v18 }
 0x7e9   :  { %4845 = vmatpush1.bf16.msra.mxu0 %v6778_v26  ;;  %4886 = vmatpush1.bf16.msra.mxu1 %v6781_v30 }
 0x7ea   :  { %4846 = vmatprep.subr.bf16.mxu0 %v6786_v55  ;;  %4887 = vmatprep.subr.bf16.mxu1 %v6789_v6 }
 0x7ed   :  { %4847 = vmatpush2.bf16.msra.mxu0 %v6784_v58  ;;  %4888 = vmatpush2.bf16.msra.mxu1 %v6787_v59 }
 0x7ee   :  { %4848 = vmatprep.subr.bf16.mxu0 %v6792_v33  ;;  %4889 = vmatprep.subr.bf16.mxu1 %v6795_v34  ;;  %v6832_v33 = vld [vmem:[#allocation19 + $0x78] sm:$0xff]  }
 0x7ef   :  { %v6833_v34 = vld [vmem:[#allocation19 + $0x38] sm:$0xff]  }
 0x7f1   :  { %4849 = vmatpush2.bf16.msra.mxu0 %v6790_v35  ;;  %4890 = vmatpush2.bf16.msra.mxu1 %v6793_v60 }
 0x7f2   :  { %4850 = vmatprep.subr.bf16.mxu0 %v6798_v36  ;;  %4891 = vmatprep.subr.bf16.mxu1 %v6801_v61 }
 0x7f5   :  { %4851 = vmatpush2.bf16.msra.mxu0 %v6796_v40  ;;  %4892 = vmatpush2.bf16.msra.mxu1 %v6799_v42 }
 0x7f6   :  { %4852 = vmatprep.subr.bf16.mxu0 %v6804_v43  ;;  %4893 = vmatprep.subr.bf16.mxu1 %v6807_v44  ;;  %v6834_v44 = vld [vmem:[#allocation19 + $0x70] sm:$0xff]  }
 0x7f9   :  { %4853 = vmatpush2.bf16.msra.mxu0 %v6802_v2  ;;  %4894 = vmatpush2.bf16.msra.mxu1 %v6805_v45  ;;  %v6835_v2 = vld [vmem:[#allocation19 + $0x30] sm:$0xff]   ;;  %v6836_v45 = vld [vmem:[#allocation19 + $0x68] sm:$0xff]  }
 0x7fa   :  { %4854 = vmatprep.subr.bf16.mxu0 %v6810_v4  ;;  %4895 = vmatprep.subr.bf16.mxu1 %v6813_v13  ;;  %v6837_v4 = vld [vmem:[#allocation19 + $0x28] sm:$0xff]   ;;  %v6838_v13 = vld [vmem:[#allocation19 + $0x60] sm:$0xff]  }
 0x7fd   :  { %4855 = vmatpush2.bf16.msra.mxu0 %v6808_v54  ;;  %4896 = vmatpush2.bf16.msra.mxu1 %v6811_v8  ;;  %v6839_v54 = vld [vmem:[#allocation19 + $0x20] sm:$0xff]   ;;  %v6840_v8 = vld [vmem:[#allocation19 + $0x58] sm:$0xff]  }
 0x7fe   :  { %4856 = vmatprep.subr.bf16.mxu0 %v6816_v22  ;;  %4897 = vmatprep.subr.bf16.mxu1 %v6819_v24  ;;  %v6841_v22 = vld [vmem:[#allocation19 + $0x18] sm:$0xff]   ;;  %v6842_v24 = vld [vmem:[#allocation19 + $0x50] sm:$0xff]  }
 0x801   :  { %4857 = vmatpush2.bf16.msra.mxu0 %v6814_v52  ;;  %4898 = vmatpush2.bf16.msra.mxu1 %v6817_v46  ;;  %v6843_v52 = vld [vmem:[#allocation19 + $0x10] sm:$0xff]   ;;  %v6844_v46 = vld [vmem:[#allocation19 + $0x48] sm:$0xff]  }
 0x802   :  { %4858 = vmatprep.subr.bf16.mxu0 %v6822_v20  ;;  %4899 = vmatprep.subr.bf16.mxu1 %v6825_v11  ;;  %v6845_v20 = vld [vmem:[#allocation19 + $0x8] sm:$0xff]   ;;  %v6846_v11 = vld [vmem:[#allocation19 + $0x40] sm:$0xff]  }
 0x805   :  { %4859 = vmatpush2.bf16.msra.mxu0 %v6820_v15  ;;  %4900 = vmatpush2.bf16.msra.mxu1 %v6823_v23  ;;  %v6847_v15 = vld [vmem:[#allocation19] sm:$0xff]   ;;  %v6848_v23 = vld [vmem:[#allocation20 + $0x78] sm:$0xff]  }
 0x806   :  { %4860 = vmatprep.subr.bf16.mxu0 %v6828_v9  ;;  %4901 = vmatprep.subr.bf16.mxu1 %v6831_v12  ;;  %v6849_v9 = vld [vmem:[#allocation20 + $0x38] sm:$0xff]  }
 0x809   :  { %4861 = vmatpush2.bf16.msra.mxu0 %v6826_v49  ;;  %4902 = vmatpush2.bf16.msra.mxu1 %v6829_v14 }
 0x80a   :  { %6022 = vmatprep.subr.bf16.mxu1 %v6832_v33  ;;  %6000 = vmatprep.subr.bf16.mxu0 %v6848_v23 }
 0x80c   :  { %4863 = vmatmul.mubr.bf16.vlgmr.msra.gmra.mxu0 %v7656_v25  ;;  %4904 = vmatmul.mubr.bf16.vlgmr.msra.gmra.mxu1 %v7659_v48 }
 0x80d   :  { %6023 = vmatpush3.bf16.msra.mxu1 %v6833_v34  ;;  %6001 = vmatpush3.bf16.msra.mxu0 %v6849_v9 }
 0x80e   :  { %6024 = vmatprep.subr.bf16.mxu1 %v6834_v44 }
 0x811   :  { %6025 = vmatpush3.bf16.msra.mxu1 %v6835_v2 }
 0x812   :  { %6026 = vmatprep.subr.bf16.mxu1 %v6836_v45 }
 0x815   :  { %6027 = vmatpush3.bf16.msra.mxu1 %v6837_v4 }
 0x816   :  { %6028 = vmatprep.subr.bf16.mxu1 %v6838_v13 }
 0x819   :  { %6029 = vmatpush3.bf16.msra.mxu1 %v6839_v54 }
 0x81a   :  { %6030 = vmatprep.subr.bf16.mxu1 %v6840_v8 }
 0x81d   :  { %6031 = vmatpush3.bf16.msra.mxu1 %v6841_v22 }
 0x81e   :  { %6032 = vmatprep.subr.bf16.mxu1 %v6842_v24 }
 0x821   :  { %6033 = vmatpush3.bf16.msra.mxu1 %v6843_v52 }
 0x822   :  { %6034 = vmatprep.subr.bf16.mxu1 %v6844_v46 }
 0x825   :  { %6035 = vmatpush3.bf16.msra.mxu1 %v6845_v20 }
 0x826   :  { %6036 = vmatprep.subr.bf16.mxu1 %v6846_v11 }
 0x829   :  { %6037 = vmatpush3.bf16.msra.mxu1 %v6847_v15 }
 0x88c   :  { %v4782_v50 = vpop.f32.mrf.mxu0  ;;  %v4823_v31 = vpop.f32.mrf.mxu1 }
 0x88d   :  { %v4783_v3 = vadd.f32 %v4782_v50, %v4091_v21 }
 0x88e   :  { %v4784_v63 = vpop.f32.mrf.mxu0  ;;  %v4825_v1 = vpop.f32.mrf.mxu1 }
 0x88f   :  { %v4785_v5 = vadd.f32 %v4784_v63, %v4095_v56  ;;  %v4824_v17 = vadd.f32 %v4823_v31, %v4783_v3  ;;  %v6850_v31 = vld [vmem:[#allocation20 + $0x70] sm:$0xff]   ;;  %v6852_v63 = vld [vmem:[#allocation20 + $0x68] sm:$0xff]  }
 0x890   :  { %v4786_v7 = vpop.f32.mrf.mxu0  ;;  %v4827_v16 = vpop.f32.mrf.mxu1  ;;  %v6851_v3 = vld [vmem:[#allocation20 + $0x30] sm:$0xff]   ;;  %6002 = vmatprep.subr.bf16.mxu0 %v6850_v31 }
 0x891   :  { %v4826_v25 = vadd.f32 %v4825_v1, %v4785_v5  ;;  %6003 = vmatpush3.bf16.msra.mxu0 %v6851_v3  ;;  %v6853_v1 = vld [vmem:[#allocation20 + $0x28] sm:$0xff]   ;;  %v6854_v5 = vld [vmem:[#allocation20 + $0x60] sm:$0xff]   ;;  %v6856_v16 = vld [vmem:[#allocation20 + $0x58] sm:$0xff]  }
 0x892   :  { %v4787_v51 = vpop.f32.mrf.mxu0  ;;  %v4828_v48 = vpop.f32.mrf.mxu1  ;;  %6004 = vmatprep.subr.bf16.mxu0 %v6852_v63  ;;  %v6855_v7 = vld [vmem:[#allocation20 + $0x20] sm:$0xff]  }
 0x893   :  { %v4914_v53 = vadd.f32 %v4826_v25, %v4824_v17  ;;  %v6859_v51 = vld [vmem:[#allocation20 + $0x10] sm:$0xff]   ;;  %v6860_v48 = vld [vmem:[#allocation20 + $0x48] sm:$0xff]  }
 0x895   :  { %4915 = vadd.xlane.f32.xlu0 %v4914_v53  ;;  %6005 = vmatpush3.bf16.msra.mxu0 %v6853_v1  ;;  %v6861_v53 = vld [vmem:[#allocation20 + $0x8] sm:$0xff]  }
 0x896   :  { %6006 = vmatprep.subr.bf16.mxu0 %v6854_v5 }
 0x899   :  { %6007 = vmatpush3.bf16.msra.mxu0 %v6855_v7 }
 0x89a   :  { %6008 = vmatprep.subr.bf16.mxu0 %v6856_v16 }
 0x8cc   :  { %v4864_v29 = vpop.f32.mrf.mxu0  ;;  %v4905_v28 = vpop.f32.mrf.mxu1 }
 0x8cd   :  { %v4865_v62 = vadd.f32 %v4864_v29, %v4099_v27  ;;  %v6862_v27 = vld [vmem:[#allocation20 + $0x40] sm:$0xff]  }
 0x8ce   :  { %v4866_v57 = vpop.f32.mrf.mxu0  ;;  %v4907_v47 = vpop.f32.mrf.mxu1 }
 0x8cf   :  { %v4867_v32 = vadd.f32 %v4866_v57, %v4103_v10  ;;  %v4906_v30 = vadd.f32 %v4905_v28, %v4865_v62  ;;  %v6863_v10 = vld [vmem:[#allocation20] sm:$0xff]   ;;  %v4912_v57 = vld [vmem:[#allocation17] sm:$0xf] }
 0x8d0   :  { %v4868_v18 = vpop.f32.mrf.mxu0  ;;  %v4909_v26 = vpop.f32.mrf.mxu1  ;;  %v5018_v11 = vrot.slane %v4912_v57, %v7334_v41  ;;  %v5014_v15 = vrot.slane %v4912_v57, %v7330_v38 }
 0x8d1   :  { %v4908_v55 = vadd.f32 %v4907_v47, %v4867_v32  ;;  %v4913_v47 = vld [vmem:[%s7737_s16] sm:$0xf]  ;;  %v4941_v32 = vrot.slane %v4912_v57, %v7332_v39  ;;  %v4937_v18 = vrot.slane %v4912_v57, %v7328_v37 }
 0x8d2   :  { %v4869_v6 = vpop.f32.mrf.mxu0  ;;  %v4910_v58 = vpop.f32.mrf.mxu1  ;;  %v4970_v26 = vrot.slane %v4913_v47, %v7332_v39  ;;  %v5046_v23 = vrot.slane %v4913_v47, %v7334_v41  ;;  %v5042_v9 = vrot.slane %v4913_v47, %v7330_v38 }
 0x8d3   :  { %v4993_v59 = vadd.f32 %v4908_v55, %v4906_v30  ;;  %v4944_v6 = vpack.c.bf16 %v4937_v18, %v4937_v18 }
 0x8d4   :  { %v4974_v58 = vpack.c.bf16 %v4970_v26, %v4970_v26 }
 0x8d5   :  { %4994 = vadd.xlane.f32.xlu1 %v4993_v59  ;;  %v4947_v34 = vpack.i.b16 %v4944_v6, %v4944_v6 }
 0x8d7   :  { %v4952_v2 = vrot.slane %v4947_v34, %v7328_v37 }
 0x91e   :  { %v4916_v35 = vpop.xlane.xlu0 %4915 }
 0x91f   :  { %v4918_v60 = vmul.f32 0.00390625, %v4916_v35  ;;  %v4983_v35 = vpack.i.b16 %v4974_v58, %v4974_v58 }
 0x921   :  { %v7672_v36 = vsub.f32 %v4824_v17, %v4918_v60  ;;  %v7674_v61 = vsub.f32 %v4826_v25, %v4918_v60  ;;  %v6857_v17 = vld [vmem:[#allocation20 + $0x18] sm:$0xff]   ;;  %v6858_v25 = vld [vmem:[#allocation20 + $0x50] sm:$0xff]   ;;  %v4988_v45 = vrot.slane %v4983_v35, %v7328_v37 }
 0x922   :  { %6009 = vmatpush3.bf16.msra.mxu0 %v6857_v17 }
 0x923   :  { %v4921_v40 = vmul.f32 %v7672_v36, %v7672_v36  ;;  %v4922_v42 = vmul.f32 %v7674_v61, %v7674_v61  ;;  %6010 = vmatprep.subr.bf16.mxu0 %v6858_v25 }
 0x925   :  { %v4923_v43 = vadd.f32 %v4922_v42, %v4921_v40 }
 0x926   :  { %6011 = vmatpush3.bf16.msra.mxu0 %v6859_v51 }
 0x927   :  { %4924 = vadd.xlane.f32.xlu0 %v4923_v43  ;;  %6012 = vmatprep.subr.bf16.mxu0 %v6860_v48 }
 0x92a   :  { %6013 = vmatpush3.bf16.msra.mxu0 %v6861_v53 }
 0x92b   :  { %6014 = vmatprep.subr.bf16.mxu0 %v6862_v27 }
 0x92e   :  { %6015 = vmatpush3.bf16.msra.mxu0 %v6863_v10 }
 0x95e   :  { %v4995_v12 = vpop.xlane.xlu1 %4994 }
 0x95f   :  { %v4996_v49 = vmul.f32 0.00390625, %v4995_v12  ;;  %v5022_v12 = vpack.c.bf16 %v5018_v11, %v5018_v11 }
 0x961   :  { %v7680_v14 = vsub.f32 %v4906_v30, %v4996_v49  ;;  %v7682_v19 = vsub.f32 %v4908_v55, %v4996_v49  ;;  %v4966_v30 = vrot.slane %v4913_v47, %v7328_v37  ;;  %v4945_v55 = vpack.c.bf16 %v4941_v32, %v4941_v32 }
 0x962   :  { %v5021_v49 = vpack.c.bf16 %v5014_v15, %v5014_v15 }
 0x963   :  { %v4999_v21 = vmul.f32 %v7680_v14, %v7680_v14  ;;  %v5000_v56 = vmul.f32 %v7682_v19, %v7682_v19  ;;  %v4973_v59 = vpack.c.bf16 %v4966_v30, %v4966_v30  ;;  %v4954_v33 = vpack.i.b16 %v4945_v55, %v4945_v55 }
 0x964   :  { %v5024_v31 = vpack.i.b16 %v5021_v49, %v5021_v49 }
 0x965   :  { %v5001_v50 = vadd.f32 %v5000_v56, %v4999_v21  ;;  %v4976_v60 = vpack.i.b16 %v4973_v59, %v4973_v59  ;;  %v4959_v43 = vrot.slane %v4954_v33, %v7328_v37  ;;  %v5050_v21 = vpack.c.bf16 %v5046_v23, %v5046_v23 }
 0x966   :  { %v5049_v56 = vpack.c.bf16 %v5042_v9, %v5042_v9  ;;  %v5029_v17 = vrot.slane %v5024_v31, %v7328_v37 }
 0x967   :  { %5002 = vadd.xlane.f32.xlu1 %v5001_v50  ;;  %v4981_v13 = vrot.slane %v4976_v60, %v7328_v37  ;;  %v5031_v50 = vpack.i.b16 %v5022_v12, %v5022_v12  ;;  %v5059_v3 = vpack.i.b16 %v5050_v21, %v5050_v21 }
 0x968   :  { %v5052_v63 = vpack.i.b16 %v5049_v56, %v5049_v56 }
 0x969   :  { %v5036_v7 = vrot.slane %v5031_v50, %v7328_v37  ;;  %v5064_v38 = vrot.slane %v5059_v3, %v7328_v37 }
 0x96a   :  { %v5057_v51 = vrot.slane %v5052_v63, %v7328_v37  ;;  %v5999_v37 = vld [vmem:[%s7740_s19] ss:$0 sm:$0xff] }
 0x9b0   :  { %v4925_v29 = vpop.xlane.xlu0 %4924 }
 0x9b1   :  { %v4926_v28 = vmul.f32 0.00390625, %v4925_v29 }
 0x9b3   :  { %v4927_v62 = vadd.f32 1e-05, %v4926_v28 }
 0x9b5   :  { %6870 = vrsqrt.f32 %v4927_v62 }
 0x9c2   :  { %v6871_v40 = vpop.eup %6870 }
 0x9c3   :  { %v4930_v42 = vmul.f32 %v6871_v40, %v7674_v61  ;;  %v4929_v44 = vmul.f32 %v6871_v40, %v7672_v36 }
 0x9c5   :  { %v4932_v39 = vpack.c.bf16 %v4930_v42, %v4930_v42  ;;  %v4931_v4 = vpack.c.bf16 %v4929_v44, %v4929_v44 }
 0x9c7   :  { %v4961_v54 = vmul.bf16 %v4959_v43, %v4932_v39  ;;  %v4960_v8 = vmul.bf16 %v4952_v2, %v4931_v4 }
 0x9c9   :  { %v4990_v22 = vadd.bf16 %v4988_v45, %v4961_v54  ;;  %v4989_v24 = vadd.bf16 %v4981_v13, %v4960_v8 }
 0x9cb   :  { %v4992_v52 = vmax.bf16 %v7168_v0, %v4990_v22  ;;  %v4991_v61 = vmax.bf16 %v7168_v0, %v4989_v24 }
 0x9cd   :  { %5397 = vmatprep.mubr.bf16.mxu1 %v4992_v52 }
 0x9ce   :  { %5398 = vmatmul.mubr.bf16.vlgmr.msra.gmra.mxu1 %v4991_v61 }
 0x9f0   :  { %v5003_v46 = vpop.xlane.xlu1 %5002 }
 0x9f1   :  { %v5004_v36 = vmul.f32 0.00390625, %v5003_v46 }
 0x9f3   :  { %v5005_v20 = vadd.f32 1e-05, %v5004_v36 }
 0x9f5   :  { %6872 = vrsqrt.f32 %v5005_v20 }
 0xa02   :  { %v6873_v1 = vpop.eup %6872 }
 0xa03   :  { %v5008_v5 = vmul.f32 %v6873_v1, %v7682_v19  ;;  %v5007_v16 = vmul.f32 %v6873_v1, %v7680_v14 }
 0xa05   :  { %v5010_v41 = vpack.c.bf16 %v5008_v5, %v5008_v5  ;;  %v5009_v25 = vpack.c.bf16 %v5007_v16, %v5007_v16 }
 0xa07   :  { %v5038_v48 = vmul.bf16 %v5036_v7, %v5010_v41  ;;  %v5037_v53 = vmul.bf16 %v5029_v17, %v5009_v25 }
 0xa09   :  { %v5066_v27 = vadd.bf16 %v5064_v38, %v5038_v48  ;;  %v5065_v10 = vadd.bf16 %v5057_v51, %v5037_v53 }
 0xa0b   :  { %v5068_v29 = vmax.bf16 %v7168_v0, %v5066_v27  ;;  %v5067_v19 = vmax.bf16 %v7168_v0, %v5065_v10 }
 0xa0d   :  { %5261 = vmatprep.mubr.bf16.mxu0 %v5068_v29 }
 0xa0e   :  { %5262 = vmatmul.mubr.bf16.vlgmr.msra.gmra.mxu0 %v5067_v19 }
 0xa8e   :  { %v6038_v28 = vpop.f32.mrf.mxu1 }
 0xa90   :  { %v6039_v14 = vpop.f32.mrf.mxu1 }
 0xa91   :  { %v6040_v62 = vadd.f32 %v6039_v14, %v6038_v28 }
 0xa92   :  { %v6041_v57 = vpop.f32.mrf.mxu1 }
 0xa94   :  { %v6042_v47 = vpop.f32.mrf.mxu1 }
 0xace   :  { %v6016_v32 = vpop.f32.mrf.mxu0 }
 0xad0   :  { %v6017_v18 = vpop.f32.mrf.mxu0 }
 0xad1   :  { %v6018_v26 = vadd.f32 %v6017_v18, %v6016_v32 }
 0xad2   :  { %v6019_v30 = vpop.f32.mrf.mxu0 }
 0xad3   :  { %v5400_v55 = vadd.f32 %v6040_v62, %v6018_v26 }
 0xad4   :  { %v6020_v6 = vpop.f32.mrf.mxu0 }
 0xad5   :  { %v5412_v0 = vadd.f32 %v5999_v37, %v5400_v55 }
 0xad7   :  { %5413 = vst [vmem:[#allocation22] sm:$0xff] %v5412_v0 }
 0xad8   :  { %7125 = shalt.err (!%p7122_p8)
}
 0xad9   :  { %5423 = dma.vmem_to_hbm [thread:$0]  %s5421_s0, 128, %s7741_s20, [#allocation4]  }
 0xada   :  { %7148 = dma.done.wait [#allocation4], 128  }
 0xadb   :  { %7149 = vsyncadd [#allocation4], 4294967168 }
 0xadc   :  { %5427 = vsyncpa [#allocation3], 1 }
 0xadd   :  { %5428 = vsyncpa [#allocation6], 1 }
 0xade   :  { %5429 = vsyncpa [#allocation9], 1 }
 0xadf   :  { %5430 = vsyncpa [#allocation12], 1 }
 0xae0   :  { %5431 = vsyncpa [#allocation15], 1 }
 0xae1   :  { %5432 = vsyncpa [#allocation18], 1 }
 0xae2   :  { %5433 = vsyncpa [#allocation21], 1 }
 0xae3   :  { %5434 = vsyncpa [#allocation4], 1 }

</bundles_post_ra>
